<compile_context>
chip_gen: v5e
topology: v5e:2x2
jax: 0.10.0
libtpu: 0.0.40
codegen_flags: <defaults>
</compile_context>

<pallas_src>
import numpy as np

import jax
import jax.numpy as jnp
from jax import lax
from jax.experimental import pallas as pl
from jax.experimental.pallas import tpu as pltpu

# ----------------------------- static geometry ----------------------------- #
_TB = 8            # batch tile (samples per grid step); batch padded to a multiple
_R1 = 28 * _TB     # conv1 rows per tile, ordered (i-parity, pooled-i, sample)
_RP = 14 * _TB     # pooled-1 rows per tile, ordered (pooled-i, sample)
_R2 = 10 * _TB     # conv2 rows per tile, ordered (conv2-i, sample)
_K1 = 512          # conv1 contraction: 5 row-taps x 32 cols x 3 ch = 480, padded


# ------------------------------- the kernel -------------------------------- #
def _net_kernel(p1_ref, w1_ref, b1_ref, w2_ref, b2_ref,
                wf1_ref, bf1_ref, wf2_ref, bf2_ref, wf3_ref, bf3_ref,
                out_ref):
    f32 = jnp.float32
    bf16 = jnp.bfloat16

    # conv1 + ReLU: one dense bf16 matmul (width-unfolded weight).
    #   rows  = i-parity*112 + pooled-i*8 + sample
    #   lanes = j-parity*128 + pooled-j*6 + out-channel     (84 valid per half)
    z1 = jnp.dot(p1_ref[...], w1_ref[...], preferred_element_type=f32)
    z1 = jnp.maximum(z1 + b1_ref[...], 0.0)                    # (224, 256)

    # pool1 (2x2/2): i-direction = max of the two contiguous row halves,
    #                j-direction = max of the two aligned 128-lane halves.
    im = jnp.maximum(z1[0:_RP, :], z1[_RP:_R1, :])             # (112, 256)
    p1v = jnp.maximum(im[:, 0:128], im[:, 128:256])            # (112, 128)

    # conv2 + ReLU: 5 contiguous row-shifted slices (tap over the 5 kernel
    # rows), each one (80x128)@(128x256) bf16 matmul; accumulate in registers.
    acc = jnp.dot(p1v[0:_R2, :].astype(bf16), w2_ref[0],
                  preferred_element_type=f32)
    for ki in range(1, 5):                                     # static, 5 taps
        acc = acc + jnp.dot(p1v[ki * _TB: ki * _TB + _R2, :].astype(bf16),
                            w2_ref[ki], preferred_element_type=f32)
    z2 = jnp.maximum(acc + b2_ref[...], 0.0)                   # (80, 256)

    # pool2 j-direction: aligned lane halves.
    #   rows  = conv2-i*8 + sample ; lanes = pooled2-j*16 + channel (80 valid)
    z2j = jnp.maximum(z2[:, 0:128], z2[:, 128:256])            # (80, 128)

    # pool2 i-direction + torch NCHW flatten + fc1: 5 taps over the pooled row
    # index, each an (8x128)@(128x128) matmul (flatten order folded into wf1).
    h = None
    for pi2 in range(5):                                       # static, 5 taps
        r0 = z2j[(2 * pi2) * _TB:(2 * pi2 + 1) * _TB, :]
        r1 = z2j[(2 * pi2 + 1) * _TB:(2 * pi2 + 2) * _TB, :]
        v = jnp.maximum(r0, r1).astype(bf16)                   # (8, 128)
        d = jnp.dot(v, wf1_ref[pi2], preferred_element_type=f32)
        h = d if h is None else h + d
    h = jnp.maximum(h + bf1_ref[...], 0.0)                     # relu(fc1)

    # fc2 + ReLU, fc3 (lane-dense 128-wide outputs; logits live in lanes 0:10).
    h = jnp.maximum(jnp.dot(h.astype(bf16), wf2_ref[...],
                            preferred_element_type=f32) + bf2_ref[...], 0.0)
    out_ref[...] = jnp.dot(h.astype(bf16), wf3_ref[...],
                           preferred_element_type=f32) + bf3_ref[...]


# --------------------------- parameter preparation -------------------------- #
def init_params(key):
    """Deterministic init, PyTorch-default-like U(-1/sqrt(fan_in), +)."""
    ks = jax.random.split(key, 10)

    def u(k, shape, fan_in):
        bound = 1.0 / jnp.sqrt(jnp.float32(fan_in))
        return jax.random.uniform(k, shape, jnp.float32, -bound, bound)

    return {
        "conv1_w": u(ks[0], (6, 3, 5, 5), 3 * 25),
        "conv1_b": u(ks[1], (6,), 3 * 25),
        "conv2_w": u(ks[2], (16, 6, 5, 5), 6 * 25),
        "conv2_b": u(ks[3], (16,), 6 * 25),
        "fc1_w": u(ks[4], (120, 16 * 5 * 5), 16 * 5 * 5),
        "fc1_b": u(ks[5], (120,), 16 * 5 * 5),
        "fc2_w": u(ks[6], (84, 120), 120),
        "fc2_b": u(ks[7], (84,), 120),
        "fc3_w": u(ks[8], (10, 84), 84),
        "fc3_b": u(ks[9], (10,), 84),
    }


def prepare_params(params):
    """One-time repack of torch-layout params into kernel-ready constants.

    Conv weights are width-unfolded ("Toeplitz along the output column"):
      conv1: W1T[ki*96 + j*3 + c, jpar*128 + pj*6 + oc]   = w1[oc, c, ki, j - (2*pj+jpar)]
      conv2: W2T[ki][pj*6 + c,    jpar*128 + pj2*16 + oc] = w2[oc, c, ki, pj - (2*pj2+jpar)]
    (zero outside the 5-tap window), so each conv becomes dense matmul(s) and
    every pool is a max of aligned row / lane halves.  fc1 folds the torch
    `view(-1, 400)` (c-major) flatten order.  All matmul operands are bf16.
    """
    f32 = np.float32
    w1 = np.asarray(params["conv1_w"], f32)     # (6, 3, 5, 5)
    b1 = np.asarray(params["conv1_b"], f32)
    w2 = np.asarray(params["conv2_w"], f32)     # (16, 6, 5, 5)
    b2 = np.asarray(params["conv2_b"], f32)

    w1t = np.zeros((_K1, 256), f32)
    for ki in range(5):
        for kj in range(5):
            blk = w1[:, :, ki, kj].T            # (c=3, oc=6)
            for oj in range(28):
                r0 = ki * 96 + (oj + kj) * 3
                c0 = (oj % 2) * 128 + (oj // 2) * 6
                w1t[r0:r0 + 3, c0:c0 + 6] = blk
    b1t = np.zeros((1, 256), f32)
    for oj in range(28):
        c0 = (oj % 2) * 128 + (oj // 2) * 6
        b1t[0, c0:c0 + 6] = b1

    w2t = np.zeros((5, 128, 256), f32)
    for ki in range(5):
        for kj in range(5):
            blk = w2[:, :, ki, kj].T            # (c=6, oc=16)
            for oj2 in range(10):
                r0 = (oj2 + kj) * 6
                c0 = (oj2 % 2) * 128 + (oj2 // 2) * 16
                w2t[ki, r0:r0 + 6, c0:c0 + 16] = blk
    b2t = np.zeros((1, 256), f32)
    for oj2 in range(10):
        c0 = (oj2 % 2) * 128 + (oj2 // 2) * 16
        b2t[0, c0:c0 + 16] = b2

    # fc1: torch flatten index = oc*25 + pi*5 + pj ; kernel lanes = pj*16 + oc.
    fc1 = np.asarray(params["fc1_w"], f32).reshape(120, 16, 5, 5)
    wf1 = np.zeros((5, 128, 128), f32)
    for pi2 in range(5):
        for pj2 in range(5):
            wf1[pi2, pj2 * 16:pj2 * 16 + 16, 0:120] = fc1[:, :, pi2, pj2].T
    bf1 = np.zeros((1, 128), f32)
    bf1[0, :120] = np.asarray(params["fc1_b"], f32)

    wf2 = np.zeros((128, 128), f32)
    wf2[:120, :84] = np.asarray(params["fc2_w"], f32).T
    bf2 = np.zeros((1, 128), f32)
    bf2[0, :84] = np.asarray(params["fc2_b"], f32)

    wf3 = np.zeros((128, 128), f32)
    wf3[:84, :10] = np.asarray(params["fc3_w"], f32).T
    bf3 = np.zeros((1, 128), f32)
    bf3[0, :10] = np.asarray(params["fc3_b"], f32)

    bf16 = jnp.bfloat16
    return {
        "w1": jnp.asarray(w1t, bf16), "b1": jnp.asarray(b1t),
        "w2": jnp.asarray(w2t, bf16), "b2": jnp.asarray(b2t),
        "wf1": jnp.asarray(wf1, bf16), "bf1": jnp.asarray(bf1),
        "wf2": jnp.asarray(wf2, bf16), "bf2": jnp.asarray(bf2),
        "wf3": jnp.asarray(wf3, bf16), "bf3": jnp.asarray(bf3),
    }


# ------------------------------- the forward -------------------------------- #
@jax.jit
def net_forward(kp, x_nchw):
    n = x_nchw.shape[0]
    n_pad = ((n + _TB - 1) // _TB) * _TB
    g = n_pad // _TB

    # Layout plumbing only: NCHW -> NHWC, pad batch, stack the 5 conv1 row
    # taps (full 32-wide rows; the column taps live inside the repacked
    # weight), and order rows (i-parity, pooled-i, sample) per batch tile so
    # pooling in the kernel is a max of contiguous halves.
    xh = jnp.transpose(x_nchw.astype(jnp.float32), (0, 2, 3, 1))   # (n,32,32,3)
    xh = jnp.pad(xh, ((0, n_pad - n), (0, 0), (0, 0), (0, 0)))
    win = jnp.stack([xh[:, ki:ki + 28, :, :] for ki in range(5)], axis=2)
    feats = win.reshape(n_pad, 28, 5 * 32 * 3)                     # (n_pad,28,480)
    feats = jnp.pad(feats, ((0, 0), (0, 0), (0, _K1 - 480)))       # -> 512 lanes
    feats = feats.reshape(g, _TB, 14, 2, _K1)
    feats = jnp.transpose(feats, (0, 3, 2, 1, 4))                  # (g,2,14,TB,512)
    patches = feats.reshape(g * _R1, _K1).astype(jnp.bfloat16)

    out = pl.pallas_call(
        _net_kernel,
        out_shape=jax.ShapeDtypeStruct((n_pad, 128), jnp.float32),
        grid=(g,),
        in_specs=[
            pl.BlockSpec((_R1, _K1), lambda i: (i, 0)),        # conv1 patches
            pl.BlockSpec((_K1, 256), lambda i: (0, 0)),        # w1 (resident)
            pl.BlockSpec((1, 256), lambda i: (0, 0)),          # b1
            pl.BlockSpec((5, 128, 256), lambda i: (0, 0, 0)),  # w2
            pl.BlockSpec((1, 256), lambda i: (0, 0)),          # b2
            pl.BlockSpec((5, 128, 128), lambda i: (0, 0, 0)),  # wf1
            pl.BlockSpec((1, 128), lambda i: (0, 0)),          # bf1
            pl.BlockSpec((128, 128), lambda i: (0, 0)),        # wf2
            pl.BlockSpec((1, 128), lambda i: (0, 0)),          # bf2
            pl.BlockSpec((128, 128), lambda i: (0, 0)),        # wf3
            pl.BlockSpec((1, 128), lambda i: (0, 0)),          # bf3
        ],
        out_specs=pl.BlockSpec((_TB, 128), lambda i: (i, 0)),
        compiler_params=pltpu.CompilerParams(
            dimension_semantics=("parallel",),
            vmem_limit_bytes=32 * 1024 * 1024),
    )(patches, kp["w1"], kp["b1"], kp["w2"], kp["b2"],
      kp["wf1"], kp["bf1"], kp["wf2"], kp["bf2"], kp["wf3"], kp["bf3"])
    return out[:n, :10]


# ------------------------------ pure-JAX reference -------------------------- #
def reference_forward(params, x):
    dn = ('NCHW', 'OIHW', 'NCHW')

    def conv(x, w, b):
        y = lax.conv_general_dilated(x, w, (1, 1), 'VALID',
                                     dimension_numbers=dn)
        return y + b[None, :, None, None]

    def pool(x):
        return lax.reduce_window(x, -jnp.inf, lax.max,
                                 (1, 1, 2, 2), (1, 1, 2, 2), 'VALID')

    x = pool(jax.nn.relu(conv(x, params["conv1_w"], params["conv1_b"])))
    x = pool(jax.nn.relu(conv(x, params["conv2_w"], params["conv2_b"])))
    x = x.reshape(x.shape[0], -1)
    x = jax.nn.relu(x @ params["fc1_w"].T + params["fc1_b"])
    x = jax.nn.relu(x @ params["fc2_w"].T + params["fc2_b"])
    return x @ params["fc3_w"].T + params["fc3_b"]


if __name__ == "__main__":
    key = jax.random.PRNGKey(0)
    k_params, k_x = jax.random.split(key)
    params = init_params(k_params)
    kparams = prepare_params(params)          # one-time weight repack (un-jitted)

    # batch=2: single grid step; batch=18: 3 parallel grid steps + batch padding.
    for batch in (2, 18):
        x = jax.random.normal(jax.random.fold_in(k_x, batch),
                              (batch, 3, 32, 32), dtype=jnp.float32)
        out = jax.block_until_ready(net_forward(kparams, x))
        assert out.shape == (batch, 10) and out.dtype == jnp.float32

        with jax.default_matmul_precision("highest"):
            ref = jax.block_until_ready(reference_forward(params, x))
        # 1e-2 tolerance absorbs bf16-operand rounding (f32 accumulation).
        np.testing.assert_allclose(np.asarray(out), np.asarray(ref),
                                   rtol=1e-2, atol=1e-2)
    print("KERNEL_OK")
</pallas_src>

<mosaic_0001>
module attributes {stable_mosaic.version = 11 : i64} {
  func.func @_net_kernel(%arg0: i32, %arg1: memref<224x512xbf16, #tpu.memory_space<vmem>>, %arg2: memref<512x256xbf16, #tpu.memory_space<vmem>>, %arg3: memref<1x256xf32, #tpu.memory_space<vmem>>, %arg4: memref<5x128x256xbf16, #tpu.memory_space<vmem>>, %arg5: memref<1x256xf32, #tpu.memory_space<vmem>>, %arg6: memref<5x128x128xbf16, #tpu.memory_space<vmem>>, %arg7: memref<1x128xf32, #tpu.memory_space<vmem>>, %arg8: memref<128x128xbf16, #tpu.memory_space<vmem>>, %arg9: memref<1x128xf32, #tpu.memory_space<vmem>>, %arg10: memref<128x128xbf16, #tpu.memory_space<vmem>>, %arg11: memref<1x128xf32, #tpu.memory_space<vmem>>, %arg12: memref<8x128xf32, #tpu.memory_space<vmem>>) attributes {dimension_semantics = [#tpu.dimension_semantics<parallel>], iteration_bounds = array<i64: 1>, scalar_prefetch = 0 : i64, scratch_operands = 0 : i64, tpu.core_type = #tpu.core_type<tc>, window_params = [{transform_indices = @transform_0, window_bounds = array<i64: 224, 512>}, {pipeline_mode = #tpu.pipeline_mode<synchronous>, transform_indices = @transform_1, window_bounds = array<i64: 512, 256>}, {pipeline_mode = #tpu.pipeline_mode<synchronous>, transform_indices = @transform_2, window_bounds = array<i64: 1, 256>}, {pipeline_mode = #tpu.pipeline_mode<synchronous>, transform_indices = @transform_3, window_bounds = array<i64: 5, 128, 256>}, {pipeline_mode = #tpu.pipeline_mode<synchronous>, transform_indices = @transform_4, window_bounds = array<i64: 1, 256>}, {pipeline_mode = #tpu.pipeline_mode<synchronous>, transform_indices = @transform_5, window_bounds = array<i64: 5, 128, 128>}, {pipeline_mode = #tpu.pipeline_mode<synchronous>, transform_indices = @transform_6, window_bounds = array<i64: 1, 128>}, {pipeline_mode = #tpu.pipeline_mode<synchronous>, transform_indices = @transform_7, window_bounds = array<i64: 128, 128>}, {pipeline_mode = #tpu.pipeline_mode<synchronous>, transform_indices = @transform_8, window_bounds = array<i64: 1, 128>}, {pipeline_mode = #tpu.pipeline_mode<synchronous>, transform_indices = @transform_9, window_bounds = array<i64: 128, 128>}, {pipeline_mode = #tpu.pipeline_mode<synchronous>, transform_indices = @transform_10, window_bounds = array<i64: 1, 128>}, {transform_indices = @transform_11, window_bounds = array<i64: 8, 128>}]} {
    %c0 = arith.constant 0 : index
    %c0_0 = arith.constant 0 : index
    %0 = vector.load %arg1[%c0, %c0_0] : memref<224x512xbf16, #tpu.memory_space<vmem>>, vector<224x512xbf16>
    %c0_1 = arith.constant 0 : index
    %c0_2 = arith.constant 0 : index
    %1 = vector.load %arg2[%c0_1, %c0_2] : memref<512x256xbf16, #tpu.memory_space<vmem>>, vector<512x256xbf16>
    %cst = arith.constant dense<0.000000e+00> : vector<224x256xf32>
    %2 = tpu.matmul %0, %1, %cst {dimension_numbers = #tpu.dot_dimension_numbers<[1], [0], [0], [1], [0, 0, 1, 1], [], []>} : vector<224x512xbf16>, vector<512x256xbf16>, vector<224x256xf32> -> vector<224x256xf32>
    %c0_3 = arith.constant 0 : index
    %c0_4 = arith.constant 0 : index
    %3 = vector.load %arg3[%c0_3, %c0_4] : memref<1x256xf32, #tpu.memory_space<vmem>>, vector<1x256xf32>
    %4 = vector.broadcast %3 : vector<1x256xf32> to vector<224x256xf32>
    %5 = arith.addf %2, %4 : vector<224x256xf32>
    %cst_5 = arith.constant 0.000000e+00 : f32
    %6 = vector.broadcast %cst_5 : f32 to vector<224x256xf32>
    %7 = arith.maximumf %5, %6 : vector<224x256xf32>
    %8 = vector.extract_strided_slice %7 {offsets = [0, 0], sizes = [112, 256], strides = [1, 1]} : vector<224x256xf32> to vector<112x256xf32>
    %9 = vector.extract_strided_slice %7 {offsets = [112, 0], sizes = [112, 256], strides = [1, 1]} : vector<224x256xf32> to vector<112x256xf32>
    %10 = arith.maximumf %8, %9 : vector<112x256xf32>
    %11 = vector.extract_strided_slice %10 {offsets = [0, 0], sizes = [112, 128], strides = [1, 1]} : vector<112x256xf32> to vector<112x128xf32>
    %12 = vector.extract_strided_slice %10 {offsets = [0, 128], sizes = [112, 128], strides = [1, 1]} : vector<112x256xf32> to vector<112x128xf32>
    %13 = arith.maximumf %11, %12 : vector<112x128xf32>
    %14 = vector.extract_strided_slice %13 {offsets = [0, 0], sizes = [80, 128], strides = [1, 1]} : vector<112x128xf32> to vector<80x128xf32>
    %15 = arith.truncf %14 : vector<80x128xf32> to vector<80x128xbf16>
    %c0_6 = arith.constant 0 : index
    %c0_7 = arith.constant 0 : index
    %c0_8 = arith.constant 0 : index
    %16 = vector.load %arg4[%c0_6, %c0_7, %c0_8] : memref<5x128x256xbf16, #tpu.memory_space<vmem>>, vector<1x128x256xbf16>
    %17 = vector.shape_cast %16 : vector<1x128x256xbf16> to vector<128x256xbf16>
    %cst_9 = arith.constant dense<0.000000e+00> : vector<80x256xf32>
    %18 = tpu.matmul %15, %17, %cst_9 {dimension_numbers = #tpu.dot_dimension_numbers<[1], [0], [0], [1], [0, 0, 1, 1], [], []>} : vector<80x128xbf16>, vector<128x256xbf16>, vector<80x256xf32> -> vector<80x256xf32>
    %19 = vector.extract_strided_slice %13 {offsets = [8, 0], sizes = [80, 128], strides = [1, 1]} : vector<112x128xf32> to vector<80x128xf32>
    %20 = arith.truncf %19 : vector<80x128xf32> to vector<80x128xbf16>
    %c1 = arith.constant 1 : index
    %c0_10 = arith.constant 0 : index
    %c0_11 = arith.constant 0 : index
    %21 = vector.load %arg4[%c1, %c0_10, %c0_11] : memref<5x128x256xbf16, #tpu.memory_space<vmem>>, vector<1x128x256xbf16>
    %22 = vector.shape_cast %21 : vector<1x128x256xbf16> to vector<128x256xbf16>
    %cst_12 = arith.constant dense<0.000000e+00> : vector<80x256xf32>
    %23 = tpu.matmul %20, %22, %cst_12 {dimension_numbers = #tpu.dot_dimension_numbers<[1], [0], [0], [1], [0, 0, 1, 1], [], []>} : vector<80x128xbf16>, vector<128x256xbf16>, vector<80x256xf32> -> vector<80x256xf32>
    %24 = arith.addf %18, %23 : vector<80x256xf32>
    %25 = vector.extract_strided_slice %13 {offsets = [16, 0], sizes = [80, 128], strides = [1, 1]} : vector<112x128xf32> to vector<80x128xf32>
    %26 = arith.truncf %25 : vector<80x128xf32> to vector<80x128xbf16>
    %c2 = arith.constant 2 : index
    %c0_13 = arith.constant 0 : index
    %c0_14 = arith.constant 0 : index
    %27 = vector.load %arg4[%c2, %c0_13, %c0_14] : memref<5x128x256xbf16, #tpu.memory_space<vmem>>, vector<1x128x256xbf16>
    %28 = vector.shape_cast %27 : vector<1x128x256xbf16> to vector<128x256xbf16>
    %cst_15 = arith.constant dense<0.000000e+00> : vector<80x256xf32>
    %29 = tpu.matmul %26, %28, %cst_15 {dimension_numbers = #tpu.dot_dimension_numbers<[1], [0], [0], [1], [0, 0, 1, 1], [], []>} : vector<80x128xbf16>, vector<128x256xbf16>, vector<80x256xf32> -> vector<80x256xf32>
    %30 = arith.addf %24, %29 : vector<80x256xf32>
    %31 = vector.extract_strided_slice %13 {offsets = [24, 0], sizes = [80, 128], strides = [1, 1]} : vector<112x128xf32> to vector<80x128xf32>
    %32 = arith.truncf %31 : vector<80x128xf32> to vector<80x128xbf16>
    %c3 = arith.constant 3 : index
    %c0_16 = arith.constant 0 : index
    %c0_17 = arith.constant 0 : index
    %33 = vector.load %arg4[%c3, %c0_16, %c0_17] : memref<5x128x256xbf16, #tpu.memory_space<vmem>>, vector<1x128x256xbf16>
    %34 = vector.shape_cast %33 : vector<1x128x256xbf16> to vector<128x256xbf16>
    %cst_18 = arith.constant dense<0.000000e+00> : vector<80x256xf32>
    %35 = tpu.matmul %32, %34, %cst_18 {dimension_numbers = #tpu.dot_dimension_numbers<[1], [0], [0], [1], [0, 0, 1, 1], [], []>} : vector<80x128xbf16>, vector<128x256xbf16>, vector<80x256xf32> -> vector<80x256xf32>
    %36 = arith.addf %30, %35 : vector<80x256xf32>
    %37 = vector.extract_strided_slice %13 {offsets = [32, 0], sizes = [80, 128], strides = [1, 1]} : vector<112x128xf32> to vector<80x128xf32>
    %38 = arith.truncf %37 : vector<80x128xf32> to vector<80x128xbf16>
    %c4 = arith.constant 4 : index
    %c0_19 = arith.constant 0 : index
    %c0_20 = arith.constant 0 : index
    %39 = vector.load %arg4[%c4, %c0_19, %c0_20] : memref<5x128x256xbf16, #tpu.memory_space<vmem>>, vector<1x128x256xbf16>
    %40 = vector.shape_cast %39 : vector<1x128x256xbf16> to vector<128x256xbf16>
    %cst_21 = arith.constant dense<0.000000e+00> : vector<80x256xf32>
    %41 = tpu.matmul %38, %40, %cst_21 {dimension_numbers = #tpu.dot_dimension_numbers<[1], [0], [0], [1], [0, 0, 1, 1], [], []>} : vector<80x128xbf16>, vector<128x256xbf16>, vector<80x256xf32> -> vector<80x256xf32>
    %42 = arith.addf %36, %41 : vector<80x256xf32>
    %c0_22 = arith.constant 0 : index
    %c0_23 = arith.constant 0 : index
    %43 = vector.load %arg5[%c0_22, %c0_23] : memref<1x256xf32, #tpu.memory_space<vmem>>, vector<1x256xf32>
    %44 = vector.broadcast %43 : vector<1x256xf32> to vector<80x256xf32>
    %45 = arith.addf %42, %44 : vector<80x256xf32>
    %cst_24 = arith.constant 0.000000e+00 : f32
    %46 = vector.broadcast %cst_24 : f32 to vector<80x256xf32>
    %47 = arith.maximumf %45, %46 : vector<80x256xf32>
    %48 = vector.extract_strided_slice %47 {offsets = [0, 0], sizes = [80, 128], strides = [1, 1]} : vector<80x256xf32> to vector<80x128xf32>
    %49 = vector.extract_strided_slice %47 {offsets = [0, 128], sizes = [80, 128], strides = [1, 1]} : vector<80x256xf32> to vector<80x128xf32>
    %50 = arith.maximumf %48, %49 : vector<80x128xf32>
    %51 = vector.extract_strided_slice %50 {offsets = [0, 0], sizes = [8, 128], strides = [1, 1]} : vector<80x128xf32> to vector<8x128xf32>
    %52 = vector.extract_strided_slice %50 {offsets = [8, 0], sizes = [8, 128], strides = [1, 1]} : vector<80x128xf32> to vector<8x128xf32>
    %53 = arith.maximumf %51, %52 : vector<8x128xf32>
    %54 = arith.truncf %53 : vector<8x128xf32> to vector<8x128xbf16>
    %c0_25 = arith.constant 0 : index
    %c0_26 = arith.constant 0 : index
    %c0_27 = arith.constant 0 : index
    %55 = vector.load %arg6[%c0_25, %c0_26, %c0_27] : memref<5x128x128xbf16, #tpu.memory_space<vmem>>, vector<1x128x128xbf16>
    %56 = vector.shape_cast %55 : vector<1x128x128xbf16> to vector<128x128xbf16>
    %cst_28 = arith.constant dense<0.000000e+00> : vector<8x128xf32>
    %57 = tpu.matmul %54, %56, %cst_28 {dimension_numbers = #tpu.dot_dimension_numbers<[1], [0], [0], [1], [0, 0, 1, 1], [], []>} : vector<8x128xbf16>, vector<128x128xbf16>, vector<8x128xf32> -> vector<8x128xf32>
    %58 = vector.extract_strided_slice %50 {offsets = [16, 0], sizes = [8, 128], strides = [1, 1]} : vector<80x128xf32> to vector<8x128xf32>
    %59 = vector.extract_strided_slice %50 {offsets = [24, 0], sizes = [8, 128], strides = [1, 1]} : vector<80x128xf32> to vector<8x128xf32>
    %60 = arith.maximumf %58, %59 : vector<8x128xf32>
    %61 = arith.truncf %60 : vector<8x128xf32> to vector<8x128xbf16>
    %c1_29 = arith.constant 1 : index
    %c0_30 = arith.constant 0 : index
    %c0_31 = arith.constant 0 : index
    %62 = vector.load %arg6[%c1_29, %c0_30, %c0_31] : memref<5x128x128xbf16, #tpu.memory_space<vmem>>, vector<1x128x128xbf16>
    %63 = vector.shape_cast %62 : vector<1x128x128xbf16> to vector<128x128xbf16>
    %cst_32 = arith.constant dense<0.000000e+00> : vector<8x128xf32>
    %64 = tpu.matmul %61, %63, %cst_32 {dimension_numbers = #tpu.dot_dimension_numbers<[1], [0], [0], [1], [0, 0, 1, 1], [], []>} : vector<8x128xbf16>, vector<128x128xbf16>, vector<8x128xf32> -> vector<8x128xf32>
    %65 = arith.addf %57, %64 : vector<8x128xf32>
    %66 = vector.extract_strided_slice %50 {offsets = [32, 0], sizes = [8, 128], strides = [1, 1]} : vector<80x128xf32> to vector<8x128xf32>
    %67 = vector.extract_strided_slice %50 {offsets = [40, 0], sizes = [8, 128], strides = [1, 1]} : vector<80x128xf32> to vector<8x128xf32>
    %68 = arith.maximumf %66, %67 : vector<8x128xf32>
    %69 = arith.truncf %68 : vector<8x128xf32> to vector<8x128xbf16>
    %c2_33 = arith.constant 2 : index
    %c0_34 = arith.constant 0 : index
    %c0_35 = arith.constant 0 : index
    %70 = vector.load %arg6[%c2_33, %c0_34, %c0_35] : memref<5x128x128xbf16, #tpu.memory_space<vmem>>, vector<1x128x128xbf16>
    %71 = vector.shape_cast %70 : vector<1x128x128xbf16> to vector<128x128xbf16>
    %cst_36 = arith.constant dense<0.000000e+00> : vector<8x128xf32>
    %72 = tpu.matmul %69, %71, %cst_36 {dimension_numbers = #tpu.dot_dimension_numbers<[1], [0], [0], [1], [0, 0, 1, 1], [], []>} : vector<8x128xbf16>, vector<128x128xbf16>, vector<8x128xf32> -> vector<8x128xf32>
    %73 = arith.addf %65, %72 : vector<8x128xf32>
    %74 = vector.extract_strided_slice %50 {offsets = [48, 0], sizes = [8, 128], strides = [1, 1]} : vector<80x128xf32> to vector<8x128xf32>
    %75 = vector.extract_strided_slice %50 {offsets = [56, 0], sizes = [8, 128], strides = [1, 1]} : vector<80x128xf32> to vector<8x128xf32>
    %76 = arith.maximumf %74, %75 : vector<8x128xf32>
    %77 = arith.truncf %76 : vector<8x128xf32> to vector<8x128xbf16>
    %c3_37 = arith.constant 3 : index
    %c0_38 = arith.constant 0 : index
    %c0_39 = arith.constant 0 : index
    %78 = vector.load %arg6[%c3_37, %c0_38, %c0_39] : memref<5x128x128xbf16, #tpu.memory_space<vmem>>, vector<1x128x128xbf16>
    %79 = vector.shape_cast %78 : vector<1x128x128xbf16> to vector<128x128xbf16>
    %cst_40 = arith.constant dense<0.000000e+00> : vector<8x128xf32>
    %80 = tpu.matmul %77, %79, %cst_40 {dimension_numbers = #tpu.dot_dimension_numbers<[1], [0], [0], [1], [0, 0, 1, 1], [], []>} : vector<8x128xbf16>, vector<128x128xbf16>, vector<8x128xf32> -> vector<8x128xf32>
    %81 = arith.addf %73, %80 : vector<8x128xf32>
    %82 = vector.extract_strided_slice %50 {offsets = [64, 0], sizes = [8, 128], strides = [1, 1]} : vector<80x128xf32> to vector<8x128xf32>
    %83 = vector.extract_strided_slice %50 {offsets = [72, 0], sizes = [8, 128], strides = [1, 1]} : vector<80x128xf32> to vector<8x128xf32>
    %84 = arith.maximumf %82, %83 : vector<8x128xf32>
    %85 = arith.truncf %84 : vector<8x128xf32> to vector<8x128xbf16>
    %c4_41 = arith.constant 4 : index
    %c0_42 = arith.constant 0 : index
    %c0_43 = arith.constant 0 : index
    %86 = vector.load %arg6[%c4_41, %c0_42, %c0_43] : memref<5x128x128xbf16, #tpu.memory_space<vmem>>, vector<1x128x128xbf16>
    %87 = vector.shape_cast %86 : vector<1x128x128xbf16> to vector<128x128xbf16>
    %cst_44 = arith.constant dense<0.000000e+00> : vector<8x128xf32>
    %88 = tpu.matmul %85, %87, %cst_44 {dimension_numbers = #tpu.dot_dimension_numbers<[1], [0], [0], [1], [0, 0, 1, 1], [], []>} : vector<8x128xbf16>, vector<128x128xbf16>, vector<8x128xf32> -> vector<8x128xf32>
    %89 = arith.addf %81, %88 : vector<8x128xf32>
    %c0_45 = arith.constant 0 : index
    %c0_46 = arith.constant 0 : index
    %90 = vector.load %arg7[%c0_45, %c0_46] : memref<1x128xf32, #tpu.memory_space<vmem>>, vector<1x128xf32>
    %91 = vector.broadcast %90 : vector<1x128xf32> to vector<8x128xf32>
    %92 = arith.addf %89, %91 : vector<8x128xf32>
    %cst_47 = arith.constant 0.000000e+00 : f32
    %93 = vector.broadcast %cst_47 : f32 to vector<8x128xf32>
    %94 = arith.maximumf %92, %93 : vector<8x128xf32>
    %95 = arith.truncf %94 : vector<8x128xf32> to vector<8x128xbf16>
    %c0_48 = arith.constant 0 : index
    %c0_49 = arith.constant 0 : index
    %96 = vector.load %arg8[%c0_48, %c0_49] : memref<128x128xbf16, #tpu.memory_space<vmem>>, vector<128x128xbf16>
    %cst_50 = arith.constant dense<0.000000e+00> : vector<8x128xf32>
    %97 = tpu.matmul %95, %96, %cst_50 {dimension_numbers = #tpu.dot_dimension_numbers<[1], [0], [0], [1], [0, 0, 1, 1], [], []>} : vector<8x128xbf16>, vector<128x128xbf16>, vector<8x128xf32> -> vector<8x128xf32>
    %c0_51 = arith.constant 0 : index
    %c0_52 = arith.constant 0 : index
    %98 = vector.load %arg9[%c0_51, %c0_52] : memref<1x128xf32, #tpu.memory_space<vmem>>, vector<1x128xf32>
    %99 = vector.broadcast %98 : vector<1x128xf32> to vector<8x128xf32>
    %100 = arith.addf %97, %99 : vector<8x128xf32>
    %cst_53 = arith.constant 0.000000e+00 : f32
    %101 = vector.broadcast %cst_53 : f32 to vector<8x128xf32>
    %102 = arith.maximumf %100, %101 : vector<8x128xf32>
    %103 = arith.truncf %102 : vector<8x128xf32> to vector<8x128xbf16>
    %c0_54 = arith.constant 0 : index
    %c0_55 = arith.constant 0 : index
    %104 = vector.load %arg10[%c0_54, %c0_55] : memref<128x128xbf16, #tpu.memory_space<vmem>>, vector<128x128xbf16>
    %cst_56 = arith.constant dense<0.000000e+00> : vector<8x128xf32>
    %105 = tpu.matmul %103, %104, %cst_56 {dimension_numbers = #tpu.dot_dimension_numbers<[1], [0], [0], [1], [0, 0, 1, 1], [], []>} : vector<8x128xbf16>, vector<128x128xbf16>, vector<8x128xf32> -> vector<8x128xf32>
    %c0_57 = arith.constant 0 : index
    %c0_58 = arith.constant 0 : index
    %106 = vector.load %arg11[%c0_57, %c0_58] : memref<1x128xf32, #tpu.memory_space<vmem>>, vector<1x128xf32>
    %107 = vector.broadcast %106 : vector<1x128xf32> to vector<8x128xf32>
    %108 = arith.addf %105, %107 : vector<8x128xf32>
    %c0_59 = arith.constant 0 : index
    %c0_60 = arith.constant 0 : index
    %109 = vector.load %arg12[%c0_59, %c0_60] : memref<8x128xf32, #tpu.memory_space<vmem>>, vector<8x128xf32>
    tpu.vector_store %arg12[%c0_59, %c0_60], %108 {strides = array<i32>} : memref<8x128xf32, #tpu.memory_space<vmem>>, vector<8x128xf32>,
    return
  }
  func.func @transform_0(%arg0: i32) -> (i32, i32) {
    %c0_i32 = arith.constant 0 : i32
    %c0_i32_0 = arith.constant 0 : i32
    return %arg0, %c0_i32 : i32, i32
  }
  func.func @transform_1(%arg0: i32) -> (i32, i32) {
    %c0_i32 = arith.constant 0 : i32
    %c0_i32_0 = arith.constant 0 : i32
    %c0_i32_1 = arith.constant 0 : i32
    return %c0_i32, %c0_i32_0 : i32, i32
  }
  func.func @transform_2(%arg0: i32) -> (i32, i32) {
    %c0_i32 = arith.constant 0 : i32
    %c0_i32_0 = arith.constant 0 : i32
    %c0_i32_1 = arith.constant 0 : i32
    return %c0_i32, %c0_i32_0 : i32, i32
  }
  func.func @transform_3(%arg0: i32) -> (i32, i32, i32) {
    %c0_i32 = arith.constant 0 : i32
    %c0_i32_0 = arith.constant 0 : i32
    %c0_i32_1 = arith.constant 0 : i32
    %c0_i32_2 = arith.constant 0 : i32
    return %c0_i32, %c0_i32_0, %c0_i32_1 : i32, i32, i32
  }
  func.func @transform_4(%arg0: i32) -> (i32, i32) {
    %c0_i32 = arith.constant 0 : i32
    %c0_i32_0 = arith.constant 0 : i32
    %c0_i32_1 = arith.constant 0 : i32
    return %c0_i32, %c0_i32_0 : i32, i32
  }
  func.func @transform_5(%arg0: i32) -> (i32, i32, i32) {
    %c0_i32 = arith.constant 0 : i32
    %c0_i32_0 = arith.constant 0 : i32
    %c0_i32_1 = arith.constant 0 : i32
    %c0_i32_2 = arith.constant 0 : i32
    return %c0_i32, %c0_i32_0, %c0_i32_1 : i32, i32, i32
  }
  func.func @transform_6(%arg0: i32) -> (i32, i32) {
    %c0_i32 = arith.constant 0 : i32
    %c0_i32_0 = arith.constant 0 : i32
    %c0_i32_1 = arith.constant 0 : i32
    return %c0_i32, %c0_i32_0 : i32, i32
  }
  func.func @transform_7(%arg0: i32) -> (i32, i32) {
    %c0_i32 = arith.constant 0 : i32
    %c0_i32_0 = arith.constant 0 : i32
    %c0_i32_1 = arith.constant 0 : i32
    return %c0_i32, %c0_i32_0 : i32, i32
  }
  func.func @transform_8(%arg0: i32) -> (i32, i32) {
    %c0_i32 = arith.constant 0 : i32
    %c0_i32_0 = arith.constant 0 : i32
    %c0_i32_1 = arith.constant 0 : i32
    return %c0_i32, %c0_i32_0 : i32, i32
  }
  func.func @transform_9(%arg0: i32) -> (i32, i32) {
    %c0_i32 = arith.constant 0 : i32
    %c0_i32_0 = arith.constant 0 : i32
    %c0_i32_1 = arith.constant 0 : i32
    return %c0_i32, %c0_i32_0 : i32, i32
  }
  func.func @transform_10(%arg0: i32) -> (i32, i32) {
    %c0_i32 = arith.constant 0 : i32
    %c0_i32_0 = arith.constant 0 : i32
    %c0_i32_1 = arith.constant 0 : i32
    return %c0_i32, %c0_i32_0 : i32, i32
  }
  func.func @transform_11(%arg0: i32) -> (i32, i32) {
    %c0_i32 = arith.constant 0 : i32
    %c0_i32_0 = arith.constant 0 : i32
    return %arg0, %c0_i32 : i32, i32
  }
}

</mosaic_0001>

<bundles_post_ra>
// kernel: net_forward.1
= control target key start
LH: loop header
LB: loop body
LE: loop exit
PB: predicated region body
PF: predicated region fallthrough
CT: control target
= control target key end

     0   :  { %s6558_s1 = inlined_call_operand.vmem [shape: bf16[512,256], index: 1, kind: input, shape index: {}]   ;;  %s6559_s0 = inlined_call_operand.vmem [shape: bf16[224,512], index: 0, kind: input, shape index: {}]   ;;  %s6560_s2 = inlined_call_operand.vmem [shape: f32[1,256], index: 2, kind: input, shape index: {}]   ;;  %s6561_s3 = inlined_call_operand.vmem [shape: bf16[5,128,256], index: 3, kind: input, shape index: {}]   ;;  %s6562_s5 = inlined_call_operand.vmem [shape: bf16[5,128,128], index: 5, kind: input, shape index: {}]   ;;  %s6563_s4 = inlined_call_operand.vmem [shape: f32[1,256], index: 4, kind: input, shape index: {}]   ;;  %s6564_s6 = inlined_call_operand.vmem [shape: f32[1,128], index: 6, kind: input, shape index: {}]   ;;  %s6565_s8 = inlined_call_operand.vmem [shape: f32[1,128], index: 8, kind: input, shape index: {}]   ;;  %s6566_s7 = inlined_call_operand.vmem [shape: bf16[128,128], index: 7, kind: input, shape index: {}]   ;;  %s6567_s9 = inlined_call_operand.vmem [shape: bf16[128,128], index: 9, kind: input, shape index: {}]   ;;  %s6568_s10 = inlined_call_operand.vmem [shape: f32[1,128], index: 10, kind: input, shape index: {}]   ;;  %s6569_s11 = inlined_call_operand.vmem [shape: f32[8,128], index: 11, kind: output, shape index: {}]  }
   0x1   :  { %v3307_v0 = vld [vmem:[%s6558_s1 + $0x70] sm:$0xf]  ;;  %v4248_v1 = vld [vmem:[%s6558_s1 + $0x74] sm:$0xf0]  ;;  %v3299_v11 = vld [vmem:[%s6558_s1 + $0x60] sm:$0xf] }
   0x2   :  { %v3371_v2 = vld [vmem:[%s6558_s1 + $0xf0] sm:$0xf]  ;;  %v3308_v3 = vor.u32 %v4248_v1, %v3307_v0  ;;  %v4264_v4 = vld [vmem:[%s6558_s1 + $0xf4] sm:$0xf0]  ;;  %v4246_v13 = vld [vmem:[%s6558_s1 + $0x64] sm:$0xf0] }
   0x3   :  { %v3435_v5 = vld [vmem:[%s6558_s1 + $0x170] sm:$0xf]  ;;  %v4280_v6 = vld [vmem:[%s6558_s1 + $0x174] sm:$0xf0]  ;;  %v3372_v7 = vor.u32 %v4264_v4, %v3371_v2  ;;  %v3363_v14 = vld [vmem:[%s6558_s1 + $0xe0] sm:$0xf]  ;;  %v3300_v16 = vor.u32 %v4246_v13, %v3299_v11 }
   0x4   :  { %v3436_v8 = vor.u32 %v4280_v6, %v3435_v5  ;;  %v3499_v9 = vld [vmem:[%s6558_s1 + $0x1f0] sm:$0xf]  ;;  %v4296_v10 = vld [vmem:[%s6558_s1 + $0x1f4] sm:$0xf0]  ;;  %764 = vmatpush.bf16.msra.mxu0 %v3308_v3  ;;  %v4262_v15 = vld [vmem:[%s6558_s1 + $0xe4] sm:$0xf0] }
   0x5   :  { %v3500_v12 = vor.u32 %v4296_v10, %v3499_v9  ;;  %843 = vmatpush.bf16.msra.mxu1 %v3372_v7  ;;  %v3364_v17 = vor.u32 %v4262_v15, %v3363_v14  ;;  %v3427_v18 = vld [vmem:[%s6558_s1 + $0x160] sm:$0xf]  ;;  %v4278_v19 = vld [vmem:[%s6558_s1 + $0x164] sm:$0xf0]  ;;  %v3291_v23 = vld [vmem:[%s6558_s1 + $0x50] sm:$0xf] }
   0x6   :  { %922 = vmatpush.bf16.msra.mxu2 %v3436_v8  ;;  %v3491_v20 = vld [vmem:[%s6558_s1 + $0x1e0] sm:$0xf]  ;;  %v3428_v21 = vor.u32 %v4278_v19, %v3427_v18  ;;  %v4294_v22 = vld [vmem:[%s6558_s1 + $0x1e4] sm:$0xf0]  ;;  %v4244_v24 = vld [vmem:[%s6558_s1 + $0x54] sm:$0xf0] }
   0x7   :  { %1001 = vmatpush.bf16.msra.mxu3 %v3500_v12  ;;  %v3492_v25 = vor.u32 %v4294_v22, %v3491_v20  ;;  %v3355_v26 = vld [vmem:[%s6558_s1 + $0xd0] sm:$0xf]  ;;  %v4260_v27 = vld [vmem:[%s6558_s1 + $0xd4] sm:$0xf0]  ;;  %v3292_v29 = vor.u32 %v4244_v24, %v3291_v23  ;;  %v3283_v35 = vld [vmem:[%s6558_s1 + $0x40] sm:$0xf] }
   0x8   :  { %v3419_v28 = vld [vmem:[%s6558_s1 + $0x150] sm:$0xf]  ;;  %765 = vmatpush.bf16.msra.mxu0 %v3300_v16  ;;  %v4276_v30 = vld [vmem:[%s6558_s1 + $0x154] sm:$0xf0]  ;;  %v3356_v33 = vor.u32 %v4260_v27, %v3355_v26  ;;  %v4242_v36 = vld [vmem:[%s6558_s1 + $0x44] sm:$0xf0] }
   0x9   :  { %v3483_v31 = vld [vmem:[%s6558_s1 + $0x1d0] sm:$0xf]  ;;  %v4292_v32 = vld [vmem:[%s6558_s1 + $0x1d4] sm:$0xf0]  ;;  %844 = vmatpush.bf16.msra.mxu1 %v3364_v17  ;;  %v3420_v34 = vor.u32 %v4276_v30, %v3419_v28  ;;  %v3347_v37 = vld [vmem:[%s6558_s1 + $0xc0] sm:$0xf]  ;;  %v3284_v44 = vor.u32 %v4242_v36, %v3283_v35 }
   0xa   :  { %923 = vmatpush.bf16.msra.mxu2 %v3428_v21  ;;  %v3484_v38 = vor.u32 %v4292_v32, %v3483_v31  ;;  %v4258_v39 = vld [vmem:[%s6558_s1 + $0xc4] sm:$0xf0]  ;;  %v3411_v40 = vld [vmem:[%s6558_s1 + $0x140] sm:$0xf]  ;;  %v3275_v47 = vld [vmem:[%s6558_s1 + $0x30] sm:$0xf] }
   0xb   :  { %1002 = vmatpush.bf16.msra.mxu3 %v3492_v25  ;;  %v4274_v41 = vld [vmem:[%s6558_s1 + $0x144] sm:$0xf0]  ;;  %v3475_v42 = vld [vmem:[%s6558_s1 + $0x1c0] sm:$0xf]  ;;  %v3348_v45 = vor.u32 %v4258_v39, %v3347_v37  ;;  %v4240_v48 = vld [vmem:[%s6558_s1 + $0x34] sm:$0xf0] }
   0xc   :  { %v4290_v43 = vld [vmem:[%s6558_s1 + $0x1c4] sm:$0xf0]  ;;  %766 = vmatpush.bf16.msra.mxu0 %v3292_v29  ;;  %v3412_v46 = vor.u32 %v4274_v41, %v3411_v40  ;;  %v3339_v49 = vld [vmem:[%s6558_s1 + $0xb0] sm:$0xf]  ;;  %v4256_v51 = vld [vmem:[%s6558_s1 + $0xb4] sm:$0xf0]  ;;  %v3276_v56 = vor.u32 %v4240_v48, %v3275_v47 }
   0xd   :  { %845 = vmatpush.bf16.msra.mxu1 %v3356_v33  ;;  %v3476_v50 = vor.u32 %v4290_v43, %v3475_v42  ;;  %v3403_v52 = vld [vmem:[%s6558_s1 + $0x130] sm:$0xf]  ;;  %v4272_v53 = vld [vmem:[%s6558_s1 + $0x134] sm:$0xf0]  ;;  %v3340_v57 = vor.u32 %v4256_v51, %v3339_v49  ;;  %v3267_v59 = vld [vmem:[%s6558_s1 + $0x20] sm:$0xf] }
   0xe   :  { %924 = vmatpush.bf16.msra.mxu2 %v3420_v34  ;;  %v3467_v54 = vld [vmem:[%s6558_s1 + $0x1b0] sm:$0xf]  ;;  %v4288_v55 = vld [vmem:[%s6558_s1 + $0x1b4] sm:$0xf0]  ;;  %v3404_v58 = vor.u32 %v4272_v53, %v3403_v52  ;;  %v4238_v60 = vld [vmem:[%s6558_s1 + $0x24] sm:$0xf0] }
   0xf   :  { %1003 = vmatpush.bf16.msra.mxu3 %v3484_v38  ;;  %v3331_v61 = vld [vmem:[%s6558_s1 + $0xa0] sm:$0xf]  ;;  %v3468_v62 = vor.u32 %v4288_v55, %v3467_v54  ;;  %v4254_v63 = vld [vmem:[%s6558_s1 + $0xa4] sm:$0xf0]  ;;  %v3268_v4 = vor.u32 %v4238_v60, %v3267_v59  ;;  %v3259_v7 = vld [vmem:[%s6558_s1 + $0x10] sm:$0xf] }
  0x10   :  { %767 = vmatpush.bf16.msra.mxu0 %v3284_v44  ;;  %v3395_v0 = vld [vmem:[%s6558_s1 + $0x120] sm:$0xf]  ;;  %v4270_v1 = vld [vmem:[%s6558_s1 + $0x124] sm:$0xf0]  ;;  %v3332_v5 = vor.u32 %v4254_v63, %v3331_v61  ;;  %v4236_v8 = vld [vmem:[%s6558_s1 + $0x14] sm:$0xf0] }
  0x11   :  { %846 = vmatpush.bf16.msra.mxu1 %v3348_v45  ;;  %v3459_v2 = vld [vmem:[%s6558_s1 + $0x1a0] sm:$0xf]  ;;  %v4286_v3 = vld [vmem:[%s6558_s1 + $0x1a4] sm:$0xf0]  ;;  %v3396_v6 = vor.u32 %v4270_v1, %v3395_v0  ;;  %v3323_v9 = vld [vmem:[%s6558_s1 + $0x90] sm:$0xf]  ;;  %v3260_v17 = vor.u32 %v4236_v8, %v3259_v7 }
  0x12   :  { %925 = vmatpush.bf16.msra.mxu2 %v3412_v46  ;;  %v3460_v10 = vor.u32 %v4286_v3, %v3459_v2  ;;  %v4252_v11 = vld [vmem:[%s6558_s1 + $0x94] sm:$0xf0]  ;;  %v3387_v12 = vld [vmem:[%s6558_s1 + $0x110] sm:$0xf]  ;;  %v3251_v16 = vld [vmem:[%s6558_s1] sm:$0xf] }
  0x13   :  { %1004 = vmatpush.bf16.msra.mxu3 %v3476_v50  ;;  %v4268_v13 = vld [vmem:[%s6558_s1 + $0x114] sm:$0xf0]  ;;  %v3451_v14 = vld [vmem:[%s6558_s1 + $0x190] sm:$0xf]  ;;  %v4234_v18 = vld [vmem:[%s6558_s1 + $0x4] sm:$0xf0]  ;;  %v3324_v21 = vor.u32 %v4252_v11, %v3323_v9 }
  0x14   :  { %768 = vmatpush.bf16.msra.mxu0 %v3276_v56  ;;  %v4284_v15 = vld [vmem:[%s6558_s1 + $0x194] sm:$0xf0]  ;;  %v3315_v19 = vld [vmem:[%s6558_s1 + $0x80] sm:$0xf]  ;;  %v4250_v20 = vld [vmem:[%s6558_s1 + $0x84] sm:$0xf0]  ;;  %v3388_v22 = vor.u32 %v4268_v13, %v3387_v12  ;;  %v3252_v34 = vor.u32 %v4234_v18, %v3251_v16 }
  0x15   :  { %847 = vmatpush.bf16.msra.mxu1 %v3340_v57  ;;  %v3379_v23 = vld [vmem:[%s6558_s1 + $0x100] sm:$0xf]  ;;  %v4266_v24 = vld [vmem:[%s6558_s1 + $0x104] sm:$0xf0]  ;;  %v3452_v26 = vor.u32 %v4284_v15, %v3451_v14  ;;  %v4179_v29 = vld [vmem:[%s6559_s0 + $0xc] sm:$0xf0]  ;;  %v3316_v38 = vor.u32 %v4250_v20, %v3315_v19 }
  0x16   :  { %926 = vmatpush.bf16.msra.mxu2 %v3404_v58  ;;  %v3443_v25 = vld [vmem:[%s6558_s1 + $0x180] sm:$0xf]  ;;  %v4282_v27 = vld [vmem:[%s6558_s1 + $0x184] sm:$0xf0]  ;;  %v4177_v30 = vld [vmem:[%s6559_s0 + $0x4] sm:$0xf]  ;;  %v3380_v39 = vor.u32 %v4266_v24, %v3379_v23 }
  0x17   :  { %1005 = vmatpush.bf16.msra.mxu3 %v3468_v62  ;;  %v3027_v28 = vld [vmem:[%s6559_s0] sm:$0xf]  ;;  %v3029_v31 = vld [vmem:[%s6559_s0 + $0x10] sm:$0xf0]  ;;  %v3437_v33 = vld [vmem:[%s6558_s1 + $0x178] sm:$0xf0]  ;;  %v3444_v43 = vor.u32 %v4282_v27, %v3443_v25 }
  0x18   :  { %769 = vmatpush.bf16.msra.mxu0 %v3268_v4  ;;  %v4279_v32 = vld [vmem:[%s6558_s1 + $0x174] sm:$0xf]  ;;  %v3035_v35 = vld [vmem:[%s6559_s0 + $0x8] sm:$0xf]  ;;  %v3501_v37 = vld [vmem:[%s6558_s1 + $0x1f8] sm:$0xf0]  ;;  %v4733_v48 = vor.u32 %v4179_v29, %v3027_v28  ;;  %v4744_v53 = vor.u32 %v4177_v30, %v3029_v31 }
  0x19   :  { %848 = vmatpush.bf16.msra.mxu1 %v3332_v5  ;;  %v4295_v36 = vld [vmem:[%s6558_s1 + $0x1f4] sm:$0xf]  ;;  %v4180_v40 = vld [vmem:[%s6559_s0 + $0x14] sm:$0xf0]  ;;  %v4178_v41 = vld [vmem:[%s6559_s0 + $0xc] sm:$0xf]  ;;  %v3440_v44 = vor.u32 %v4279_v32, %v3437_v33 }
  0x1a   :  { %927 = vmatpush.bf16.msra.mxu2 %v3396_v6  ;;  %v3037_v42 = vld [vmem:[%s6559_s0 + $0x18] sm:$0xf0]  ;;  %v4247_v45 = vld [vmem:[%s6558_s1 + $0x74] sm:$0xf]  ;;  %v3504_v49 = vor.u32 %v4295_v36, %v3501_v37  ;;  %v4277_v51 = vld [vmem:[%s6558_s1 + $0x164] sm:$0xf]  ;;  %v4746_v54 = vor.u32 %v4180_v40, %v3035_v35 }
  0x1b   :  { %1006 = vmatpush.bf16.msra.mxu3 %v3460_v10  ;;  %v3309_v46 = vld [vmem:[%s6558_s1 + $0x78] sm:$0xf0]  ;;  %v4263_v47 = vld [vmem:[%s6558_s1 + $0xf4] sm:$0xf]  ;;  %v3429_v52 = vld [vmem:[%s6558_s1 + $0x168] sm:$0xf0]  ;;  %v4754_v57 = vor.u32 %v4178_v41, %v3037_v42 }
  0x1c   :  { %770 = vmatpush.bf16.msra.mxu0 %v3260_v17  ;;  %v3373_v50 = vld [vmem:[%s6558_s1 + $0xf8] sm:$0xf0]  ;;  %v4293_v55 = vld [vmem:[%s6558_s1 + $0x1e4] sm:$0xf]  ;;  %v3493_v56 = vld [vmem:[%s6558_s1 + $0x1e8] sm:$0xf0]  ;;  %v3312_v58 = vor.u32 %v4247_v45, %v3309_v46  ;;  %v3432_v60 = vor.u32 %v4277_v51, %v3429_v52 }
  0x1d   :  { %849 = vmatpush.bf16.msra.mxu1 %v3324_v21  ;;  %v3376_v59 = vor.u32 %v4263_v47, %v3373_v50  ;;  %v4245_v61 = vld [vmem:[%s6558_s1 + $0x64] sm:$0xf]  ;;  %v3301_v62 = vld [vmem:[%s6558_s1 + $0x68] sm:$0xf0]  ;;  %v3496_v63 = vor.u32 %v4293_v55, %v3493_v56  ;;  %v3043_v4 = vld [vmem:[%s6559_s0 + $0x20] sm:$0xf] }
  0x1e   :  { %928 = vmatpush.bf16.msra.mxu2 %v3388_v22  ;;  %v3304_v0 = vor.u32 %v4245_v61, %v3301_v62  ;;  %v4261_v1 = vld [vmem:[%s6558_s1 + $0xe4] sm:$0xf]  ;;  %v3365_v2 = vld [vmem:[%s6558_s1 + $0xe8] sm:$0xf0]  ;;  %v4183_v5 = vld [vmem:[%s6559_s0 + $0x2c] sm:$0xf0] }
  0x1f   :  { %1007 = vmatpush.bf16.msra.mxu3 %v3452_v26  ;;  %v3368_v3 = vor.u32 %v4261_v1, %v3365_v2  ;;  %v4181_v6 = vld [vmem:[%s6559_s0 + $0x24] sm:$0xf]  ;;  %v3045_v7 = vld [vmem:[%s6559_s0 + $0x30] sm:$0xf0]  ;;  %v3051_v8 = vld [vmem:[%s6559_s0 + $0x28] sm:$0xf]  ;;  %v4796_v12 = vor.u32 %v4183_v5, %v3043_v4 }
  0x20   :  { %771 = vmatpush.bf16.msra.mxu0 %v3252_v34  ;;  %v4184_v9 = vld [vmem:[%s6559_s0 + $0x34] sm:$0xf0]  ;;  %v4182_v10 = vld [vmem:[%s6559_s0 + $0x2c] sm:$0xf]  ;;  %v3053_v11 = vld [vmem:[%s6559_s0 + $0x38] sm:$0xf0]  ;;  %v4798_v13 = vor.u32 %v4181_v6, %v3045_v7 }
  0x21   :  { %850 = vmatpush.bf16.msra.mxu1 %v3316_v38  ;;  %v4800_v14 = vor.u32 %v4184_v9, %v3051_v8  ;;  %v4802_v15 = vor.u32 %v4182_v10, %v3053_v11  ;;  %v4275_v16 = vld [vmem:[%s6558_s1 + $0x154] sm:$0xf]  ;;  %v3421_v17 = vld [vmem:[%s6558_s1 + $0x158] sm:$0xf0]  ;;  %v3059_v28 = vld [vmem:[%s6559_s0 + $0x40] sm:$0xf] }
  0x22   :  { %929 = vmatpush.bf16.msra.mxu2 %v3380_v39  ;;  %v4243_v18 = vld [vmem:[%s6558_s1 + $0x54] sm:$0xf]  ;;  %v3424_v19 = vor.u32 %v4275_v16, %v3421_v17  ;;  %v3293_v20 = vld [vmem:[%s6558_s1 + $0x58] sm:$0xf0]  ;;  %v4187_v29 = vld [vmem:[%s6559_s0 + $0x4c] sm:$0xf0] }
  0x23   :  { %1008 = vmatpush.bf16.msra.mxu3 %v3444_v43  ;;  %772 = vmatmul.bf16.vlgmr.msra.gmra.mxu0 %v4733_v48  ;;  %v4291_v21 = vld [vmem:[%s6558_s1 + $0x1d4] sm:$0xf]  ;;  %v3485_v22 = vld [vmem:[%s6558_s1 + $0x1d8] sm:$0xf0]  ;;  %v3296_v23 = vor.u32 %v4243_v18, %v3293_v20  ;;  %v4185_v30 = vld [vmem:[%s6559_s0 + $0x44] sm:$0xf]  ;;  %v4856_v36 = vor.u32 %v4187_v29, %v3059_v28 }
  0x24   :  { %851 = vmatmul.bf16.vlgmr.msra.gmra.mxu1 %v4744_v53  ;;  %1080 = vmatpush.bf16.msrb.mxu0 %v3312_v58  ;;  %v3488_v24 = vor.u32 %v4291_v21, %v3485_v22  ;;  %v4259_v25 = vld [vmem:[%s6558_s1 + $0xd4] sm:$0xf]  ;;  %v3357_v26 = vld [vmem:[%s6558_s1 + $0xd8] sm:$0xf0]  ;;  %v3067_v32 = vld [vmem:[%s6559_s0 + $0x48] sm:$0xf] }
  0x25   :  { %930 = vmatmul.bf16.vlgmr.msra.gmra.mxu2 %v4746_v54  ;;  %1159 = vmatpush.bf16.msrb.mxu1 %v3376_v59  ;;  %v3360_v27 = vor.u32 %v4259_v25, %v3357_v26  ;;  %v3061_v31 = vld [vmem:[%s6559_s0 + $0x50] sm:$0xf0]  ;;  %v4188_v33 = vld [vmem:[%s6559_s0 + $0x54] sm:$0xf0]  ;;  %v4186_v34 = vld [vmem:[%s6559_s0 + $0x4c] sm:$0xf] }
  0x26   :  { %1238 = vmatpush.bf16.msrb.mxu2 %v3440_v44  ;;  %1009 = vmatmul.bf16.vlgmr.msra.gmra.mxu3 %v4754_v57  ;;  %v3069_v35 = vld [vmem:[%s6559_s0 + $0x58] sm:$0xf0]  ;;  %v4858_v37 = vor.u32 %v4185_v30, %v3061_v31  ;;  %v4860_v38 = vor.u32 %v4188_v33, %v3067_v32  ;;  %v3075_v40 = vld [vmem:[%s6559_s0 + $0x60] sm:$0xf]  ;;  %v4191_v41 = vld [vmem:[%s6559_s0 + $0x6c] sm:$0xf0] }
  0x27   :  { %1317 = vmatpush.bf16.msrb.mxu3 %v3504_v49  ;;  %v4862_v39 = vor.u32 %v4186_v34, %v3069_v35  ;;  %v4189_v42 = vld [vmem:[%s6559_s0 + $0x64] sm:$0xf]  ;;  %v3077_v43 = vld [vmem:[%s6559_s0 + $0x70] sm:$0xf0]  ;;  %v3083_v44 = vld [vmem:[%s6559_s0 + $0x68] sm:$0xf]  ;;  %v4892_v49 = vor.u32 %v4191_v41, %v3075_v40 }
  0x28   :  { %1081 = vmatpush.bf16.msrb.mxu0 %v3304_v0  ;;  %v4192_v45 = vld [vmem:[%s6559_s0 + $0x74] sm:$0xf0]  ;;  %v4190_v46 = vld [vmem:[%s6559_s0 + $0x6c] sm:$0xf]  ;;  %v3085_v47 = vld [vmem:[%s6559_s0 + $0x78] sm:$0xf0]  ;;  %v4894_v50 = vor.u32 %v4189_v42, %v3077_v43 }
  0x29   :  { %1160 = vmatpush.bf16.msrb.mxu1 %v3368_v3  ;;  %v4896_v51 = vor.u32 %v4192_v45, %v3083_v44  ;;  %v4898_v52 = vor.u32 %v4190_v46, %v3085_v47  ;;  %v4273_v55 = vld [vmem:[%s6558_s1 + $0x144] sm:$0xf]  ;;  %v3413_v56 = vld [vmem:[%s6558_s1 + $0x148] sm:$0xf0]  ;;  %v3091_v4 = vld [vmem:[%s6559_s0 + $0x80] sm:$0xf] }
  0x2a   :  { %1239 = vmatpush.bf16.msrb.mxu2 %v3432_v60  ;;  %v4241_v58 = vld [vmem:[%s6558_s1 + $0x44] sm:$0xf]  ;;  %v3416_v59 = vor.u32 %v4273_v55, %v3413_v56  ;;  %v3285_v60 = vld [vmem:[%s6558_s1 + $0x48] sm:$0xf0]  ;;  %v4195_v5 = vld [vmem:[%s6559_s0 + $0x8c] sm:$0xf0] }
  0x2b   :  { %1318 = vmatpush.bf16.msrb.mxu3 %v3496_v63  ;;  %v4289_v61 = vld [vmem:[%s6558_s1 + $0x1c4] sm:$0xf]  ;;  %v3477_v62 = vld [vmem:[%s6558_s1 + $0x1c8] sm:$0xf0]  ;;  %v3288_v63 = vor.u32 %v4241_v58, %v3285_v60  ;;  %v3093_v7 = vld [vmem:[%s6559_s0 + $0x90] sm:$0xf0]  ;;  %v4952_v16 = vor.u32 %v4195_v5, %v3091_v4 }
  0x2c   :  { %1082 = vmatpush.bf16.msrb.mxu0 %v3296_v23  ;;  %v3480_v0 = vor.u32 %v4289_v61, %v3477_v62  ;;  %v4257_v1 = vld [vmem:[%s6558_s1 + $0xc4] sm:$0xf]  ;;  %v3349_v2 = vld [vmem:[%s6558_s1 + $0xc8] sm:$0xf0]  ;;  %v3099_v8 = vld [vmem:[%s6559_s0 + $0x88] sm:$0xf] }
  0x2d   :  { %1161 = vmatpush.bf16.msrb.mxu1 %v3360_v27  ;;  %v3352_v3 = vor.u32 %v4257_v1, %v3349_v2  ;;  %v4193_v6 = vld [vmem:[%s6559_s0 + $0x84] sm:$0xf]  ;;  %v4196_v9 = vld [vmem:[%s6559_s0 + $0x94] sm:$0xf0]  ;;  %v4194_v10 = vld [vmem:[%s6559_s0 + $0x8c] sm:$0xf] }
  0x2e   :  { %1240 = vmatpush.bf16.msrb.mxu2 %v3424_v19  ;;  %v3101_v11 = vld [vmem:[%s6559_s0 + $0x98] sm:$0xf0]  ;;  %v4954_v17 = vor.u32 %v4193_v6, %v3093_v7  ;;  %v4956_v18 = vor.u32 %v4196_v9, %v3099_v8  ;;  %v3107_v20 = vld [vmem:[%s6559_s0 + $0xa0] sm:$0xf]  ;;  %v4199_v21 = vld [vmem:[%s6559_s0 + $0xac] sm:$0xf0] }
  0x2f   :  { %1319 = vmatpush.bf16.msrb.mxu3 %v3488_v24  ;;  %v4958_v19 = vor.u32 %v4194_v10, %v3101_v11  ;;  %v4197_v22 = vld [vmem:[%s6559_s0 + $0xa4] sm:$0xf]  ;;  %v3109_v23 = vld [vmem:[%s6559_s0 + $0xb0] sm:$0xf0]  ;;  %v3115_v24 = vld [vmem:[%s6559_s0 + $0xa8] sm:$0xf]  ;;  %v4988_v28 = vor.u32 %v4199_v21, %v3107_v20 }
  0x30   :  { %1083 = vmatpush.bf16.msrb.mxu0 %v3288_v63  ;;  %v4200_v25 = vld [vmem:[%s6559_s0 + $0xb4] sm:$0xf0]  ;;  %v4198_v26 = vld [vmem:[%s6559_s0 + $0xac] sm:$0xf]  ;;  %v3117_v27 = vld [vmem:[%s6559_s0 + $0xb8] sm:$0xf0]  ;;  %v4990_v29 = vor.u32 %v4197_v22, %v3109_v23 }
  0x31   :  { %1162 = vmatpush.bf16.msrb.mxu1 %v3352_v3  ;;  %v4992_v30 = vor.u32 %v4200_v25, %v3115_v24  ;;  %v4994_v31 = vor.u32 %v4198_v26, %v3117_v27  ;;  %v4271_v32 = vld [vmem:[%s6558_s1 + $0x134] sm:$0xf]  ;;  %v3405_v33 = vld [vmem:[%s6558_s1 + $0x138] sm:$0xf0]  ;;  %v3123_v55 = vld [vmem:[%s6559_s0 + $0xc0] sm:$0xf] }
  0x32   :  { %1241 = vmatpush.bf16.msrb.mxu2 %v3416_v59  ;;  %v4239_v34 = vld [vmem:[%s6558_s1 + $0x34] sm:$0xf]  ;;  %v3408_v35 = vor.u32 %v4271_v32, %v3405_v33  ;;  %v3277_v40 = vld [vmem:[%s6558_s1 + $0x38] sm:$0xf0]  ;;  %v4203_v56 = vld [vmem:[%s6559_s0 + $0xcc] sm:$0xf0] }
  0x33   :  { %777 = vmatmul.bf16.gmra.mxu0 %v4796_v12  ;;  %1320 = vmatpush.bf16.msrb.mxu3 %v3480_v0  ;;  %v4287_v41 = vld [vmem:[%s6558_s1 + $0x1b4] sm:$0xf]  ;;  %v3469_v42 = vld [vmem:[%s6558_s1 + $0x1b8] sm:$0xf0]  ;;  %v3280_v43 = vor.u32 %v4239_v34, %v3277_v40  ;;  %v4201_v58 = vld [vmem:[%s6559_s0 + $0xc4] sm:$0xf]  ;;  %v5048_v0 = vor.u32 %v4203_v56, %v3123_v55 }
  0x34   :  { %856 = vmatmul.bf16.gmra.mxu1 %v4798_v13  ;;  %v3472_v44 = vor.u32 %v4287_v41, %v3469_v42  ;;  %v4255_v45 = vld [vmem:[%s6558_s1 + $0xb4] sm:$0xf]  ;;  %v3341_v46 = vld [vmem:[%s6558_s1 + $0xb8] sm:$0xf0]  ;;  %v3131_v60 = vld [vmem:[%s6559_s0 + $0xc8] sm:$0xf] }
  0x35   :  { %935 = vmatmul.bf16.gmra.mxu2 %v4800_v14  ;;  %v3344_v47 = vor.u32 %v4255_v45, %v3341_v46  ;;  %1084 = vmatpush.bf16.msrb.mxu0 %v3280_v43  ;;  %v3125_v59 = vld [vmem:[%s6559_s0 + $0xd0] sm:$0xf0]  ;;  %v4204_v61 = vld [vmem:[%s6559_s0 + $0xd4] sm:$0xf0]  ;;  %v4202_v62 = vld [vmem:[%s6559_s0 + $0xcc] sm:$0xf] }
  0x36   :  { %1014 = vmatmul.bf16.gmra.mxu3 %v4802_v15  ;;  %1242 = vmatpush.bf16.msrb.mxu2 %v3408_v35  ;;  %v3133_v63 = vld [vmem:[%s6559_s0 + $0xd8] sm:$0xf0]  ;;  %v5050_v1 = vor.u32 %v4201_v58, %v3125_v59  ;;  %v5052_v2 = vor.u32 %v4204_v61, %v3131_v60  ;;  %v3139_v4 = vld [vmem:[%s6559_s0 + $0xe0] sm:$0xf]  ;;  %v4207_v5 = vld [vmem:[%s6559_s0 + $0xec] sm:$0xf0] }
  0x37   :  { %1321 = vmatpush.bf16.msrb.mxu3 %v3472_v44  ;;  %1163 = vmatpush.bf16.msrb.mxu1 %v3344_v47  ;;  %v5054_v3 = vor.u32 %v4202_v62, %v3133_v63  ;;  %v4205_v6 = vld [vmem:[%s6559_s0 + $0xe4] sm:$0xf]  ;;  %v3141_v7 = vld [vmem:[%s6559_s0 + $0xf0] sm:$0xf0]  ;;  %v3147_v8 = vld [vmem:[%s6559_s0 + $0xe8] sm:$0xf]  ;;  %v5084_v20 = vor.u32 %v4207_v5, %v3139_v4 }
  0x38   :  { %v4208_v9 = vld [vmem:[%s6559_s0 + $0xf4] sm:$0xf0]  ;;  %v4206_v10 = vld [vmem:[%s6559_s0 + $0xec] sm:$0xf]  ;;  %v3149_v11 = vld [vmem:[%s6559_s0 + $0xf8] sm:$0xf0]  ;;  %v5086_v21 = vor.u32 %v4205_v6, %v3141_v7 }
  0x39   :  { %v5088_v22 = vor.u32 %v4208_v9, %v3147_v8  ;;  %v5090_v23 = vor.u32 %v4206_v10, %v3149_v11  ;;  %v4269_v24 = vld [vmem:[%s6558_s1 + $0x124] sm:$0xf]  ;;  %v3397_v25 = vld [vmem:[%s6558_s1 + $0x128] sm:$0xf0]  ;;  %v5123_v43 = vld [vmem:[%s6560_s2] sm:$0x3] }
  0x3a   :  { %v4237_v26 = vld [vmem:[%s6558_s1 + $0x24] sm:$0xf]  ;;  %v3400_v27 = vor.u32 %v4269_v24, %v3397_v25  ;;  %v3269_v32 = vld [vmem:[%s6558_s1 + $0x28] sm:$0xf0]  ;;  %6592 = vst [vmem:[#allocation3_spill] sm:$0xff] %v5123_v43  ;;  %v5126_v45 = vperm.slane %v5123_v43, 0 }
  0x3b   :  { %6591 = vst [vmem:[#allocation2_spill] sm:$0xff] %v5090_v23  ;;  %v4285_v33 = vld [vmem:[%s6558_s1 + $0x1a4] sm:$0xf]  ;;  %v3461_v34 = vld [vmem:[%s6558_s1 + $0x1a8] sm:$0xf0]  ;;  %v3272_v35 = vor.u32 %v4237_v26, %v3269_v32 }
  0x3c   :  { %v3464_v40 = vor.u32 %v4285_v33, %v3461_v34  ;;  %v4253_v41 = vld [vmem:[%s6558_s1 + $0xa4] sm:$0xf]  ;;  %1243 = vmatpush.bf16.msrb.mxu2 %v3400_v27  ;;  %v3333_v42 = vld [vmem:[%s6558_s1 + $0xa8] sm:$0xf0]  ;;  %v3155_v46 = vld [vmem:[%s6559_s0 + $0x100] sm:$0xf] }
  0x3d   :  { %1085 = vmatpush.bf16.msrb.mxu0 %v3272_v35  ;;  %v3336_v44 = vor.u32 %v4253_v41, %v3333_v42  ;;  %v4211_v47 = vld [vmem:[%s6559_s0 + $0x10c] sm:$0xf0]  ;;  %v4209_v55 = vld [vmem:[%s6559_s0 + $0x104] sm:$0xf]  ;;  %v3157_v56 = vld [vmem:[%s6559_s0 + $0x110] sm:$0xf0] }
  0x3e   :  { %1322 = vmatpush.bf16.msrb.mxu3 %v3464_v40  ;;  %v3163_v58 = vld [vmem:[%s6559_s0 + $0x108] sm:$0xf]  ;;  %v4212_v59 = vld [vmem:[%s6559_s0 + $0x114] sm:$0xf0]  ;;  %v4210_v60 = vld [vmem:[%s6559_s0 + $0x10c] sm:$0xf]  ;;  %v5152_v62 = vor.u32 %v4211_v47, %v3155_v46  ;;  %v5154_v4 = vor.u32 %v4209_v55, %v3157_v56 }
  0x3f   :  { %1164 = vmatpush.bf16.msrb.mxu1 %v3336_v44  ;;  %v3165_v61 = vld [vmem:[%s6559_s0 + $0x118] sm:$0xf0]  ;;  %v5156_v5 = vor.u32 %v4212_v59, %v3163_v58  ;;  %v3171_v33 = vld [vmem:[%s6559_s0 + $0x120] sm:$0xf]  ;;  %v4215_v34 = vld [vmem:[%s6559_s0 + $0x12c] sm:$0xf0] }
  0x40   :  { %6593 = vst [vmem:[#allocation4_spill] sm:$0xff] %v5152_v62  ;;  %v5159_v8 = vor.u32 %v4210_v60, %v3165_v61  ;;  %v4213_v40 = vld [vmem:[%s6559_s0 + $0x124] sm:$0xf]  ;;  %v3173_v41 = vld [vmem:[%s6559_s0 + $0x130] sm:$0xf0] }
  0x41   :  { %6594 = vst [vmem:[#allocation5_spill] sm:$0xff] %v5154_v4  ;;  %v3179_v42 = vld [vmem:[%s6559_s0 + $0x128] sm:$0xf]  ;;  %v4216_v44 = vld [vmem:[%s6559_s0 + $0x134] sm:$0xf0] }
  0x42   :  { %6595 = vst [vmem:[#allocation6_spill] sm:$0xff] %v5156_v5  ;;  %v4267_v46 = vld [vmem:[%s6558_s1 + $0x114] sm:$0xf]  ;;  %v3389_v47 = vld [vmem:[%s6558_s1 + $0x118] sm:$0xf0] }
  0x43   :  { %782 = vmatmul.bf16.gmra.mxu0 %v4856_v36  ;;  %6596 = vst [vmem:[#allocation7_spill] sm:$0xff] %v5159_v8  ;;  %v3392_v55 = vor.u32 %v4267_v46, %v3389_v47  ;;  %v4235_v56 = vld [vmem:[%s6558_s1 + $0x14] sm:$0xf]  ;;  %v3261_v58 = vld [vmem:[%s6558_s1 + $0x18] sm:$0xf0] }
  0x44   :  { %861 = vmatmul.bf16.gmra.mxu1 %v4858_v37  ;;  %v4283_v59 = vld [vmem:[%s6558_s1 + $0x194] sm:$0xf]  ;;  %v4214_v60 = vld [vmem:[%s6559_s0 + $0x12c] sm:$0xf]  ;;  %v3181_v61 = vld [vmem:[%s6559_s0 + $0x138] sm:$0xf0] }
  0x45   :  { %940 = vmatmul.bf16.gmra.mxu2 %v4860_v38 }
  0x46   :  { %1019 = vmatmul.bf16.gmra.mxu3 %v4862_v39  ;;  %1244 = vmatpush.bf16.msrb.mxu2 %v3392_v55 }
  0x53   :  { %787 = vmatmul.bf16.gmra.mxu0 %v4892_v49 }
  0x54   :  { %866 = vmatmul.bf16.gmra.mxu1 %v4894_v50 }
  0x55   :  { %945 = vmatmul.bf16.gmra.mxu2 %v4896_v51 }
  0x56   :  { %1024 = vmatmul.bf16.gmra.mxu3 %v4898_v52 }
  0x63   :  { %792 = vmatmul.bf16.gmra.mxu0 %v4952_v16 }
  0x64   :  { %871 = vmatmul.bf16.gmra.mxu1 %v4954_v17 }
  0x65   :  { %950 = vmatmul.bf16.gmra.mxu2 %v4956_v18 }
  0x66   :  { %1029 = vmatmul.bf16.gmra.mxu3 %v4958_v19 }
  0x73   :  { %797 = vmatmul.bf16.gmra.mxu0 %v4988_v28 }
  0x74   :  { %876 = vmatmul.bf16.gmra.mxu1 %v4990_v29 }
  0x75   :  { %955 = vmatmul.bf16.gmra.mxu2 %v4992_v30 }
  0x76   :  { %1034 = vmatmul.bf16.gmra.mxu3 %v4994_v31 }
  0x83   :  { %802 = vmatmul.bf16.gmra.mxu0 %v5048_v0 }
  0x84   :  { %881 = vmatmul.bf16.gmra.mxu1 %v5050_v1 }
  0x85   :  { %960 = vmatmul.bf16.gmra.mxu2 %v5052_v2 }
  0x86   :  { %1039 = vmatmul.bf16.gmra.mxu3 %v5054_v3 }
  0x93   :  { %807 = vmatmul.bf16.gmra.mxu0 %v5084_v20 }
  0x94   :  { %886 = vmatmul.bf16.gmra.mxu1 %v5086_v21 }
  0x95   :  { %965 = vmatmul.bf16.gmra.mxu2 %v5088_v22 }
  0x96   :  { %1044 = vmatmul.bf16.gmra.mxu3 %v5090_v23 }
  0xa0   :  { %v773_v63 = vpop.f32.mrf.mxu0 }
  0xa1   :  { %v774_v6 = vadd.f32 %v773_v63, %v5126_v45  ;;  %v852_v7 = vpop.f32.mrf.mxu1  ;;  %v3264_v63 = vor.u32 %v4235_v56, %v3261_v58  ;;  %v5217_v56 = vor.u32 %v4214_v60, %v3181_v61 }
  0xa3   :  { %v853_v9 = vadd.f32 %v852_v7, %v774_v6  ;;  %812 = vmatmul.bf16.gmra.mxu0 %v5152_v62  ;;  %v3453_v6 = vld [vmem:[%s6558_s1 + $0x198] sm:$0xf0]  ;;  %6600 = vst [vmem:[#allocation11_spill] sm:$0xff] %v5217_v56 }
  0xa4   :  { %891 = vmatmul.bf16.gmra.mxu1 %v5154_v4  ;;  %1086 = vmatpush.bf16.msrb.mxu0 %v3264_v63 }
  0xa5   :  { %970 = vmatmul.bf16.gmra.mxu2 %v5156_v5 }
  0xa6   :  { %1049 = vmatmul.bf16.gmra.mxu3 %v5159_v8 }
  0xa8   :  { %v931_v10 = vpop.f32.mrf.mxu2  ;;  %v775_v25 = vpop.f32.mrf.mxu0 }
  0xa9   :  { %v932_v11 = vadd.f32 %v931_v10, %v853_v9  ;;  %v1010_v24 = vpop.f32.mrf.mxu3  ;;  %v776_v26 = vadd.f32 %v775_v25, %v5126_v45  ;;  %v854_v27 = vpop.f32.mrf.mxu1  ;;  %v5210_v9 = vor.u32 %v4215_v34, %v3171_v33  ;;  %v3456_v10 = vor.u32 %v4283_v59, %v3453_v6  ;;  %v4251_v34 = vld [vmem:[%s6558_s1 + $0x94] sm:$0xf]  ;;  %v3187_v6 = vld [vmem:[%s6559_s0 + $0x140] sm:$0xf] }
  0xab   :  { %v5166_v32 = vadd.f32 %v1010_v24, %v932_v11  ;;  %v855_v35 = vadd.f32 %v854_v27, %v776_v26  ;;  %6597 = vst [vmem:[#allocation8_spill] sm:$0xff] %v5210_v9  ;;  %v5212_v26 = vor.u32 %v4213_v40, %v3173_v41  ;;  %v5214_v27 = vor.u32 %v4216_v44, %v3179_v42 }
  0xac   :  { %1323 = vmatpush.bf16.msrb.mxu3 %v3456_v10  ;;  %v4217_v10 = vld [vmem:[%s6559_s0 + $0x144] sm:$0xf] }
  0xad   :  { %6598 = vst [vmem:[#allocation9_spill] sm:$0xff] %v5212_v26 }
  0xae   :  { %6599 = vst [vmem:[#allocation10_spill] sm:$0xff] %v5214_v27 }
  0xb0   :  { %v933_v7 = vpop.f32.mrf.mxu2  ;;  %v778_v25 = vpop.f32.mrf.mxu0 }
  0xb1   :  { %v934_v11 = vadd.f32 %v933_v7, %v855_v35  ;;  %v1012_v24 = vpop.f32.mrf.mxu3  ;;  %v779_v46 = vadd.f32 %v778_v25, %v5126_v45  ;;  %v857_v47 = vpop.f32.mrf.mxu1  ;;  %v3325_v35 = vld [vmem:[%s6558_s1 + $0x98] sm:$0xf0]  ;;  %v4219_v7 = vld [vmem:[%s6559_s0 + $0x14c] sm:$0xf0]  ;;  %v4220_v25 = vld [vmem:[%s6559_s0 + $0x154] sm:$0xf0] }
  0xb2   :  { %v3328_v40 = vor.u32 %v4251_v34, %v3325_v35  ;;  %v5258_v34 = vor.u32 %v4219_v7, %v3187_v6 }
  0xb3   :  { %v5219_v58 = vadd.f32 %v1012_v24, %v934_v11  ;;  %v858_v33 = vadd.f32 %v857_v47, %v779_v46  ;;  %817 = vmatmul.bf16.gmra.mxu0 %v5210_v9  ;;  %v3189_v11 = vld [vmem:[%s6559_s0 + $0x150] sm:$0xf0]  ;;  %v3195_v24 = vld [vmem:[%s6559_s0 + $0x148] sm:$0xf]  ;;  %v4218_v46 = vld [vmem:[%s6559_s0 + $0x14c] sm:$0xf] }
  0xb4   :  { %896 = vmatmul.bf16.gmra.mxu1 %v5212_v26  ;;  %v3197_v47 = vld [vmem:[%s6559_s0 + $0x158] sm:$0xf0]  ;;  %6601 = vst [vmem:[#allocation12_spill] sm:$0xff] %v5258_v34 }
  0xb5   :  { %975 = vmatmul.bf16.gmra.mxu2 %v5214_v27  ;;  %1165 = vmatpush.bf16.msrb.mxu1 %v3328_v40 }
  0xb6   :  { %1054 = vmatmul.bf16.gmra.mxu3 %v5217_v56 }
  0xb8   :  { %v936_v41 = vpop.f32.mrf.mxu2  ;;  %v780_v55 = vpop.f32.mrf.mxu0 }
  0xb9   :  { %v937_v42 = vadd.f32 %v936_v41, %v858_v33  ;;  %v1015_v44 = vpop.f32.mrf.mxu3  ;;  %v781_v59 = vadd.f32 %v780_v55, %v5126_v45  ;;  %v859_v60 = vpop.f32.mrf.mxu1 }
  0xbb   :  { %v5232_v61 = vadd.f32 %v1015_v44, %v937_v42  ;;  %v860_v63 = vadd.f32 %v859_v60, %v781_v59  ;;  %v5260_v42 = vor.u32 %v4217_v10, %v3189_v11  ;;  %v5262_v44 = vor.u32 %v4220_v25, %v3195_v24 }
  0xbc   :  { %v5265_v60 = vor.u32 %v4218_v46, %v3197_v47  ;;  %v3203_v46 = vld [vmem:[%s6559_s0 + $0x160] sm:$0xf]  ;;  %v4223_v47 = vld [vmem:[%s6559_s0 + $0x16c] sm:$0xf0] }
  0xbd   :  { %6602 = vst [vmem:[#allocation13_spill] sm:$0xff] %v5260_v42 }
  0xbe   :  { %6603 = vst [vmem:[#allocation14_spill] sm:$0xff] %v5262_v44 }
  0xbf   :  { %6604 = vst [vmem:[#allocation15_spill] sm:$0xff] %v5265_v60 }
  0xc0   :  { %v938_v33 = vpop.f32.mrf.mxu2  ;;  %v783_v41 = vpop.f32.mrf.mxu0 }
  0xc1   :  { %v939_v35 = vadd.f32 %v938_v33, %v860_v63  ;;  %v1017_v40 = vpop.f32.mrf.mxu3  ;;  %v784_v55 = vadd.f32 %v783_v41, %v5126_v45  ;;  %v862_v59 = vpop.f32.mrf.mxu1  ;;  %v4224_v41 = vld [vmem:[%s6559_s0 + $0x174] sm:$0xf0] }
  0xc3   :  { %v5267_v56 = vadd.f32 %v1017_v40, %v939_v35  ;;  %v863_v27 = vadd.f32 %v862_v59, %v784_v55  ;;  %822 = vmatmul.bf16.gmra.mxu0 %v5258_v34  ;;  %v3205_v35 = vld [vmem:[%s6559_s0 + $0x170] sm:$0xf0]  ;;  %v3211_v40 = vld [vmem:[%s6559_s0 + $0x168] sm:$0xf]  ;;  %v4222_v55 = vld [vmem:[%s6559_s0 + $0x16c] sm:$0xf]  ;;  %v5324_v34 = vor.u32 %v4223_v47, %v3203_v46 }
  0xc4   :  { %901 = vmatmul.bf16.gmra.mxu1 %v5260_v42  ;;  %v3213_v59 = vld [vmem:[%s6559_s0 + $0x178] sm:$0xf0]  ;;  %v5328_v4 = vor.u32 %v4224_v41, %v3211_v40  ;;  %v3221_v40 = vld [vmem:[%s6559_s0 + $0x190] sm:$0xf0]  ;;  %v3227_v41 = vld [vmem:[%s6559_s0 + $0x188] sm:$0xf] }
  0xc5   :  { %980 = vmatmul.bf16.gmra.mxu2 %v5262_v44  ;;  %v3445_v44 = vld [vmem:[%s6558_s1 + $0x188] sm:$0xf0]  ;;  %v5331_v23 = vor.u32 %v4222_v55, %v3213_v59  ;;  %v4228_v55 = vld [vmem:[%s6559_s0 + $0x194] sm:$0xf0] }
  0xc6   :  { %1059 = vmatmul.bf16.gmra.mxu3 %v5265_v60  ;;  %6605 = vst [vmem:[#allocation16_spill] sm:$0xff] %v5328_v4  ;;  %v4226_v59 = vld [vmem:[%s6559_s0 + $0x18c] sm:$0xf] }
  0xc7   :  { %6606 = vst [vmem:[#allocation17_spill] sm:$0xff] %v5331_v23 }
  0xc8   :  { %v941_v63 = vpop.f32.mrf.mxu2  ;;  %v785_v10 = vpop.f32.mrf.mxu0 }
  0xc9   :  { %v942_v6 = vadd.f32 %v941_v63, %v863_v27  ;;  %v1020_v7 = vpop.f32.mrf.mxu3  ;;  %v786_v11 = vadd.f32 %v785_v10, %v5126_v45  ;;  %v864_v24 = vpop.f32.mrf.mxu1  ;;  %v4221_v27 = vld [vmem:[%s6559_s0 + $0x164] sm:$0xf] }
  0xca   :  { %v4265_v63 = vld [vmem:[%s6558_s1 + $0x104] sm:$0xf]  ;;  %v5326_v5 = vor.u32 %v4221_v27, %v3205_v35 }
  0xcb   :  { %v5274_v25 = vadd.f32 %v1020_v7, %v942_v6  ;;  %v865_v33 = vadd.f32 %v864_v24, %v786_v11  ;;  %v3381_v6 = vld [vmem:[%s6558_s1 + $0x108] sm:$0xf0]  ;;  %v4233_v10 = vld [vmem:[%s6558_s1 + $0x4] sm:$0xf] }
  0xcc   :  { %v3384_v7 = vor.u32 %v4265_v63, %v3381_v6  ;;  %v3253_v11 = vld [vmem:[%s6558_s1 + $0x8] sm:$0xf0]  ;;  %v4281_v24 = vld [vmem:[%s6558_s1 + $0x184] sm:$0xf] }
  0xcd   :  { %v3256_v60 = vor.u32 %v4233_v10, %v3253_v11  ;;  %v4249_v63 = vld [vmem:[%s6558_s1 + $0x84] sm:$0xf]  ;;  %v3317_v6 = vld [vmem:[%s6558_s1 + $0x88] sm:$0xf0]  ;;  %v3448_v26 = vor.u32 %v4281_v24, %v3445_v44 }
  0xce   :  { %1245 = vmatpush.bf16.msrb.mxu2 %v3384_v7  ;;  %v3320_v9 = vor.u32 %v4249_v63, %v3317_v6  ;;  %v3229_v7 = vld [vmem:[%s6559_s0 + $0x198] sm:$0xf0] }
  0xcf   :  { %1087 = vmatpush.bf16.msrb.mxu0 %v3256_v60  ;;  %1324 = vmatpush.bf16.msrb.mxu3 %v3448_v26 }
  0xd0   :  { %v943_v42 = vpop.f32.mrf.mxu2  ;;  %v788_v11 = vpop.f32.mrf.mxu0  ;;  %1166 = vmatpush.bf16.msrb.mxu1 %v3320_v9  ;;  %v4225_v9 = vld [vmem:[%s6559_s0 + $0x184] sm:$0xf] }
  0xd1   :  { %v944_v8 = vadd.f32 %v943_v42, %v865_v33  ;;  %v1022_v10 = vpop.f32.mrf.mxu3  ;;  %v789_v62 = vadd.f32 %v788_v11, %v5126_v45  ;;  %v867_v43 = vpop.f32.mrf.mxu1 }
  0xd3   :  { %v5333_v46 = vadd.f32 %v1022_v10, %v944_v8  ;;  %v868_v47 = vadd.f32 %v867_v43, %v789_v62  ;;  %827 = vmatmul.bf16.gmra.mxu0 %v5324_v34  ;;  %v3219_v43 = vld [vmem:[%s6559_s0 + $0x180] sm:$0xf]  ;;  %v4227_v62 = vld [vmem:[%s6559_s0 + $0x18c] sm:$0xf0] }
  0xd4   :  { %906 = vmatmul.bf16.gmra.mxu1 %v5326_v5  ;;  %v5366_v63 = vor.u32 %v4227_v62, %v3219_v43 }
  0xd5   :  { %985 = vmatmul.bf16.gmra.mxu2 %v5328_v4 }
  0xd6   :  { %1064 = vmatmul.bf16.gmra.mxu3 %v5331_v23  ;;  %6607 = vst [vmem:[#allocation18_spill] sm:$0xff] %v5366_v63 }
  0xd8   :  { %v946_v42 = vpop.f32.mrf.mxu2  ;;  %v790_v33 = vpop.f32.mrf.mxu0 }
  0xd9   :  { %v947_v44 = vadd.f32 %v946_v42, %v868_v47  ;;  %v1025_v60 = vpop.f32.mrf.mxu3  ;;  %v791_v27 = vadd.f32 %v790_v33, %v5126_v45  ;;  %v869_v35 = vpop.f32.mrf.mxu1  ;;  %v5368_v47 = vor.u32 %v4225_v9, %v3221_v40  ;;  %v5370_v42 = vor.u32 %v4228_v55, %v3227_v41 }
  0xda   :  { %v5373_v33 = vor.u32 %v4226_v59, %v3229_v7  ;;  %v3235_v7 = vld [vmem:[%s6559_s0 + $0x1a0] sm:$0xf] }
  0xdb   :  { %v5340_v26 = vadd.f32 %v1025_v60, %v947_v44  ;;  %v870_v8 = vadd.f32 %v869_v35, %v791_v27  ;;  %6608 = vst [vmem:[#allocation19_spill] sm:$0xff] %v5368_v47 }
  0xdc   :  { %6609 = vst [vmem:[#allocation20_spill] sm:$0xff] %v5370_v42 }
  0xdd   :  { %6610 = vst [vmem:[#allocation21_spill] sm:$0xff] %v5373_v33 }
  0xe0   :  { %v948_v24 = vpop.f32.mrf.mxu2  ;;  %v793_v11 = vpop.f32.mrf.mxu0 }
  0xe1   :  { %v949_v6 = vadd.f32 %v948_v24, %v870_v8  ;;  %v1027_v10 = vpop.f32.mrf.mxu3  ;;  %v794_v44 = vadd.f32 %v793_v11, %v5126_v45  ;;  %v872_v60 = vpop.f32.mrf.mxu1  ;;  %v4231_v24 = vld [vmem:[%s6559_s0 + $0x1ac] sm:$0xf0]  ;;  %v3243_v11 = vld [vmem:[%s6559_s0 + $0x1a8] sm:$0xf] }
  0xe3   :  { %v5375_v27 = vadd.f32 %v1027_v10, %v949_v6  ;;  %v873_v35 = vadd.f32 %v872_v60, %v794_v44  ;;  %832 = vmatmul.bf16.gmra.mxu0 %v5366_v63  ;;  %v4229_v6 = vld [vmem:[%s6559_s0 + $0x1a4] sm:$0xf]  ;;  %v3237_v10 = vld [vmem:[%s6559_s0 + $0x1b0] sm:$0xf0]  ;;  %v4232_v44 = vld [vmem:[%s6559_s0 + $0x1b4] sm:$0xf0] }
  0xe4   :  { %911 = vmatmul.bf16.gmra.mxu1 %v5368_v47  ;;  %v4230_v60 = vld [vmem:[%s6559_s0 + $0x1ac] sm:$0xf] }
  0xe5   :  { %990 = vmatmul.bf16.gmra.mxu2 %v5370_v42 }
  0xe6   :  { %1069 = vmatmul.bf16.gmra.mxu3 %v5373_v33  ;;  %v5412_v33 = vor.u32 %v4232_v44, %v3243_v11 }
  0xe8   :  { %v951_v8 = vpop.f32.mrf.mxu2  ;;  %v795_v9 = vpop.f32.mrf.mxu0 }
  0xe9   :  { %v952_v43 = vadd.f32 %v951_v8, %v873_v35  ;;  %v1030_v62 = vpop.f32.mrf.mxu3  ;;  %v796_v40 = vadd.f32 %v795_v9, %v5126_v45  ;;  %v874_v41 = vpop.f32.mrf.mxu1  ;;  %v3245_v35 = vld [vmem:[%s6559_s0 + $0x1b8] sm:$0xf0] }
  0xea   :  { %v5415_v63 = vor.u32 %v4230_v60, %v3245_v35 }
  0xeb   :  { %v5382_v55 = vadd.f32 %v1030_v62, %v952_v43  ;;  %v875_v59 = vadd.f32 %v874_v41, %v796_v40  ;;  %v5408_v43 = vor.u32 %v4231_v24, %v3235_v7  ;;  %v5410_v41 = vor.u32 %v4229_v6, %v3237_v10 }
  0xec   :  { %6611 = vst [vmem:[#allocation22_spill] sm:$0xff] %v5415_v63 }
  0xf0   :  { %v953_v8 = vpop.f32.mrf.mxu2  ;;  %v798_v40 = vpop.f32.mrf.mxu0 }
  0xf1   :  { %v954_v62 = vadd.f32 %v953_v8, %v875_v59  ;;  %v1032_v9 = vpop.f32.mrf.mxu3  ;;  %v799_v42 = vadd.f32 %v798_v40, %v5126_v45  ;;  %v877_v47 = vpop.f32.mrf.mxu1 }
  0xf3   :  { %v5417_v23 = vadd.f32 %v1032_v9, %v954_v62  ;;  %v878_v4 = vadd.f32 %v877_v47, %v799_v42  ;;  %837 = vmatmul.bf16.gmra.mxu0 %v5408_v43 }
  0xf4   :  { %916 = vmatmul.bf16.gmra.mxu1 %v5410_v41 }
  0xf5   :  { %995 = vmatmul.bf16.gmra.mxu2 %v5412_v33 }
  0xf6   :  { %1074 = vmatmul.bf16.gmra.mxu3 %v5415_v63 }
  0xf8   :  { %v956_v59 = vpop.f32.mrf.mxu2  ;;  %v800_v6 = vpop.f32.mrf.mxu0 }
  0xf9   :  { %v957_v7 = vadd.f32 %v956_v59, %v878_v4  ;;  %v1035_v24 = vpop.f32.mrf.mxu3  ;;  %v801_v10 = vadd.f32 %v800_v6, %v5126_v45  ;;  %v879_v11 = vpop.f32.mrf.mxu1 }
  0xfb   :  { %v5424_v44 = vadd.f32 %v1035_v24, %v957_v7  ;;  %v880_v60 = vadd.f32 %v879_v11, %v801_v10 }
 0x100   :  { %v958_v35 = vpop.f32.mrf.mxu2  ;;  %v803_v8 = vpop.f32.mrf.mxu0 }
 0x101   :  { %v959_v47 = vadd.f32 %v958_v35, %v880_v60  ;;  %v1037_v42 = vpop.f32.mrf.mxu3  ;;  %v804_v62 = vadd.f32 %v803_v8, %v5126_v45  ;;  %v882_v9 = vpop.f32.mrf.mxu1 }
 0x103   :  { %v5427_v40 = vadd.f32 %v1037_v42, %v959_v47  ;;  %v883_v63 = vadd.f32 %v882_v9, %v804_v62  ;;  %1088 = vmatmul.bf16.vlgmr.msrb.gmra.mxu0 %v4733_v48  ;;  %v4328_v62 = vld [vmem:[%s6561_s3 + $0xf4] sm:$0xf0]  ;;  %v4327_v9 = vld [vmem:[%s6561_s3 + $0xf4] sm:$0xf] }
 0x104   :  { %1167 = vmatmul.bf16.vlgmr.msrb.gmra.mxu1 %v4744_v53 }
 0x105   :  { %1246 = vmatmul.bf16.vlgmr.msrb.gmra.mxu2 %v4746_v54 }
 0x106   :  { %1325 = vmatmul.bf16.vlgmr.msrb.gmra.mxu3 %v4754_v57 }
 0x108   :  { %v961_v4 = vpop.f32.mrf.mxu2  ;;  %v805_v24 = vpop.f32.mrf.mxu0 }
 0x109   :  { %v962_v59 = vadd.f32 %v961_v4, %v883_v63  ;;  %v1040_v7 = vpop.f32.mrf.mxu3  ;;  %v806_v6 = vadd.f32 %v805_v24, %v5126_v45  ;;  %v884_v10 = vpop.f32.mrf.mxu1  ;;  %v3579_v63 = vld [vmem:[%s6561_s3 + $0xf0] sm:$0xf] }
 0x10b   :  { %v5434_v11 = vadd.f32 %v1040_v7, %v962_v59  ;;  %v885_v60 = vadd.f32 %v884_v10, %v806_v6 }
 0x110   :  { %v963_v35 = vpop.f32.mrf.mxu2  ;;  %v808_v48 = vpop.f32.mrf.mxu0 }
 0x111   :  { %v964_v47 = vadd.f32 %v963_v35, %v885_v60  ;;  %v1042_v42 = vpop.f32.mrf.mxu3  ;;  %v809_v53 = vadd.f32 %v808_v48, %v5126_v45  ;;  %v887_v8 = vpop.f32.mrf.mxu1  ;;  %v1396_v35 = vmax.f32 %v5166_v32, 0.0 }
 0x113   :  { %v5437_v54 = vadd.f32 %v1042_v42, %v964_v47  ;;  %v888_v57 = vadd.f32 %v887_v8, %v809_v53  ;;  %1093 = vmatmul.bf16.gmra.mxu0 %v4796_v12  ;;  %v3580_v12 = vor.u32 %v4328_v62, %v3579_v63 }
 0x114   :  { %1172 = vmatmul.bf16.gmra.mxu1 %v4798_v13  ;;  %v3581_v13 = vld [vmem:[%s6561_s3 + $0xf8] sm:$0xf0] }
 0x115   :  { %1251 = vmatmul.bf16.gmra.mxu2 %v4800_v14  ;;  %v3584_v7 = vor.u32 %v4327_v9, %v3581_v13  ;;  %1617 = vmatpush.bf16.msra.mxu0 %v3580_v12  ;;  %v1398_v12 = vmax.f32 %v5219_v58, 0.0  ;;  %v1400_v58 = vmax.f32 %v5232_v61, 0.0 }
 0x116   :  { %1330 = vmatmul.bf16.gmra.mxu3 %v4802_v15 }
 0x117   :  { %1651 = vmatpush.bf16.msra.mxu1 %v3584_v7 }
 0x118   :  { %v966_v4 = vpop.f32.mrf.mxu2  ;;  %v810_v59 = vpop.f32.mrf.mxu0 }
 0x119   :  { %v967_v14 = vadd.f32 %v966_v4, %v888_v57  ;;  %v1045_v15 = vpop.f32.mrf.mxu3  ;;  %v811_v24 = vadd.f32 %v810_v59, %v5126_v45  ;;  %v889_v6 = vpop.f32.mrf.mxu1 }
 0x11b   :  { %v1046_v10 = vadd.f32 %v1045_v15, %v967_v14  ;;  %v890_v60 = vadd.f32 %v889_v6, %v811_v24 }
 0x11d   :  { %v1424_v47 = vmax.f32 %v1046_v10, 0.0 }
 0x11f   :  { %v5457_v42 = vmax.f32 %v1396_v35, %v1424_v47 }
 0x120   :  { %v968_v48 = vpop.f32.mrf.mxu2  ;;  %v813_v63 = vpop.f32.mrf.mxu0 }
 0x121   :  { %v969_v53 = vadd.f32 %v968_v48, %v890_v60  ;;  %v1047_v8 = vpop.f32.mrf.mxu3  ;;  %v814_v57 = vadd.f32 %v813_v63, %v5126_v45  ;;  %v892_v62 = vpop.f32.mrf.mxu1 }
 0x123   :  { %v1048_v9 = vadd.f32 %v1047_v8, %v969_v53  ;;  %v893_v4 = vadd.f32 %v892_v62, %v814_v57  ;;  %1098 = vmatmul.bf16.gmra.mxu0 %v4856_v36  ;;  %v1402_v57 = vmax.f32 %v5267_v56, 0.0 }
 0x124   :  { %1177 = vmatmul.bf16.gmra.mxu1 %v4858_v37 }
 0x125   :  { %v1426_v13 = vmax.f32 %v1048_v9, 0.0  ;;  %1256 = vmatmul.bf16.gmra.mxu2 %v4860_v38  ;;  %v3571_v9 = vld [vmem:[%s6561_s3 + $0xe0] sm:$0xf] }
 0x126   :  { %1335 = vmatmul.bf16.gmra.mxu3 %v4862_v39 }
 0x127   :  { %v5465_v32 = vmax.f32 %v1398_v12, %v1426_v13 }
 0x128   :  { %v971_v14 = vpop.f32.mrf.mxu2  ;;  %v815_v7 = vpop.f32.mrf.mxu0 }
 0x129   :  { %v972_v15 = vadd.f32 %v971_v14, %v893_v4  ;;  %v1050_v59 = vpop.f32.mrf.mxu3  ;;  %v816_v24 = vadd.f32 %v815_v7, %v5126_v45  ;;  %v894_v6 = vpop.f32.mrf.mxu1  ;;  %v4326_v4 = vld [vmem:[%s6561_s3 + $0xe4] sm:$0xf0] }
 0x12b   :  { %v1051_v10 = vadd.f32 %v1050_v59, %v972_v15  ;;  %v895_v36 = vadd.f32 %v894_v6, %v816_v24  ;;  %v1404_v6 = vmax.f32 %v5274_v25, 0.0 }
 0x12d   :  { %v1428_v60 = vmax.f32 %v1051_v10, 0.0 }
 0x12f   :  { %v5469_v35 = vmax.f32 %v1400_v58, %v1428_v60 }
 0x130   :  { %v973_v37 = vpop.f32.mrf.mxu2  ;;  %v818_v39 = vpop.f32.mrf.mxu0 }
 0x131   :  { %v974_v38 = vadd.f32 %v973_v37, %v895_v36  ;;  %v1052_v47 = vpop.f32.mrf.mxu3  ;;  %v819_v48 = vadd.f32 %v818_v39, %v5126_v45  ;;  %v897_v53 = vpop.f32.mrf.mxu1 }
 0x133   :  { %v1053_v8 = vadd.f32 %v1052_v47, %v974_v38  ;;  %v898_v63 = vadd.f32 %v897_v53, %v819_v48  ;;  %1103 = vmatmul.bf16.gmra.mxu0 %v4892_v49  ;;  %v4325_v49 = vld [vmem:[%s6561_s3 + $0xe4] sm:$0xf] }
 0x134   :  { %1182 = vmatmul.bf16.gmra.mxu1 %v4894_v50  ;;  %v3572_v50 = vor.u32 %v4326_v4, %v3571_v9 }
 0x135   :  { %v1430_v62 = vmax.f32 %v1053_v8, 0.0  ;;  %1261 = vmatmul.bf16.gmra.mxu2 %v4896_v51  ;;  %v3573_v51 = vld [vmem:[%s6561_s3 + $0xe8] sm:$0xf0]  ;;  %v1406_v8 = vmax.f32 %v5333_v46, 0.0  ;;  %v1408_v46 = vmax.f32 %v5340_v26, 0.0 }
 0x136   :  { %1340 = vmatmul.bf16.gmra.mxu3 %v4898_v52  ;;  %v3576_v14 = vor.u32 %v4325_v49, %v3573_v51  ;;  %1618 = vmatpush.bf16.msra.mxu0 %v3572_v50  ;;  %v3565_v26 = vld [vmem:[%s6561_s3 + $0xd8] sm:$0xf0] }
 0x137   :  { %v5477_v61 = vmax.f32 %v1402_v57, %v1430_v62 }
 0x138   :  { %v976_v56 = vpop.f32.mrf.mxu2  ;;  %v820_v13 = vpop.f32.mrf.mxu0  ;;  %1652 = vmatpush.bf16.msra.mxu1 %v3576_v14 }
 0x139   :  { %v977_v52 = vadd.f32 %v976_v56, %v898_v63  ;;  %v1055_v12 = vpop.f32.mrf.mxu3  ;;  %v821_v15 = vadd.f32 %v820_v13, %v5126_v45  ;;  %v899_v59 = vpop.f32.mrf.mxu1 }
 0x13b   :  { %v1056_v7 = vadd.f32 %v1055_v12, %v977_v52  ;;  %v900_v24 = vadd.f32 %v899_v59, %v821_v15 }
 0x13d   :  { %v1432_v10 = vmax.f32 %v1056_v7, 0.0 }
 0x13f   :  { %v5493_v36 = vmax.f32 %v1404_v6, %v1432_v10 }
 0x140   :  { %v978_v58 = vpop.f32.mrf.mxu2  ;;  %v823_v38 = vpop.f32.mrf.mxu0 }
 0x141   :  { %v979_v60 = vadd.f32 %v978_v58, %v900_v24  ;;  %v1057_v37 = vpop.f32.mrf.mxu3  ;;  %v824_v47 = vadd.f32 %v823_v38, %v5126_v45  ;;  %v902_v39 = vpop.f32.mrf.mxu1 }
 0x143   :  { %v1058_v48 = vadd.f32 %v1057_v37, %v979_v60  ;;  %v903_v53 = vadd.f32 %v902_v39, %v824_v47  ;;  %1108 = vmatmul.bf16.gmra.mxu0 %v4952_v16  ;;  %v1410_v60 = vmax.f32 %v5375_v27, 0.0  ;;  %v1412_v27 = vmax.f32 %v5382_v55, 0.0  ;;  %v3645_v55 = vld [vmem:[%s6561_s3 + $0x78] sm:$0xf0] }
 0x144   :  { %1187 = vmatmul.bf16.gmra.mxu1 %v4954_v17  ;;  %v3563_v17 = vld [vmem:[%s6561_s3 + $0xd0] sm:$0xf] }
 0x145   :  { %v1434_v63 = vmax.f32 %v1058_v48, 0.0  ;;  %1266 = vmatmul.bf16.gmra.mxu2 %v4956_v18  ;;  %v4324_v18 = vld [vmem:[%s6561_s3 + $0xd4] sm:$0xf0] }
 0x146   :  { %1345 = vmatmul.bf16.gmra.mxu3 %v4958_v19  ;;  %v4323_v19 = vld [vmem:[%s6561_s3 + $0xd4] sm:$0xf]  ;;  %v3564_v13 = vor.u32 %v4324_v18, %v3563_v17 }
 0x147   :  { %v5501_v25 = vmax.f32 %v1406_v8, %v1434_v63  ;;  %v3568_v7 = vor.u32 %v4323_v19, %v3565_v26 }
 0x148   :  { %v981_v57 = vpop.f32.mrf.mxu2  ;;  %v825_v4 = vpop.f32.mrf.mxu0  ;;  %1619 = vmatpush.bf16.msra.mxu0 %v3564_v13 }
 0x149   :  { %v982_v62 = vadd.f32 %v981_v57, %v903_v53  ;;  %v1060_v9 = vpop.f32.mrf.mxu3  ;;  %v826_v49 = vadd.f32 %v825_v4, %v5126_v45  ;;  %v904_v56 = vpop.f32.mrf.mxu1  ;;  %1653 = vmatpush.bf16.msra.mxu1 %v3568_v7 }
 0x14b   :  { %v1061_v50 = vadd.f32 %v1060_v9, %v982_v62  ;;  %v905_v16 = vadd.f32 %v904_v56, %v826_v49 }
 0x14d   :  { %v1436_v51 = vmax.f32 %v1061_v50, 0.0 }
 0x14f   :  { %v5505_v52 = vmax.f32 %v1408_v46, %v1436_v51 }
 0x150   :  { %v983_v12 = vpop.f32.mrf.mxu2  ;;  %v828_v59 = vpop.f32.mrf.mxu0 }
 0x151   :  { %v984_v14 = vadd.f32 %v983_v12, %v905_v16  ;;  %v1062_v15 = vpop.f32.mrf.mxu3  ;;  %v829_v24 = vadd.f32 %v828_v59, %v5126_v45  ;;  %v907_v6 = vpop.f32.mrf.mxu1  ;;  %v1414_v12 = vmax.f32 %v5417_v23, 0.0  ;;  %v1416_v23 = vmax.f32 %v5424_v44, 0.0 }
 0x153   :  { %v1063_v10 = vadd.f32 %v1062_v15, %v984_v14  ;;  %v908_v58 = vadd.f32 %v907_v6, %v829_v24  ;;  %1113 = vmatmul.bf16.gmra.mxu0 %v4988_v28 }
 0x154   :  { %1192 = vmatmul.bf16.gmra.mxu1 %v4990_v29  ;;  %v3643_v29 = vld [vmem:[%s6561_s3 + $0x70] sm:$0xf] }
 0x155   :  { %v1438_v37 = vmax.f32 %v1063_v10, 0.0  ;;  %1271 = vmatmul.bf16.gmra.mxu2 %v4992_v30  ;;  %v4312_v30 = vld [vmem:[%s6561_s3 + $0x74] sm:$0xf0] }
 0x156   :  { %1350 = vmatmul.bf16.gmra.mxu3 %v4994_v31  ;;  %v4311_v31 = vld [vmem:[%s6561_s3 + $0x74] sm:$0xf]  ;;  %v3644_v49 = vor.u32 %v4312_v30, %v3643_v29  ;;  %v6612_v30 = vld [vmem:[#allocation2_spill] sm:$0xff] }
 0x157   :  { %v5525_v38 = vmax.f32 %v1410_v60, %v1438_v37  ;;  %v3648_v46 = vor.u32 %v4311_v31, %v3645_v55  ;;  %v4321_v60 = vld [vmem:[%s6561_s3 + $0xc4] sm:$0xf]  ;;  %v3557_v37 = vld [vmem:[%s6561_s3 + $0xc8] sm:$0xf0] }
 0x158   :  { %v986_v47 = vpop.f32.mrf.mxu2  ;;  %v830_v53 = vpop.f32.mrf.mxu0  ;;  %1765 = vmatpush.bf16.msra.mxu2 %v3644_v49  ;;  %v3560_v44 = vor.u32 %v4321_v60, %v3557_v37  ;;  %v6617_v60 = vld [vmem:[#allocation7_spill] sm:$0xff]  ;;  %v3547_v37 = vld [vmem:[%s6561_s3 + $0xb0] sm:$0xf] }
 0x159   :  { %v987_v39 = vadd.f32 %v986_v47, %v908_v58  ;;  %v1065_v48 = vpop.f32.mrf.mxu3  ;;  %v831_v8 = vadd.f32 %v830_v53, %v5126_v45  ;;  %v909_v63 = vpop.f32.mrf.mxu1  ;;  %1799 = vmatpush.bf16.msra.mxu3 %v3648_v46 }
 0x15a   :  { %1654 = vmatpush.bf16.msra.mxu1 %v3560_v44  ;;  %v4320_v44 = vld [vmem:[%s6561_s3 + $0xb4] sm:$0xf0] }
 0x15b   :  { %v1066_v57 = vadd.f32 %v1065_v48, %v987_v39  ;;  %v910_v28 = vadd.f32 %v909_v63, %v831_v8 }
 0x15d   :  { %v1440_v62 = vmax.f32 %v1066_v57, 0.0 }
 0x15f   :  { %v5529_v9 = vmax.f32 %v1412_v27, %v1440_v62  ;;  %v1418_v62 = vmax.f32 %v5427_v40, 0.0  ;;  %v1420_v40 = vmax.f32 %v5434_v11, 0.0  ;;  %v3637_v11 = vld [vmem:[%s6561_s3 + $0x68] sm:$0xf0] }
 0x160   :  { %v988_v4 = vpop.f32.mrf.mxu2  ;;  %v833_v16 = vpop.f32.mrf.mxu0 }
 0x161   :  { %v989_v56 = vadd.f32 %v988_v4, %v910_v28  ;;  %v1067_v50 = vpop.f32.mrf.mxu3  ;;  %v834_v51 = vadd.f32 %v833_v16, %v5126_v45  ;;  %v912_v17 = vpop.f32.mrf.mxu1 }
 0x163   :  { %v1068_v18 = vadd.f32 %v1067_v50, %v989_v56  ;;  %v913_v19 = vadd.f32 %v912_v17, %v834_v51  ;;  %1118 = vmatmul.bf16.gmra.mxu0 %v5048_v0  ;;  %v6613_v17 = vld [vmem:[#allocation3_spill] sm:$0xff] }
 0x164   :  { %1197 = vmatmul.bf16.gmra.mxu1 %v5050_v1  ;;  %v3555_v1 = vld [vmem:[%s6561_s3 + $0xc0] sm:$0xf] }
 0x165   :  { %v1442_v13 = vmax.f32 %v1068_v18, 0.0  ;;  %1276 = vmatmul.bf16.gmra.mxu2 %v5052_v2  ;;  %v4322_v2 = vld [vmem:[%s6561_s3 + $0xc4] sm:$0xf0]  ;;  %v5584_v18 = vperm.slane %v6613_v17, 1 }
 0x166   :  { %1355 = vmatmul.bf16.gmra.mxu3 %v5054_v3  ;;  %v3556_v3 = vor.u32 %v4322_v2, %v3555_v1  ;;  %v6615_v2 = vld [vmem:[#allocation5_spill] sm:$0xff]  ;;  %v6622_v17 = vld [vmem:[#allocation11_spill] sm:$0xff] }
 0x167   :  { %v5549_v26 = vmax.f32 %v1414_v12, %v1442_v13 }
 0x168   :  { %v991_v14 = vpop.f32.mrf.mxu2  ;;  %v835_v7 = vpop.f32.mrf.mxu0  ;;  %1620 = vmatpush.bf16.msra.mxu0 %v3556_v3  ;;  %v6616_v3 = vld [vmem:[#allocation6_spill] sm:$0xff] }
 0x169   :  { %v992_v15 = vadd.f32 %v991_v14, %v913_v19  ;;  %v1070_v59 = vpop.f32.mrf.mxu3  ;;  %v836_v24 = vadd.f32 %v835_v7, %v5126_v45  ;;  %v914_v6 = vpop.f32.mrf.mxu1 }
 0x16b   :  { %v1071_v10 = vadd.f32 %v1070_v59, %v992_v15  ;;  %v915_v0 = vadd.f32 %v914_v6, %v836_v24 }
 0x16d   :  { %v1444_v58 = vmax.f32 %v1071_v10, 0.0 }
 0x16f   :  { %v5565_v47 = vmax.f32 %v1416_v23, %v1444_v58  ;;  %v6614_v23 = vld [vmem:[#allocation4_spill] sm:$0xff]  ;;  %v1422_v58 = vmax.f32 %v5437_v54, 0.0 }
 0x170   :  { %v993_v39 = vpop.f32.mrf.mxu2  ;;  %v838_v8 = vpop.f32.mrf.mxu0 }
 0x171   :  { %v994_v48 = vadd.f32 %v993_v39, %v915_v0  ;;  %v1072_v53 = vpop.f32.mrf.mxu3  ;;  %v839_v63 = vadd.f32 %v838_v8, %v5126_v45  ;;  %v917_v57 = vpop.f32.mrf.mxu1  ;;  %v4319_v39 = vld [vmem:[%s6561_s3 + $0xb4] sm:$0xf] }
 0x173   :  { %v1073_v28 = vadd.f32 %v1072_v53, %v994_v48  ;;  %v918_v27 = vadd.f32 %v917_v57, %v839_v63  ;;  %1123 = vmatmul.bf16.gmra.mxu0 %v5084_v20  ;;  %v3548_v48 = vor.u32 %v4320_v44, %v3547_v37  ;;  %v3549_v53 = vld [vmem:[%s6561_s3 + $0xb8] sm:$0xf0] }
 0x174   :  { %1202 = vmatmul.bf16.gmra.mxu1 %v5086_v21  ;;  %v3635_v21 = vld [vmem:[%s6561_s3 + $0x60] sm:$0xf]  ;;  %v3552_v63 = vor.u32 %v4319_v39, %v3549_v53  ;;  %v6623_v53 = vld [vmem:[#allocation12_spill] sm:$0xff] }
 0x175   :  { %v1446_v29 = vmax.f32 %v1073_v28, 0.0  ;;  %1281 = vmatmul.bf16.gmra.mxu2 %v5088_v22  ;;  %v4310_v22 = vld [vmem:[%s6561_s3 + $0x64] sm:$0xf0]  ;;  %1621 = vmatpush.bf16.msra.mxu0 %v3548_v48 }
 0x176   :  { %1360 = vmatmul.bf16.gmra.mxu3 %v6612_v30  ;;  %v3636_v19 = vor.u32 %v4310_v22, %v3635_v21  ;;  %1655 = vmatpush.bf16.msra.mxu1 %v3552_v63  ;;  %v6620_v21 = vld [vmem:[#allocation9_spill] sm:$0xff]  ;;  %v6621_v22 = vld [vmem:[#allocation10_spill] sm:$0xff] }
 0x177   :  { %v5573_v31 = vmax.f32 %v1418_v62, %v1446_v29  ;;  %v6625_v63 = vld [vmem:[#allocation14_spill] sm:$0xff] }
 0x178   :  { %v996_v4 = vpop.f32.mrf.mxu2  ;;  %v840_v56 = vpop.f32.mrf.mxu0  ;;  %1766 = vmatpush.bf16.msra.mxu2 %v3636_v19  ;;  %v3627_v19 = vld [vmem:[%s6561_s3 + $0x50] sm:$0xf] }
 0x179   :  { %v997_v49 = vadd.f32 %v996_v4, %v918_v27  ;;  %v1075_v55 = vpop.f32.mrf.mxu3  ;;  %v841_v50 = vadd.f32 %v840_v56, %v5126_v45  ;;  %v919_v16 = vpop.f32.mrf.mxu1  ;;  %v4309_v45 = vld [vmem:[%s6561_s3 + $0x64] sm:$0xf] }
 0x17a   :  { %v3640_v13 = vor.u32 %v4309_v45, %v3637_v11  ;;  %v4308_v45 = vld [vmem:[%s6561_s3 + $0x54] sm:$0xf0]  ;;  %v4307_v11 = vld [vmem:[%s6561_s3 + $0x54] sm:$0xf] }
 0x17b   :  { %v1076_v46 = vadd.f32 %v1075_v55, %v997_v49  ;;  %v920_v20 = vadd.f32 %v919_v16, %v841_v50 }
 0x17c   :  { %1800 = vmatpush.bf16.msra.mxu3 %v3640_v13  ;;  %v3628_v13 = vor.u32 %v4308_v45, %v3627_v19 }
 0x17d   :  { %v1448_v51 = vmax.f32 %v1076_v46, 0.0 }
 0x17e   :  { %1767 = vmatpush.bf16.msra.mxu2 %v3628_v13  ;;  %v3619_v13 = vld [vmem:[%s6561_s3 + $0x40] sm:$0xf] }
 0x17f   :  { %v5592_v12 = vmax.f32 %v1420_v40, %v1448_v51  ;;  %v6619_v51 = vld [vmem:[#allocation8_spill] sm:$0xff] }
 0x180   :  { %v998_v14 = vpop.f32.mrf.mxu2  ;;  %v1089_v7 = vpop.f32.mrf.mxu0 }
 0x181   :  { %v999_v15 = vadd.f32 %v998_v14, %v920_v20  ;;  %v1077_v59 = vpop.f32.mrf.mxu3  ;;  %v1090_v24 = vadd.f32 %v1089_v7, %v5584_v18  ;;  %v1168_v6 = vpop.f32.mrf.mxu1  ;;  %v3629_v14 = vld [vmem:[%s6561_s3 + $0x58] sm:$0xf0] }
 0x183   :  { %v1078_v10 = vadd.f32 %v1077_v59, %v999_v15  ;;  %v1169_v0 = vadd.f32 %v1168_v6, %v1090_v24  ;;  %1128 = vmatmul.bf16.gmra.mxu0 %v6614_v23  ;;  %v3632_v59 = vor.u32 %v4307_v11, %v3629_v14  ;;  %v6627_v11 = vld [vmem:[#allocation16_spill] sm:$0xff]  ;;  %v4306_v14 = vld [vmem:[%s6561_s3 + $0x44] sm:$0xf0] }
 0x184   :  { %1207 = vmatmul.bf16.gmra.mxu1 %v6615_v2 }
 0x185   :  { %v1450_v1 = vmax.f32 %v1078_v10, 0.0  ;;  %1286 = vmatmul.bf16.gmra.mxu2 %v6616_v3  ;;  %1801 = vmatpush.bf16.msra.mxu3 %v3632_v59  ;;  %v3620_v59 = vor.u32 %v4306_v14, %v3619_v13  ;;  %v4303_v14 = vld [vmem:[%s6561_s3 + $0x34] sm:$0xf] }
 0x186   :  { %1365 = vmatmul.bf16.gmra.mxu3 %v6617_v60 }
 0x187   :  { %v5609_v54 = vmax.f32 %v1422_v58, %v1450_v1  ;;  %1768 = vmatpush.bf16.msra.mxu2 %v3620_v59 }
 0x188   :  { %v1247_v8 = vpop.f32.mrf.mxu2  ;;  %v1091_v27 = vpop.f32.mrf.mxu0 }
 0x189   :  { %6618 = vst [vmem:[#allocation2_spill] sm:$0xff] %v5609_v54  ;;  %v1248_v57 = vadd.f32 %v1247_v8, %v1169_v0  ;;  %v1326_v28 = vpop.f32.mrf.mxu3  ;;  %v1092_v62 = vadd.f32 %v1091_v27, %v5584_v18  ;;  %v1170_v29 = vpop.f32.mrf.mxu1  ;;  %v6624_v8 = vld [vmem:[#allocation13_spill] sm:$0xff]  ;;  %v6626_v27 = vld [vmem:[#allocation15_spill] sm:$0xff] }
 0x18b   :  { %v5615_v30 = vadd.f32 %v1326_v28, %v1248_v57  ;;  %v1171_v4 = vadd.f32 %v1170_v29, %v1092_v62  ;;  %v3539_v57 = vld [vmem:[%s6561_s3 + $0xa0] sm:$0xf]  ;;  %v4318_v28 = vld [vmem:[%s6561_s3 + $0xa4] sm:$0xf0]  ;;  %v4317_v29 = vld [vmem:[%s6561_s3 + $0xa4] sm:$0xf] }
 0x18c   :  { %v3540_v62 = vor.u32 %v4318_v28, %v3539_v57 }
 0x18e   :  { %1622 = vmatpush.bf16.msra.mxu0 %v3540_v62  ;;  %v6629_v62 = vld [vmem:[#allocation18_spill] sm:$0xff] }
 0x190   :  { %v1249_v49 = vpop.f32.mrf.mxu2  ;;  %v1094_v50 = vpop.f32.mrf.mxu0 }
 0x191   :  { %v1250_v55 = vadd.f32 %v1249_v49, %v1171_v4  ;;  %v1328_v56 = vpop.f32.mrf.mxu3  ;;  %v1095_v16 = vadd.f32 %v1094_v50, %v5584_v18  ;;  %v1173_v46 = vpop.f32.mrf.mxu1  ;;  %v3541_v4 = vld [vmem:[%s6561_s3 + $0xa8] sm:$0xf0] }
 0x192   :  { %v3544_v49 = vor.u32 %v4317_v29, %v3541_v4  ;;  %v6630_v29 = vld [vmem:[#allocation19_spill] sm:$0xff]  ;;  %v6631_v4 = vld [vmem:[#allocation20_spill] sm:$0xff] }
 0x193   :  { %v5618_v20 = vadd.f32 %v1328_v56, %v1250_v55  ;;  %v1174_v40 = vadd.f32 %v1173_v46, %v1095_v16  ;;  %1133 = vmatmul.bf16.gmra.mxu0 %v6619_v51 }
 0x194   :  { %1212 = vmatmul.bf16.gmra.mxu1 %v6620_v21 }
 0x195   :  { %1291 = vmatmul.bf16.gmra.mxu2 %v6621_v22  ;;  %1656 = vmatpush.bf16.msra.mxu1 %v3544_v49  ;;  %v6632_v49 = vld [vmem:[#allocation21_spill] sm:$0xff] }
 0x196   :  { %1370 = vmatmul.bf16.gmra.mxu3 %v6622_v17 }
 0x198   :  { %v1252_v15 = vpop.f32.mrf.mxu2  ;;  %v1096_v6 = vpop.f32.mrf.mxu0 }
 0x199   :  { %v1253_v7 = vadd.f32 %v1252_v15, %v1174_v40  ;;  %v1331_v24 = vpop.f32.mrf.mxu3  ;;  %v1097_v10 = vadd.f32 %v1096_v6, %v5584_v18  ;;  %v1175_v0 = vpop.f32.mrf.mxu1  ;;  %v6628_v15 = vld [vmem:[#allocation17_spill] sm:$0xff] }
 0x19b   :  { %v5637_v23 = vadd.f32 %v1331_v24, %v1253_v7  ;;  %v1176_v58 = vadd.f32 %v1175_v0, %v1097_v10  ;;  %v4305_v7 = vld [vmem:[%s6561_s3 + $0x44] sm:$0xf] }
 0x1a0   :  { %v1254_v1 = vpop.f32.mrf.mxu2  ;;  %v1099_v60 = vpop.f32.mrf.mxu0 }
 0x1a1   :  { %v1255_v2 = vadd.f32 %v1254_v1, %v1176_v58  ;;  %v1333_v3 = vpop.f32.mrf.mxu3  ;;  %v1100_v37 = vadd.f32 %v1099_v60, %v5584_v18  ;;  %v1178_v44 = vpop.f32.mrf.mxu1 }
 0x1a3   :  { %v5640_v39 = vadd.f32 %v1333_v3, %v1255_v2  ;;  %v1179_v48 = vadd.f32 %v1178_v44, %v1100_v37  ;;  %1138 = vmatmul.bf16.gmra.mxu0 %v6623_v53  ;;  %v3531_v2 = vld [vmem:[%s6561_s3 + $0x90] sm:$0xf]  ;;  %v4316_v3 = vld [vmem:[%s6561_s3 + $0x94] sm:$0xf0]  ;;  %v4315_v37 = vld [vmem:[%s6561_s3 + $0x94] sm:$0xf] }
 0x1a4   :  { %1217 = vmatmul.bf16.gmra.mxu1 %v6624_v8  ;;  %v3532_v60 = vor.u32 %v4316_v3, %v3531_v2  ;;  %v3533_v44 = vld [vmem:[%s6561_s3 + $0x98] sm:$0xf0]  ;;  %v6633_v2 = vld [vmem:[#allocation22_spill] sm:$0xff] }
 0x1a5   :  { %1296 = vmatmul.bf16.gmra.mxu2 %v6625_v63 }
 0x1a6   :  { %1375 = vmatmul.bf16.gmra.mxu3 %v6626_v27  ;;  %1623 = vmatpush.bf16.msra.mxu0 %v3532_v60 }
 0x1a8   :  { %v1257_v55 = vpop.f32.mrf.mxu2  ;;  %v5658_v16 = vpop.f32.mrf.mxu0 }
 0x1a9   :  { %v1258_v56 = vadd.f32 %v1257_v55, %v1179_v48  ;;  %v1336_v50 = vpop.f32.mrf.mxu3  ;;  %v5660_v46 = vpop.f32.mrf.mxu1  ;;  %v3536_v48 = vor.u32 %v4315_v37, %v3533_v44 }
 0x1ab   :  { %v5662_v40 = vadd.f32 %v1336_v50, %v1258_v56  ;;  %1657 = vmatpush.bf16.msra.mxu1 %v3536_v48 }
 0x1b0   :  { %v5664_v51 = vpop.f32.mrf.mxu2  ;;  %v1104_v22 = vpop.f32.mrf.mxu0 }
 0x1b1   :  { %v5666_v21 = vpop.f32.mrf.mxu3  ;;  %v1105_v17 = vadd.f32 %v1104_v22, %v5584_v18  ;;  %v1183_v19 = vpop.f32.mrf.mxu1 }
 0x1b3   :  { %v1184_v45 = vadd.f32 %v1183_v19, %v1105_v17  ;;  %1143 = vmatmul.bf16.gmra.mxu0 %v5324_v34 }
 0x1b4   :  { %1222 = vmatmul.bf16.gmra.mxu1 %v5326_v5  ;;  %v3621_v5 = vld [vmem:[%s6561_s3 + $0x48] sm:$0xf0] }
 0x1b5   :  { %1301 = vmatmul.bf16.gmra.mxu2 %v6627_v11  ;;  %v3624_v34 = vor.u32 %v4305_v7, %v3621_v5  ;;  %v4304_v11 = vld [vmem:[%s6561_s3 + $0x34] sm:$0xf0] }
 0x1b6   :  { %1380 = vmatmul.bf16.gmra.mxu3 %v6628_v15  ;;  %v3613_v15 = vld [vmem:[%s6561_s3 + $0x38] sm:$0xf0] }
 0x1b7   :  { %1802 = vmatpush.bf16.msra.mxu3 %v3624_v34  ;;  %v3616_v59 = vor.u32 %v4303_v14, %v3613_v15 }
 0x1b8   :  { %v1262_v24 = vpop.f32.mrf.mxu2  ;;  %v5685_v0 = vpop.f32.mrf.mxu0 }
 0x1b9   :  { %v1263_v6 = vadd.f32 %v1262_v24, %v1184_v45  ;;  %v1341_v10 = vpop.f32.mrf.mxu3  ;;  %v5687_v58 = vpop.f32.mrf.mxu1  ;;  %v3611_v45 = vld [vmem:[%s6561_s3 + $0x30] sm:$0xf] }
 0x1ba   :  { %v3612_v13 = vor.u32 %v4304_v11, %v3611_v45  ;;  %v3525_v45 = vld [vmem:[%s6561_s3 + $0x88] sm:$0xf0] }
 0x1bb   :  { %v5689_v1 = vadd.f32 %v1341_v10, %v1263_v6  ;;  %1803 = vmatpush.bf16.msra.mxu3 %v3616_v59  ;;  %v3605_v11 = vld [vmem:[%s6561_s3 + $0x28] sm:$0xf0]  ;;  %v3595_v59 = vld [vmem:[%s6561_s3 + $0x10] sm:$0xf] }
 0x1bc   :  { %1769 = vmatpush.bf16.msra.mxu2 %v3612_v13 }
 0x1c0   :  { %v5703_v53 = vpop.f32.mrf.mxu2  ;;  %v1109_v63 = vpop.f32.mrf.mxu0 }
 0x1c1   :  { %v5705_v8 = vpop.f32.mrf.mxu3  ;;  %v1110_v57 = vadd.f32 %v1109_v63, %v5584_v18  ;;  %v1188_v28 = vpop.f32.mrf.mxu1 }
 0x1c3   :  { %v1189_v27 = vadd.f32 %v1188_v28, %v1110_v57  ;;  %1148 = vmatmul.bf16.gmra.mxu0 %v6629_v62  ;;  %v3523_v62 = vld [vmem:[%s6561_s3 + $0x80] sm:$0xf] }
 0x1c4   :  { %1227 = vmatmul.bf16.gmra.mxu1 %v6630_v29  ;;  %v4314_v29 = vld [vmem:[%s6561_s3 + $0x84] sm:$0xf0] }
 0x1c5   :  { %1306 = vmatmul.bf16.gmra.mxu2 %v6631_v4  ;;  %v4313_v4 = vld [vmem:[%s6561_s3 + $0x84] sm:$0xf] }
 0x1c6   :  { %1385 = vmatmul.bf16.gmra.mxu3 %v6632_v49  ;;  %v3528_v13 = vor.u32 %v4313_v4, %v3525_v45 }
 0x1c8   :  { %v1267_v55 = vpop.f32.mrf.mxu2  ;;  %v5712_v22 = vpop.f32.mrf.mxu0  ;;  %1658 = vmatpush.bf16.msra.mxu1 %v3528_v13 }
 0x1c9   :  { %v1268_v56 = vadd.f32 %v1267_v55, %v1189_v27  ;;  %v1346_v50 = vpop.f32.mrf.mxu3  ;;  %v5714_v17 = vpop.f32.mrf.mxu1 }
 0x1cb   :  { %v5716_v19 = vadd.f32 %v1346_v50, %v1268_v56  ;;  %v3524_v50 = vor.u32 %v4314_v29, %v3523_v62  ;;  %v3589_v29 = vld [vmem:[%s6561_s3 + $0x8] sm:$0xf0] }
 0x1cd   :  { %1624 = vmatpush.bf16.msra.mxu0 %v3524_v50 }
 0x1d0   :  { %v5730_v7 = vpop.f32.mrf.mxu2  ;;  %v1114_v34 = vpop.f32.mrf.mxu0 }
 0x1d1   :  { %v5732_v5 = vpop.f32.mrf.mxu3  ;;  %v1115_v24 = vadd.f32 %v1114_v34, %v5584_v18  ;;  %v1193_v6 = vpop.f32.mrf.mxu1  ;;  %v4300_v34 = vld [vmem:[%s6561_s3 + $0x14] sm:$0xf0] }
 0x1d3   :  { %v1194_v10 = vadd.f32 %v1193_v6, %v1115_v24  ;;  %1153 = vmatmul.bf16.gmra.mxu0 %v5408_v43  ;;  %v3603_v43 = vld [vmem:[%s6561_s3 + $0x20] sm:$0xf]  ;;  %v4299_v24 = vld [vmem:[%s6561_s3 + $0x14] sm:$0xf]  ;;  %v3596_v6 = vor.u32 %v4300_v34, %v3595_v59 }
 0x1d4   :  { %1232 = vmatmul.bf16.gmra.mxu1 %v5410_v41  ;;  %v4301_v41 = vld [vmem:[%s6561_s3 + $0x24] sm:$0xf] }
 0x1d5   :  { %1311 = vmatmul.bf16.gmra.mxu2 %v5412_v33  ;;  %v4302_v33 = vld [vmem:[%s6561_s3 + $0x24] sm:$0xf0]  ;;  %v3608_v14 = vor.u32 %v4301_v41, %v3605_v11 }
 0x1d6   :  { %1390 = vmatmul.bf16.gmra.mxu3 %v6633_v2  ;;  %v3604_v49 = vor.u32 %v4302_v33, %v3603_v43  ;;  %v4297_v43 = vld [vmem:[%s6561_s3 + $0x4] sm:$0xf] }
 0x1d7   :  { %1804 = vmatpush.bf16.msra.mxu3 %v3608_v14 }
 0x1d8   :  { %v1272_v3 = vpop.f32.mrf.mxu2  ;;  %v5739_v44 = vpop.f32.mrf.mxu0  ;;  %1770 = vmatpush.bf16.msra.mxu2 %v3604_v49  ;;  %v3592_v49 = vor.u32 %v4297_v43, %v3589_v29 }
 0x1d9   :  { %v1273_v60 = vadd.f32 %v1272_v3, %v1194_v10  ;;  %v1351_v37 = vpop.f32.mrf.mxu3  ;;  %v5741_v48 = vpop.f32.mrf.mxu1  ;;  %v3597_v10 = vld [vmem:[%s6561_s3 + $0x18] sm:$0xf0] }
 0x1da   :  { %v3600_v2 = vor.u32 %v4299_v24, %v3597_v10  ;;  %v4344_v10 = vld [vmem:[%s6561_s3 + $0x174] sm:$0xf0] }
 0x1db   :  { %v5743_v63 = vadd.f32 %v1351_v37, %v1273_v60  ;;  %v3587_v60 = vld [vmem:[%s6561_s3] sm:$0xf]  ;;  %v4298_v37 = vld [vmem:[%s6561_s3 + $0x4] sm:$0xf0] }
 0x1dc   :  { %1771 = vmatpush.bf16.msra.mxu2 %v3596_v6  ;;  %1805 = vmatpush.bf16.msra.mxu3 %v3600_v2  ;;  %v3588_v62 = vor.u32 %v4298_v37, %v3587_v60  ;;  %v3723_v6 = vld [vmem:[%s6561_s3 + $0x170] sm:$0xf]  ;;  %v4343_v2 = vld [vmem:[%s6561_s3 + $0x174] sm:$0xf]  ;;  %v3725_v37 = vld [vmem:[%s6561_s3 + $0x178] sm:$0xf0] }
 0x1dd   :  { %v3724_v60 = vor.u32 %v4344_v10, %v3723_v6 }
 0x1df   :  { %1931 = vmatpush.bf16.msrb.mxu0 %v3724_v60 }
 0x1e0   :  { %v5745_v57 = vpop.f32.mrf.mxu2  ;;  %v1119_v27 = vpop.f32.mrf.mxu0  ;;  %1772 = vmatpush.bf16.msra.mxu2 %v3588_v62  ;;  %1806 = vmatpush.bf16.msra.mxu3 %v3592_v49  ;;  %v1397_v62 = vmax.f32 %v5615_v30, 0.0  ;;  %v4342_v30 = vld [vmem:[%s6561_s3 + $0x164] sm:$0xf0] }
 0x1e1   :  { %v5756_v28 = vpop.f32.mrf.mxu3  ;;  %v1120_v55 = vadd.f32 %v1119_v27, %v5584_v18  ;;  %v1198_v56 = vpop.f32.mrf.mxu1 }
 0x1e3   :  { %v1199_v15 = vadd.f32 %v1198_v56, %v1120_v55 }
 0x1e8   :  { %v1277_v3 = vpop.f32.mrf.mxu2  ;;  %v5795_v27 = vpop.f32.mrf.mxu0 }
 0x1e9   :  { %v1278_v33 = vadd.f32 %v1277_v3, %v1199_v15  ;;  %v1356_v41 = vpop.f32.mrf.mxu3  ;;  %v5800_v4 = vpop.f32.mrf.mxu1 }
 0x1eb   :  { %v5802_v55 = vadd.f32 %v1356_v41, %v1278_v33  ;;  %v3728_v41 = vor.u32 %v4343_v2, %v3725_v37  ;;  %v3717_v2 = vld [vmem:[%s6561_s3 + $0x168] sm:$0xf0] }
 0x1ed   :  { %1965 = vmatpush.bf16.msrb.mxu1 %v3728_v41 }
 0x1f0   :  { %v5804_v56 = vpop.f32.mrf.mxu2  ;;  %v1124_v45 = vpop.f32.mrf.mxu0 }
 0x1f1   :  { %v5806_v50 = vpop.f32.mrf.mxu3  ;;  %v1125_v11 = vadd.f32 %v1124_v45, %v5584_v18  ;;  %v1203_v13 = vpop.f32.mrf.mxu1 }
 0x1f3   :  { %v1204_v14 = vadd.f32 %v1203_v13, %v1125_v11 }
 0x1f8   :  { %v1282_v15 = vpop.f32.mrf.mxu2  ;;  %v1126_v24 = vpop.f32.mrf.mxu0 }
 0x1f9   :  { %v1283_v59 = vadd.f32 %v1282_v15, %v1204_v14  ;;  %v1361_v34 = vpop.f32.mrf.mxu3  ;;  %v1205_v3 = vpop.f32.mrf.mxu1  ;;  %v1127_v33 = vadd.f32 %v1126_v24, %v5584_v18  ;;  %v4341_v24 = vld [vmem:[%s6561_s3 + $0x164] sm:$0xf] }
 0x1fb   :  { %v1362_v43 = vadd.f32 %v1361_v34, %v1283_v59  ;;  %v1206_v45 = vadd.f32 %v1205_v3, %v1127_v33  ;;  %v3715_v34 = vld [vmem:[%s6561_s3 + $0x160] sm:$0xf]  ;;  %v1399_v3 = vmax.f32 %v5618_v20, 0.0 }
 0x1fd   :  { %v1425_v29 = vmax.f32 %v1362_v43, 0.0  ;;  %v3720_v43 = vor.u32 %v4341_v24, %v3717_v2 }
 0x1ff   :  { %v1453_v49 = vmax.f32 %v1397_v62, %v1425_v29  ;;  %1966 = vmatpush.bf16.msrb.mxu1 %v3720_v43  ;;  %v1102_v43 = vadd.f32 %v5658_v16, %v5584_v18 }
 0x200   :  { %v1284_v11 = vpop.f32.mrf.mxu2  ;;  %v1129_v6 = vpop.f32.mrf.mxu0 }
 0x201   :  { %v1480_v13 = vmax.f32 %v5457_v42, %v1453_v49  ;;  %v1285_v14 = vadd.f32 %v1284_v11, %v1206_v45  ;;  %v1363_v15 = vpop.f32.mrf.mxu3  ;;  %v1130_v10 = vadd.f32 %v1129_v6, %v5584_v18  ;;  %v1208_v54 = vpop.f32.mrf.mxu1  ;;  %v3716_v42 = vor.u32 %v4342_v30, %v3715_v34 }
 0x202   :  { %v1401_v34 = vmax.f32 %v5637_v23, 0.0  ;;  %v3707_v23 = vld [vmem:[%s6561_s3 + $0x150] sm:$0xf] }
 0x203   :  { %v1364_v59 = vadd.f32 %v1363_v15, %v1285_v14  ;;  %v1209_v37 = vadd.f32 %v1208_v54, %v1130_v10  ;;  %1932 = vmatpush.bf16.msrb.mxu0 %v3716_v42 }
 0x205   :  { %v1427_v60 = vmax.f32 %v1364_v59, 0.0 }
 0x207   :  { %v1455_v33 = vmax.f32 %v1399_v3, %v1427_v60 }
 0x208   :  { %v1287_v41 = vpop.f32.mrf.mxu2  ;;  %v1131_v45 = vpop.f32.mrf.mxu0 }
 0x209   :  { %v1481_v62 = vmax.f32 %v5465_v32, %v1455_v33  ;;  %v1288_v29 = vadd.f32 %v1287_v41, %v1209_v37  ;;  %v1366_v49 = vpop.f32.mrf.mxu3  ;;  %v1210_v11 = vpop.f32.mrf.mxu1  ;;  %v1132_v6 = vadd.f32 %v1131_v45, %v5584_v18  ;;  %v4340_v37 = vld [vmem:[%s6561_s3 + $0x154] sm:$0xf0]  ;;  %v3709_v41 = vld [vmem:[%s6561_s3 + $0x158] sm:$0xf0] }
 0x20a   :  { %v3708_v33 = vor.u32 %v4340_v37, %v3707_v23  ;;  %v4359_v37 = vld [vmem:[%s6561_s3 + $0x1f4] sm:$0xf] }
 0x20b   :  { %v1494_v14 = vpack.c.bf16 %v1481_v62, %v1480_v13  ;;  %v1367_v15 = vadd.f32 %v1366_v49, %v1288_v29  ;;  %v1211_v10 = vadd.f32 %v1210_v11, %v1132_v6 }
 0x20c   :  { %1933 = vmatpush.bf16.msrb.mxu0 %v3708_v33 }
 0x20d   :  { %v1429_v20 = vmax.f32 %v1367_v15, 0.0  ;;  %1773 = vmatmul.bf16.vlgmr.msra.gmra.mxu2 %v1494_v14  ;;  %1807 = vmatmul.bf16.vlgmr.msra.gmra.mxu3 %v1494_v14  ;;  %v1181_v14 = vadd.f32 %v5660_v46, %v1102_v43  ;;  %v4338_v46 = vld [vmem:[%s6561_s3 + $0x144] sm:$0xf0] }
 0x20f   :  { %v1457_v54 = vmax.f32 %v1401_v34, %v1429_v20 }
 0x210   :  { %v1289_v59 = vpop.f32.mrf.mxu2  ;;  %v1134_v42 = vpop.f32.mrf.mxu0 }
 0x211   :  { %v1482_v30 = vmax.f32 %v5469_v35, %v1457_v54  ;;  %v1290_v24 = vadd.f32 %v1289_v59, %v1211_v10  ;;  %v1368_v32 = vpop.f32.mrf.mxu3  ;;  %v1135_v2 = vadd.f32 %v1134_v42, %v5584_v18  ;;  %v1213_v3 = vpop.f32.mrf.mxu1  ;;  %v4339_v35 = vld [vmem:[%s6561_s3 + $0x154] sm:$0xf]  ;;  %v1260_v54 = vadd.f32 %v5664_v51, %v1181_v14  ;;  %v3701_v51 = vld [vmem:[%s6561_s3 + $0x148] sm:$0xf0] }
 0x212   :  { %v3712_v45 = vor.u32 %v4339_v35, %v3709_v41  ;;  %v3805_v35 = vld [vmem:[%s6561_s3 + $0x1f8] sm:$0xf0] }
 0x213   :  { %v1515_v13 = vpack.c.bf16 %v1482_v30, %v1481_v62  ;;  %v1369_v60 = vadd.f32 %v1368_v32, %v1290_v24  ;;  %v1403_v62 = vmax.f32 %v5640_v39, 0.0  ;;  %v1214_v49 = vadd.f32 %v1213_v3, %v1135_v2  ;;  %v3699_v32 = vld [vmem:[%s6561_s3 + $0x140] sm:$0xf]  ;;  %v4360_v2 = vld [vmem:[%s6561_s3 + $0x1f4] sm:$0xf0] }
 0x214   :  { %1967 = vmatpush.bf16.msrb.mxu1 %v3712_v45  ;;  %v3700_v42 = vor.u32 %v4338_v46, %v3699_v32  ;;  %v1405_v3 = vmax.f32 %v5662_v40, 0.0  ;;  %v1339_v43 = vadd.f32 %v5666_v21, %v1260_v54  ;;  %v3808_v33 = vor.u32 %v4359_v37, %v3805_v35  ;;  %v4357_v21 = vld [vmem:[%s6561_s3 + $0x1e4] sm:$0xf]  ;;  %v4336_v46 = vld [vmem:[%s6561_s3 + $0x134] sm:$0xf0] }
 0x215   :  { %v1431_v29 = vmax.f32 %v1369_v60, 0.0  ;;  %1625 = vmatmul.bf16.vlgmr.msra.gmra.mxu0 %v1515_v13  ;;  %1659 = vmatmul.bf16.vlgmr.msra.gmra.mxu1 %v1515_v13  ;;  %v3789_v37 = vld [vmem:[%s6561_s3 + $0x1d8] sm:$0xf0] }
 0x216   :  { %1934 = vmatpush.bf16.msrb.mxu0 %v3700_v42  ;;  %2151 = vmatpush.bf16.msrb.mxu3 %v3808_v33 }
 0x217   :  { %v1459_v11 = vmax.f32 %v1403_v62, %v1431_v29  ;;  %v3795_v29 = vld [vmem:[%s6561_s3 + $0x1e0] sm:$0xf] }
 0x218   :  { %v1292_v15 = vpop.f32.mrf.mxu2  ;;  %v1136_v20 = vpop.f32.mrf.mxu0 }
 0x219   :  { %v1483_v16 = vmax.f32 %v5477_v61, %v1459_v11  ;;  %v1293_v6 = vadd.f32 %v1292_v15, %v1214_v49  ;;  %v1371_v34 = vpop.f32.mrf.mxu3  ;;  %v1215_v10 = vpop.f32.mrf.mxu1  ;;  %v1137_v59 = vadd.f32 %v1136_v20, %v5584_v18  ;;  %v4337_v61 = vld [vmem:[%s6561_s3 + $0x144] sm:$0xf]  ;;  %v4358_v49 = vld [vmem:[%s6561_s3 + $0x1e4] sm:$0xf0]  ;;  %v1407_v20 = vmax.f32 %v1339_v43, 0.0 }
 0x21a   :  { %v3704_v60 = vor.u32 %v4337_v61, %v3701_v51  ;;  %v4335_v61 = vld [vmem:[%s6561_s3 + $0x134] sm:$0xf]  ;;  %v3787_v51 = vld [vmem:[%s6561_s3 + $0x1d0] sm:$0xf]  ;;  %v1107_v43 = vadd.f32 %v5685_v0, %v5584_v18 }
 0x21b   :  { %v1372_v39 = vadd.f32 %v1371_v34, %v1293_v6  ;;  %v5862_v24 = vpack.c.bf16 %v1483_v16, %v1482_v30  ;;  %v3803_v30 = vld [vmem:[%s6561_s3 + $0x1f0] sm:$0xf]  ;;  %v1216_v41 = vadd.f32 %v1215_v10, %v1137_v59  ;;  %v3796_v6 = vor.u32 %v4358_v49, %v3795_v29  ;;  %v3797_v34 = vld [vmem:[%s6561_s3 + $0x1e8] sm:$0xf0]  ;;  %v4353_v29 = vld [vmem:[%s6561_s3 + $0x1c4] sm:$0xf] }
 0x21c   :  { %v3804_v23 = vor.u32 %v4360_v2, %v3803_v30  ;;  %1968 = vmatpush.bf16.msrb.mxu1 %v3704_v60  ;;  %v4356_v30 = vld [vmem:[%s6561_s3 + $0x1d4] sm:$0xf0] }
 0x21d   :  { %v1433_v13 = vmax.f32 %v1372_v39, 0.0  ;;  %1778 = vmatmul.bf16.gmra.mxu2 %v5862_v24  ;;  %1812 = vmatmul.bf16.gmra.mxu3 %v5862_v24  ;;  %v3800_v39 = vor.u32 %v4357_v21, %v3797_v34  ;;  %v3788_v60 = vor.u32 %v4356_v30, %v3787_v51 }
 0x21e   :  { %2117 = vmatpush.bf16.msrb.mxu2 %v3804_v23  ;;  %v4355_v23 = vld [vmem:[%s6561_s3 + $0x1d4] sm:$0xf] }
 0x21f   :  { %v1461_v40 = vmax.f32 %v1405_v3, %v1433_v13  ;;  %2152 = vmatpush.bf16.msrb.mxu3 %v3800_v39  ;;  %v3792_v35 = vor.u32 %v4355_v23, %v3789_v37  ;;  %v3763_v37 = vld [vmem:[%s6561_s3 + $0x1a0] sm:$0xf] }
 0x220   :  { %v1294_v62 = vpop.f32.mrf.mxu2  ;;  %v1139_v15 = vpop.f32.mrf.mxu0 }
 0x221   :  { %v1484_v45 = vmax.f32 %v5493_v36, %v1461_v40  ;;  %v1295_v11 = vadd.f32 %v1294_v62, %v1216_v41  ;;  %v1373_v14 = vpop.f32.mrf.mxu3  ;;  %v1140_v54 = vadd.f32 %v1139_v15, %v5584_v18  ;;  %v1218_v10 = vpop.f32.mrf.mxu1  ;;  %v3691_v36 = vld [vmem:[%s6561_s3 + $0x130] sm:$0xf]  ;;  %v3779_v41 = vld [vmem:[%s6561_s3 + $0x1c0] sm:$0xf]  ;;  %v4354_v62 = vld [vmem:[%s6561_s3 + $0x1c4] sm:$0xf0] }
 0x222   :  { %2118 = vmatpush.bf16.msrb.mxu2 %v3796_v6  ;;  %v3692_v42 = vor.u32 %v4336_v46, %v3691_v36  ;;  %v3781_v15 = vld [vmem:[%s6561_s3 + $0x1c8] sm:$0xf0]  ;;  %v1409_v6 = vmax.f32 %v5689_v1, 0.0  ;;  %v4334_v36 = vld [vmem:[%s6561_s3 + $0x124] sm:$0xf0] }
 0x223   :  { %v5906_v59 = vpack.c.bf16 %v1484_v45, %v1483_v16  ;;  %v1374_v32 = vadd.f32 %v1373_v14, %v1295_v11  ;;  %v3693_v16 = vld [vmem:[%s6561_s3 + $0x138] sm:$0xf0]  ;;  %v1219_v3 = vadd.f32 %v1218_v10, %v1140_v54  ;;  %2153 = vmatpush.bf16.msrb.mxu3 %v3792_v35  ;;  %v3780_v14 = vor.u32 %v4354_v62, %v3779_v41  ;;  %v4333_v1 = vld [vmem:[%s6561_s3 + $0x124] sm:$0xf]  ;;  %v4350_v35 = vld [vmem:[%s6561_s3 + $0x1a4] sm:$0xf0] }
 0x224   :  { %v3696_v13 = vor.u32 %v4335_v61, %v3693_v16  ;;  %1935 = vmatpush.bf16.msrb.mxu0 %v3692_v42  ;;  %v1186_v54 = vadd.f32 %v5687_v58, %v1107_v43  ;;  %v3685_v58 = vld [vmem:[%s6561_s3 + $0x128] sm:$0xf0]  ;;  %v4352_v61 = vld [vmem:[%s6561_s3 + $0x1b4] sm:$0xf0]  ;;  %v4349_v43 = vld [vmem:[%s6561_s3 + $0x1a4] sm:$0xf] }
 0x225   :  { %v1435_v2 = vmax.f32 %v1374_v32, 0.0  ;;  %1630 = vmatmul.bf16.gmra.mxu0 %v5906_v59  ;;  %1664 = vmatmul.bf16.gmra.mxu1 %v5906_v59  ;;  %v3688_v51 = vor.u32 %v4333_v1, %v3685_v58  ;;  %v3675_v58 = vld [vmem:[%s6561_s3 + $0x110] sm:$0xf] }
 0x226   :  { %1969 = vmatpush.bf16.msrb.mxu1 %v3696_v13  ;;  %2119 = vmatpush.bf16.msrb.mxu2 %v3788_v60  ;;  %v1265_v42 = vadd.f32 %v5703_v53, %v1186_v54 }
 0x227   :  { %v1463_v33 = vmax.f32 %v1407_v20, %v1435_v2  ;;  %v3784_v20 = vor.u32 %v4353_v29, %v3781_v15  ;;  %v4351_v2 = vld [vmem:[%s6561_s3 + $0x1b4] sm:$0xf] }
 0x228   :  { %v1297_v40 = vpop.f32.mrf.mxu2  ;;  %v1141_v11 = vpop.f32.mrf.mxu0 }
 0x229   :  { %v1485_v49 = vmax.f32 %v5501_v25, %v1463_v33  ;;  %v1298_v0 = vadd.f32 %v1297_v40, %v1219_v3  ;;  %v1376_v21 = vpop.f32.mrf.mxu3  ;;  %v1220_v34 = vpop.f32.mrf.mxu1  ;;  %v1142_v32 = vadd.f32 %v1141_v11, %v5584_v18  ;;  %v3683_v25 = vld [vmem:[%s6561_s3 + $0x120] sm:$0xf]  ;;  %2154 = vmatpush.bf16.msrb.mxu3 %v3784_v20  ;;  %v3773_v3 = vld [vmem:[%s6561_s3 + $0x1b8] sm:$0xf0]  ;;  %v1344_v33 = vadd.f32 %v5705_v8, %v1265_v42  ;;  %v4348_v8 = vld [vmem:[%s6561_s3 + $0x194] sm:$0xf0] }
 0x22a   :  { %2120 = vmatpush.bf16.msrb.mxu2 %v3780_v14  ;;  %v3684_v46 = vor.u32 %v4334_v36, %v3683_v25  ;;  %v3776_v13 = vor.u32 %v4351_v2, %v3773_v3  ;;  %1970 = vmatpush.bf16.msrb.mxu1 %v3688_v51  ;;  %v4347_v20 = vld [vmem:[%s6561_s3 + $0x194] sm:$0xf]  ;;  %v3757_v25 = vld [vmem:[%s6561_s3 + $0x198] sm:$0xf0]  ;;  %v1112_v36 = vadd.f32 %v5712_v22, %v5584_v18  ;;  %v3747_v51 = vld [vmem:[%s6561_s3 + $0x180] sm:$0xf] }
 0x22b   :  { %v5951_v10 = vpack.c.bf16 %v1485_v49, %v1484_v45  ;;  %v1377_v39 = vadd.f32 %v1376_v21, %v1298_v0  ;;  %v3771_v45 = vld [vmem:[%s6561_s3 + $0x1b0] sm:$0xf]  ;;  %v1221_v23 = vadd.f32 %v1220_v34, %v1142_v32  ;;  %v3764_v0 = vor.u32 %v4350_v35, %v3763_v37  ;;  %v3765_v21 = vld [vmem:[%s6561_s3 + $0x1a8] sm:$0xf0]  ;;  %v3677_v22 = vld [vmem:[%s6561_s3 + $0x118] sm:$0xf0] }
 0x22c   :  { %v3772_v30 = vor.u32 %v4352_v61, %v3771_v45  ;;  %1936 = vmatpush.bf16.msrb.mxu0 %v3684_v46  ;;  %v3768_v15 = vor.u32 %v4349_v43, %v3765_v21  ;;  %v1411_v54 = vmax.f32 %v1344_v33, 0.0  ;;  %v3760_v1 = vor.u32 %v4347_v20, %v3757_v25  ;;  %v4332_v45 = vld [vmem:[%s6561_s3 + $0x114] sm:$0xf0]  ;;  %v4331_v61 = vld [vmem:[%s6561_s3 + $0x114] sm:$0xf] }
 0x22d   :  { %v1437_v16 = vmax.f32 %v1377_v39, 0.0  ;;  %1783 = vmatmul.bf16.gmra.mxu2 %v5951_v10  ;;  %1817 = vmatmul.bf16.gmra.mxu3 %v5951_v10  ;;  %v4345_v37 = vld [vmem:[%s6561_s3 + $0x184] sm:$0xf]  ;;  %v3749_v35 = vld [vmem:[%s6561_s3 + $0x188] sm:$0xf0]  ;;  %v1191_v43 = vadd.f32 %v5714_v17, %v1112_v36 }
 0x22e   :  { %2121 = vmatpush.bf16.msrb.mxu2 %v3772_v30  ;;  %2155 = vmatpush.bf16.msrb.mxu3 %v3776_v13  ;;  %v4346_v30 = vld [vmem:[%s6561_s3 + $0x184] sm:$0xf0] }
 0x22f   :  { %v1465_v60 = vmax.f32 %v1409_v6, %v1437_v16  ;;  %v3676_v16 = vor.u32 %v4332_v45, %v3675_v58  ;;  %v1270_v21 = vadd.f32 %v5730_v7, %v1191_v43  ;;  %v1117_v45 = vadd.f32 %v5739_v44, %v5584_v18 }
 0x230   :  { %v1299_v53 = vpop.f32.mrf.mxu2  ;;  %v1144_v29 = vpop.f32.mrf.mxu0 }
 0x231   :  { %v1486_v40 = vmax.f32 %v5505_v52, %v1465_v60  ;;  %v1300_v41 = vadd.f32 %v1299_v53, %v1221_v23  ;;  %v1378_v62 = vpop.f32.mrf.mxu3  ;;  %v1145_v11 = vadd.f32 %v1144_v29, %v5584_v18  ;;  %v1223_v14 = vpop.f32.mrf.mxu1  ;;  %v3755_v52 = vld [vmem:[%s6561_s3 + $0x190] sm:$0xf]  ;;  %v3680_v23 = vor.u32 %v4331_v61, %v3677_v22  ;;  %1937 = vmatpush.bf16.msrb.mxu0 %v3676_v16  ;;  %v4376_v16 = vld [vmem:[%s6561_s3 + $0x274] sm:$0xf0]  ;;  %v4375_v22 = vld [vmem:[%s6561_s3 + $0x274] sm:$0xf] }
 0x232   :  { %2122 = vmatpush.bf16.msrb.mxu2 %v3764_v0  ;;  %2156 = vmatpush.bf16.msrb.mxu3 %v3768_v15  ;;  %v3748_v53 = vor.u32 %v4346_v30, %v3747_v51  ;;  %v1413_v0 = vmax.f32 %v5716_v19, 0.0  ;;  %v4329_v19 = vld [vmem:[%s6561_s3 + $0x104] sm:$0xf]  ;;  %v1349_v7 = vadd.f32 %v5732_v5, %v1270_v21 }
 0x233   :  { %v5996_v6 = vpack.c.bf16 %v1486_v40, %v1485_v49  ;;  %v1379_v34 = vadd.f32 %v1378_v62, %v1300_v41  ;;  %v1224_v32 = vadd.f32 %v1223_v14, %v1145_v11  ;;  %v3756_v49 = vor.u32 %v4348_v8, %v3755_v52  ;;  %1971 = vmatpush.bf16.msrb.mxu1 %v3680_v23 }
 0x234   :  { %v3752_v41 = vor.u32 %v4345_v37, %v3749_v35  ;;  %v1415_v5 = vmax.f32 %v1349_v7, 0.0  ;;  %v1196_v37 = vadd.f32 %v5741_v48, %v1117_v45  ;;  %v4374_v48 = vld [vmem:[%s6561_s3 + $0x264] sm:$0xf0] }
 0x235   :  { %v1439_v39 = vmax.f32 %v1379_v34, 0.0  ;;  %1635 = vmatmul.bf16.gmra.mxu0 %v5996_v6  ;;  %1669 = vmatmul.bf16.gmra.mxu1 %v5996_v6  ;;  %v4330_v34 = vld [vmem:[%s6561_s3 + $0x104] sm:$0xf0] }
 0x236   :  { %2123 = vmatpush.bf16.msrb.mxu2 %v3756_v49  ;;  %2157 = vmatpush.bf16.msrb.mxu3 %v3760_v1 }
 0x237   :  { %v1467_v46 = vmax.f32 %v1411_v54, %v1439_v39 }
 0x238   :  { %v1302_v42 = vpop.f32.mrf.mxu2  ;;  %v1146_v60 = vpop.f32.mrf.mxu0 }
 0x239   :  { %v1487_v2 = vmax.f32 %v5525_v38, %v1467_v46  ;;  %v1303_v3 = vadd.f32 %v1302_v42, %v1224_v32  ;;  %v1381_v13 = vpop.f32.mrf.mxu3  ;;  %v1225_v33 = vpop.f32.mrf.mxu1  ;;  %v1147_v29 = vadd.f32 %v1146_v60, %v5584_v18  ;;  %v3669_v32 = vld [vmem:[%s6561_s3 + $0x108] sm:$0xf0]  ;;  %v3883_v42 = vld [vmem:[%s6561_s3 + $0x270] sm:$0xf] }
 0x23a   :  { %2124 = vmatpush.bf16.msrb.mxu2 %v3748_v53  ;;  %2158 = vmatpush.bf16.msrb.mxu3 %v3752_v41  ;;  %v3672_v36 = vor.u32 %v4329_v19, %v3669_v32  ;;  %v3884_v30 = vor.u32 %v4376_v16, %v3883_v42  ;;  %v1417_v41 = vmax.f32 %v5743_v63, 0.0  ;;  %v4373_v63 = vld [vmem:[%s6561_s3 + $0x264] sm:$0xf] }
 0x23b   :  { %v6040_v62 = vpack.c.bf16 %v1487_v2, %v1486_v40  ;;  %v1382_v38 = vadd.f32 %v1381_v13, %v1303_v3  ;;  %v1226_v14 = vadd.f32 %v1225_v33, %v1147_v29  ;;  %v3667_v40 = vld [vmem:[%s6561_s3 + $0x100] sm:$0xf] }
 0x23c   :  { %v3668_v39 = vor.u32 %v4330_v34, %v3667_v40  ;;  %1972 = vmatpush.bf16.msrb.mxu1 %v3672_v36  ;;  %v4371_v36 = vld [vmem:[%s6561_s3 + $0x254] sm:$0xf] }
 0x23d   :  { %v1441_v11 = vmax.f32 %v1382_v38, 0.0  ;;  %1788 = vmatmul.bf16.gmra.mxu2 %v6040_v62  ;;  %1822 = vmatmul.bf16.gmra.mxu3 %v6040_v62  ;;  %v1275_v38 = vadd.f32 %v5745_v57, %v1196_v37  ;;  %v3877_v57 = vld [vmem:[%s6561_s3 + $0x268] sm:$0xf0] }
 0x23e   :  { %1938 = vmatpush.bf16.msrb.mxu0 %v3668_v39 }
 0x23f   :  { %v1469_v17 = vmax.f32 %v1413_v0, %v1441_v11 }
 0x240   :  { %v1304_v15 = vpop.f32.mrf.mxu2  ;;  %v1149_v54 = vpop.f32.mrf.mxu0 }
 0x241   :  { %v1488_v52 = vmax.f32 %v5529_v9, %v1469_v17  ;;  %v1305_v8 = vadd.f32 %v1304_v15, %v1226_v14  ;;  %v1383_v20 = vpop.f32.mrf.mxu3  ;;  %v1150_v49 = vadd.f32 %v1149_v54, %v5584_v18  ;;  %v1228_v25 = vpop.f32.mrf.mxu1  ;;  %v3880_v17 = vor.u32 %v4373_v63, %v3877_v57  ;;  %v6634_v57 = vld [vmem:[#allocation2_spill] sm:$0xff] }
 0x242   :  { %2303 = vmatpush.bf16.msra.mxu0 %v3884_v30  ;;  %v1354_v15 = vadd.f32 %v5756_v28, %v1275_v38  ;;  %v4372_v28 = vld [vmem:[%s6561_s3 + $0x254] sm:$0xf0] }
 0x243   :  { %v6062_v1 = vpack.c.bf16 %v1488_v52, %v1487_v2  ;;  %v1384_v46 = vadd.f32 %v1383_v20, %v1305_v8  ;;  %v1229_v9 = vadd.f32 %v1228_v25, %v1150_v49  ;;  %v3885_v2 = vld [vmem:[%s6561_s3 + $0x278] sm:$0xf0] }
 0x244   :  { %v3888_v23 = vor.u32 %v4375_v22, %v3885_v2  ;;  %v1419_v39 = vmax.f32 %v1354_v15, 0.0 }
 0x245   :  { %v1443_v58 = vmax.f32 %v1384_v46, 0.0  ;;  %1640 = vmatmul.bf16.gmra.mxu0 %v6062_v1  ;;  %1674 = vmatmul.bf16.gmra.mxu1 %v6062_v1  ;;  %v3869_v46 = vld [vmem:[%s6561_s3 + $0x258] sm:$0xf0] }
 0x246   :  { %2337 = vmatpush.bf16.msra.mxu1 %v3888_v23 }
 0x247   :  { %v1471_v61 = vmax.f32 %v1415_v5, %v1443_v58  ;;  %v1122_v5 = vadd.f32 %v5795_v27, %v5584_v18  ;;  %v1421_v27 = vmax.f32 %v5802_v55, 0.0  ;;  %v4369_v55 = vld [vmem:[%s6561_s3 + $0x244] sm:$0xf] }
 0x248   :  { %v1307_v51 = vpop.f32.mrf.mxu2  ;;  %v1151_v60 = vpop.f32.mrf.mxu0 }
 0x249   :  { %v1489_v44 = vmax.f32 %v5549_v26, %v1471_v61  ;;  %v1308_v3 = vadd.f32 %v1307_v51, %v1229_v9  ;;  %v1386_v13 = vpop.f32.mrf.mxu3  ;;  %v1230_v53 = vpop.f32.mrf.mxu1  ;;  %v1152_v33 = vadd.f32 %v1151_v60, %v5584_v18  ;;  %v3875_v26 = vld [vmem:[%s6561_s3 + $0x260] sm:$0xf]  ;;  %v3872_v9 = vor.u32 %v4371_v36, %v3869_v46  ;;  %v3829_v46 = vld [vmem:[%s6561_s3 + $0x208] sm:$0xf0] }
 0x24a   :  { %v3876_v0 = vor.u32 %v4374_v48, %v3875_v26  ;;  %2338 = vmatpush.bf16.msra.mxu1 %v3880_v17  ;;  %v1201_v2 = vadd.f32 %v5800_v4, %v1122_v5 }
 0x24b   :  { %v6082_v35 = vpack.c.bf16 %v1489_v44, %v1488_v52  ;;  %v1387_v43 = vadd.f32 %v1386_v13, %v1308_v3  ;;  %v1231_v11 = vadd.f32 %v1230_v53, %v1152_v33 }
 0x24c   :  { %2304 = vmatpush.bf16.msra.mxu0 %v3876_v0  ;;  %v1280_v13 = vadd.f32 %v5804_v56, %v1201_v2  ;;  %v3861_v56 = vld [vmem:[%s6561_s3 + $0x248] sm:$0xf0] }
 0x24d   :  { %v1445_v29 = vmax.f32 %v1387_v43, 0.0  ;;  %1793 = vmatmul.bf16.gmra.mxu2 %v6082_v35  ;;  %1827 = vmatmul.bf16.gmra.mxu3 %v6082_v35 }
 0x24e   :  { %2339 = vmatpush.bf16.msra.mxu1 %v3872_v9  ;;  %v1359_v43 = vadd.f32 %v5806_v50, %v1280_v13  ;;  %v4368_v50 = vld [vmem:[%s6561_s3 + $0x234] sm:$0xf0] }
 0x24f   :  { %v1473_v21 = vmax.f32 %v1417_v41, %v1445_v29 }
 0x250   :  { %v1309_v14 = vpop.f32.mrf.mxu2  ;;  %v1154_v7 = vpop.f32.mrf.mxu0  ;;  %v1423_v48 = vmax.f32 %v1359_v43, 0.0 }
 0x251   :  { %v1490_v40 = vmax.f32 %v5565_v47, %v1473_v21  ;;  %v1310_v34 = vadd.f32 %v1309_v14, %v1231_v11  ;;  %v1388_v19 = vpop.f32.mrf.mxu3  ;;  %v1155_v52 = vadd.f32 %v1154_v7, %v5584_v18  ;;  %v1233_v8 = vpop.f32.mrf.mxu1  ;;  %v3867_v47 = vld [vmem:[%s6561_s3 + $0x250] sm:$0xf]  ;;  %v3853_v14 = vld [vmem:[%s6561_s3 + $0x238] sm:$0xf0]  ;;  %v3845_v7 = vld [vmem:[%s6561_s3 + $0x228] sm:$0xf0] }
 0x252   :  { %v3868_v25 = vor.u32 %v4372_v28, %v3867_v47  ;;  %v4362_v28 = vld [vmem:[%s6561_s3 + $0x204] sm:$0xf0] }
 0x253   :  { %v6104_v20 = vpack.c.bf16 %v1490_v40, %v1489_v44  ;;  %v1389_v54 = vadd.f32 %v1388_v19, %v1310_v34  ;;  %v1234_v49 = vadd.f32 %v1233_v8, %v1155_v52  ;;  %v4365_v34 = vld [vmem:[%s6561_s3 + $0x224] sm:$0xf]  ;;  %v3835_v8 = vld [vmem:[%s6561_s3 + $0x210] sm:$0xf] }
 0x254   :  { %2305 = vmatpush.bf16.msra.mxu0 %v3868_v25  ;;  %v3848_v52 = vor.u32 %v4365_v34, %v3845_v7  ;;  %v4361_v25 = vld [vmem:[%s6561_s3 + $0x204] sm:$0xf] }
 0x255   :  { %v1447_v32 = vmax.f32 %v1389_v54, 0.0  ;;  %1645 = vmatmul.bf16.gmra.mxu0 %v6104_v20  ;;  %1679 = vmatmul.bf16.gmra.mxu1 %v6104_v20  ;;  %v4364_v54 = vld [vmem:[%s6561_s3 + $0x214] sm:$0xf0]  ;;  %v3832_v5 = vor.u32 %v4361_v25, %v3829_v46 }
 0x257   :  { %v1475_v58 = vmax.f32 %v1419_v39, %v1447_v32  ;;  %v4363_v39 = vld [vmem:[%s6561_s3 + $0x214] sm:$0xf]  ;;  %v3836_v32 = vor.u32 %v4364_v54, %v3835_v8 }
 0x258   :  { %v1312_v45 = vpop.f32.mrf.mxu2  ;;  %v1156_v16 = vpop.f32.mrf.mxu0 }
 0x259   :  { %v1313_v61 = vadd.f32 %v1312_v45, %v1234_v49  ;;  %v1391_v42 = vpop.f32.mrf.mxu3  ;;  %v1491_v22 = vmax.f32 %v5573_v31, %v1475_v58  ;;  %v1157_v51 = vadd.f32 %v1156_v16, %v5584_v18  ;;  %v1235_v30 = vpop.f32.mrf.mxu1  ;;  %v3859_v31 = vld [vmem:[%s6561_s3 + $0x240] sm:$0xf]  ;;  %v4370_v18 = vld [vmem:[%s6561_s3 + $0x244] sm:$0xf0]  ;;  %v3837_v49 = vld [vmem:[%s6561_s3 + $0x218] sm:$0xf0] }
 0x25a   :  { %v3860_v4 = vor.u32 %v4370_v18, %v3859_v31  ;;  %v3840_v47 = vor.u32 %v4363_v39, %v3837_v49 }
 0x25b   :  { %v1392_v44 = vadd.f32 %v1391_v42, %v1313_v61  ;;  %v6125_v3 = vpack.c.bf16 %v1491_v22, %v1490_v40  ;;  %v1236_v23 = vadd.f32 %v1235_v30, %v1157_v51  ;;  %v4366_v40 = vld [vmem:[%s6561_s3 + $0x224] sm:$0xf0] }
 0x25c   :  { %2306 = vmatpush.bf16.msra.mxu0 %v3860_v4 }
 0x25d   :  { %v1449_v60 = vmax.f32 %v1392_v44, 0.0  ;;  %2125 = vmatmul.bf16.vlgmr.msrb.gmra.mxu2 %v5906_v59  ;;  %2159 = vmatmul.bf16.vlgmr.msrb.gmra.mxu3 %v5906_v59  ;;  %v3864_v59 = vor.u32 %v4369_v55, %v3861_v56 }
 0x25f   :  { %v1477_v53 = vmax.f32 %v1421_v27, %v1449_v60  ;;  %2340 = vmatpush.bf16.msra.mxu1 %v3864_v59 }
 0x260   :  { %v1314_v37 = vpop.f32.mrf.mxu2 }
 0x261   :  { %v1492_v33 = vmax.f32 %v5592_v12, %v1477_v53  ;;  %v1315_v41 = vadd.f32 %v1314_v37, %v1236_v23  ;;  %v1393_v38 = vpop.f32.mrf.mxu3  ;;  %v3851_v12 = vld [vmem:[%s6561_s3 + $0x230] sm:$0xf] }
 0x262   :  { %v3852_v17 = vor.u32 %v4368_v50, %v3851_v12 }
 0x263   :  { %v1394_v29 = vadd.f32 %v1393_v38, %v1315_v41  ;;  %v2019_v26 = vpack.c.bf16 %v1492_v33, %v1491_v22 }
 0x264   :  { %2307 = vmatpush.bf16.msra.mxu0 %v3852_v17 }
 0x265   :  { %v1451_v0 = vmax.f32 %v1394_v29, 0.0  ;;  %1939 = vmatmul.bf16.vlgmr.msrb.gmra.mxu0 %v5862_v24  ;;  %1973 = vmatmul.bf16.vlgmr.msrb.gmra.mxu1 %v5862_v24  ;;  %v4367_v24 = vld [vmem:[%s6561_s3 + $0x234] sm:$0xf] }
 0x266   :  { %v3856_v15 = vor.u32 %v4367_v24, %v3853_v14 }
 0x267   :  { %v1479_v63 = vmax.f32 %v1423_v48, %v1451_v0 }
 0x268   :  { %2341 = vmatpush.bf16.msra.mxu1 %v3856_v15 }
 0x269   :  { %v1493_v21 = vmax.f32 %v6634_v57, %v1479_v63 }
 0x26b   :  { %v6148_v11 = vpack.c.bf16 %v1493_v21, %v1492_v33 }
 0x26c   :  { %2342 = vmatpush.bf16.msra.mxu1 %v3848_v52 }
 0x26d   :  { %2130 = vmatmul.bf16.gmra.mxu2 %v5996_v6  ;;  %2164 = vmatmul.bf16.gmra.mxu3 %v5996_v6  ;;  %v3843_v6 = vld [vmem:[%s6561_s3 + $0x220] sm:$0xf] }
 0x26e   :  { %v3844_v19 = vor.u32 %v4366_v40, %v3843_v6 }
 0x270   :  { %2308 = vmatpush.bf16.msra.mxu0 %v3844_v19  ;;  %2343 = vmatpush.bf16.msra.mxu1 %v3840_v47 }
 0x274   :  { %2309 = vmatpush.bf16.msra.mxu0 %v3836_v32  ;;  %2344 = vmatpush.bf16.msra.mxu1 %v3832_v5 }
 0x275   :  { %1944 = vmatmul.bf16.gmra.mxu0 %v5951_v10  ;;  %1978 = vmatmul.bf16.gmra.mxu1 %v5951_v10 }
 0x27d   :  { %2135 = vmatmul.bf16.gmra.mxu2 %v6062_v1  ;;  %2169 = vmatmul.bf16.gmra.mxu3 %v6062_v1  ;;  %v3827_v1 = vld [vmem:[%s6561_s3 + $0x200] sm:$0xf] }
 0x27e   :  { %v3828_v36 = vor.u32 %v4362_v28, %v3827_v1 }
 0x280   :  { %2310 = vmatpush.bf16.msra.mxu0 %v3828_v36 }
 0x285   :  { %1949 = vmatmul.bf16.gmra.mxu0 %v6040_v62  ;;  %1983 = vmatmul.bf16.gmra.mxu1 %v6040_v62 }
 0x28d   :  { %2140 = vmatmul.bf16.gmra.mxu2 %v6104_v20  ;;  %2174 = vmatmul.bf16.gmra.mxu3 %v6104_v20 }
 0x290   :  { %v1774_v58 = vpop.f32.mrf.mxu2  ;;  %v1808_v9 = vpop.f32.mrf.mxu3 }
 0x292   :  { %v1626_v45 = vpop.f32.mrf.mxu0  ;;  %v1660_v61 = vpop.f32.mrf.mxu1 }
 0x293   :  { %v6208_v42 = vadd.f32 %v1774_v58, %v1626_v45  ;;  %v6210_v16 = vadd.f32 %v1808_v9, %v1660_v61 }
 0x295   :  { %1954 = vmatmul.bf16.gmra.mxu0 %v6082_v35  ;;  %1988 = vmatmul.bf16.gmra.mxu1 %v6082_v35 }
 0x298   :  { %v6214_v22 = vpop.f32.mrf.mxu2  ;;  %v6216_v51 = vpop.f32.mrf.mxu3 }
 0x29a   :  { %v6218_v20 = vpop.f32.mrf.mxu0  ;;  %v6220_v30 = vpop.f32.mrf.mxu1 }
 0x29b   :  { %v1811_v58 = vadd.f32 %v6216_v51, %v6220_v30 }
 0x29d   :  { %2145 = vmatmul.bf16.gmra.mxu2 %v2019_v26  ;;  %2179 = vmatmul.bf16.gmra.mxu3 %v2019_v26 }
 0x2a0   :  { %v1779_v2 = vpop.f32.mrf.mxu2  ;;  %v1813_v44 = vpop.f32.mrf.mxu3 }
 0x2a2   :  { %v1631_v27 = vpop.f32.mrf.mxu0  ;;  %v1665_v13 = vpop.f32.mrf.mxu1 }
 0x2a3   :  { %v6222_v60 = vadd.f32 %v1779_v2, %v1631_v27  ;;  %v6224_v23 = vadd.f32 %v1813_v44, %v1665_v13  ;;  %v4391_v13 = vld [vmem:[%s6562_s5 + $0x70] sm:$0xff] }
 0x2a5   :  { %1959 = vmatmul.bf16.gmra.mxu0 %v6125_v3  ;;  %1993 = vmatmul.bf16.gmra.mxu1 %v6125_v3 }
 0x2a8   :  { %v1781_v31 = vpop.f32.mrf.mxu2  ;;  %v1815_v18 = vpop.f32.mrf.mxu3 }
 0x2aa   :  { %v1633_v4 = vpop.f32.mrf.mxu0  ;;  %v1667_v55 = vpop.f32.mrf.mxu1 }
 0x2ab   :  { %v6228_v56 = vadd.f32 %v1781_v31, %v1633_v4  ;;  %v6230_v53 = vadd.f32 %v1815_v18, %v1667_v55  ;;  %v4384_v18 = vld [vmem:[%s6562_s5 + $0x38] sm:$0xff] }
 0x2ac   :  { %2593 = vmatpush.bf16.msra.mxu3 %v4384_v18 }
 0x2b0   :  { %v1784_v59 = vpop.f32.mrf.mxu2  ;;  %v1818_v37 = vpop.f32.mrf.mxu3 }
 0x2b2   :  { %v1636_v43 = vpop.f32.mrf.mxu0  ;;  %v1670_v33 = vpop.f32.mrf.mxu1 }
 0x2b3   :  { %v6232_v41 = vadd.f32 %v1784_v59, %v1636_v43  ;;  %v6234_v38 = vadd.f32 %v1818_v37, %v1670_v33  ;;  %v4390_v59 = vld [vmem:[%s6562_s5 + $0x68] sm:$0xff]  ;;  %v4383_v37 = vld [vmem:[%s6562_s5 + $0x30] sm:$0xff] }
 0x2b4   :  { %2594 = vmatpush.bf16.msra.mxu3 %v4383_v37  ;;  %v4382_v43 = vld [vmem:[%s6562_s5 + $0x28] sm:$0xff] }
 0x2b5   :  { %2311 = vmatmul.bf16.vlgmr.msra.gmra.mxu0 %v5951_v10  ;;  %2345 = vmatmul.bf16.vlgmr.msra.gmra.mxu1 %v5951_v10 }
 0x2b8   :  { %v1786_v29 = vpop.f32.mrf.mxu2  ;;  %v1820_v26 = vpop.f32.mrf.mxu3  ;;  %2595 = vmatpush.bf16.msra.mxu3 %v4382_v43 }
 0x2ba   :  { %v1638_v48 = vpop.f32.mrf.mxu0  ;;  %v1672_v0 = vpop.f32.mrf.mxu1 }
 0x2bb   :  { %v6238_v63 = vadd.f32 %v1786_v29, %v1638_v48  ;;  %v6240_v57 = vadd.f32 %v1820_v26, %v1672_v0  ;;  %v4381_v26 = vld [vmem:[%s6562_s5 + $0x20] sm:$0xff]  ;;  %v4380_v0 = vld [vmem:[%s6562_s5 + $0x18] sm:$0xff] }
 0x2bc   :  { %2596 = vmatpush.bf16.msra.mxu3 %v4381_v26  ;;  %v4389_v48 = vld [vmem:[%s6562_s5 + $0x60] sm:$0xff] }
 0x2c0   :  { %v1789_v21 = vpop.f32.mrf.mxu2  ;;  %v1823_v12 = vpop.f32.mrf.mxu3  ;;  %2597 = vmatpush.bf16.msra.mxu3 %v4380_v0 }
 0x2c2   :  { %v1641_v50 = vpop.f32.mrf.mxu0  ;;  %v1675_v24 = vpop.f32.mrf.mxu1 }
 0x2c3   :  { %v6242_v17 = vadd.f32 %v1789_v21, %v1641_v50  ;;  %v6244_v14 = vadd.f32 %v1823_v12, %v1675_v24  ;;  %v4388_v12 = vld [vmem:[%s6562_s5 + $0x58] sm:$0xff] }
 0x2c5   :  { %2316 = vmatmul.bf16.gmra.mxu0 %v6040_v62  ;;  %2350 = vmatmul.bf16.gmra.mxu1 %v6040_v62 }
 0x2c8   :  { %v6248_v10 = vpop.f32.mrf.mxu2  ;;  %v1825_v15 = vpop.f32.mrf.mxu3 }
 0x2ca   :  { %v6250_v6 = vpop.f32.mrf.mxu0  ;;  %v1677_v40 = vpop.f32.mrf.mxu1 }
 0x2cb   :  { %v6252_v34 = vadd.f32 %v1825_v15, %v1677_v40 }
 0x2d0   :  { %v1794_v19 = vpop.f32.mrf.mxu2  ;;  %v1828_v7 = vpop.f32.mrf.mxu3 }
 0x2d2   :  { %v1646_v52 = vpop.f32.mrf.mxu0  ;;  %v1680_v8 = vpop.f32.mrf.mxu1 }
 0x2d3   :  { %v6254_v54 = vadd.f32 %v1794_v19, %v1646_v52  ;;  %v6256_v39 = vadd.f32 %v1828_v7, %v1680_v8  ;;  %v4386_v19 = vld [vmem:[%s6562_s5 + $0x48] sm:$0xff]  ;;  %v4377_v8 = vld [vmem:[%s6562_s5] sm:$0xff] }
 0x2d5   :  { %2321 = vmatmul.bf16.gmra.mxu0 %v6082_v35  ;;  %2355 = vmatmul.bf16.gmra.mxu1 %v6082_v35  ;;  %v1777_v35 = vadd.f32 %v6214_v22, %v6218_v20 }
 0x2d8   :  { %v1796_v62 = vpop.f32.mrf.mxu2  ;;  %v1830_v32 = vpop.f32.mrf.mxu3 }
 0x2da   :  { %v1648_v49 = vpop.f32.mrf.mxu0  ;;  %v1682_v47 = vpop.f32.mrf.mxu1 }
 0x2db   :  { %v6260_v1 = vadd.f32 %v1796_v62, %v1648_v49  ;;  %v6262_v28 = vadd.f32 %v1830_v32, %v1682_v47  ;;  %v4385_v62 = vld [vmem:[%s6562_s5 + $0x40] sm:$0xff] }
 0x2e0   :  { %v2160_v15 = vpop.f32.mrf.mxu3 }
 0x2e2   :  { %v1940_v25 = vpop.f32.mrf.mxu0  ;;  %v1974_v36 = vpop.f32.mrf.mxu1 }
 0x2e3   :  { %v6265_v46 = vadd.f32 %v1940_v25, %v6208_v42  ;;  %v6268_v5 = vadd.f32 %v1974_v36, %v6210_v16 }
 0x2e5   :  { %2326 = vmatmul.bf16.gmra.mxu0 %v6125_v3  ;;  %2360 = vmatmul.bf16.gmra.mxu1 %v6125_v3  ;;  %v4392_v3 = vld [vmem:[%s6562_s5 + $0x78] sm:$0xff] }
 0x2e6   :  { %2532 = vmatpush.bf16.msra.mxu2 %v4392_v3 }
 0x2e8   :  { %v2162_v49 = vpop.f32.mrf.mxu3 }
 0x2ea   :  { %v1942_v9 = vpop.f32.mrf.mxu0  ;;  %v1976_v45 = vpop.f32.mrf.mxu1  ;;  %2533 = vmatpush.bf16.msra.mxu2 %v4391_v13 }
 0x2eb   :  { %v6276_v61 = vadd.f32 %v1942_v9, %v1777_v35  ;;  %v6278_v2 = vadd.f32 %v1976_v45, %v1811_v58  ;;  %v4399_v35 = vld [vmem:[%s6562_s5 + $0xb0] sm:$0xff]  ;;  %v2391_v58 = vld [vmem:[%s6563_s4] sm:$0x3]  ;;  %v4398_v9 = vld [vmem:[%s6562_s5 + $0xa8] sm:$0xff] }
 0x2ec   :  { %v6395_v3 = vperm.slane %v2391_v58, 1 }
 0x2ee   :  { %2534 = vmatpush.bf16.msra.mxu2 %v4390_v59  ;;  %v4408_v59 = vld [vmem:[%s6562_s5 + $0xf8] sm:$0xff] }
 0x2f2   :  { %v1945_v42 = vpop.f32.mrf.mxu0  ;;  %v1979_v44 = vpop.f32.mrf.mxu1  ;;  %2535 = vmatpush.bf16.msra.mxu2 %v4389_v48 }
 0x2f3   :  { %v6281_v16 = vadd.f32 %v1945_v42, %v6222_v60  ;;  %v6284_v27 = vadd.f32 %v1979_v44, %v6224_v23  ;;  %v2165_v42 = vpop.f32.mrf.mxu3  ;;  %v6392_v44 = vperm.slane %v2391_v58, 0 }
 0x2f5   :  { %2331 = vmatmul.bf16.gmra.mxu0 %v6148_v11  ;;  %2365 = vmatmul.bf16.gmra.mxu1 %v6148_v11 }
 0x2f6   :  { %2536 = vmatpush.bf16.msra.mxu2 %v4388_v12  ;;  %v4407_v12 = vld [vmem:[%s6562_s5 + $0xf0] sm:$0xff] }
 0x2fa   :  { %v1947_v22 = vpop.f32.mrf.mxu0  ;;  %v1981_v51 = vpop.f32.mrf.mxu1 }
 0x2fb   :  { %v6292_v20 = vadd.f32 %v1947_v22, %v6228_v56  ;;  %v6295_v30 = vadd.f32 %v1981_v51, %v6230_v53  ;;  %v2167_v0 = vpop.f32.mrf.mxu3 }
 0x302   :  { %v1950_v60 = vpop.f32.mrf.mxu0  ;;  %v1984_v23 = vpop.f32.mrf.mxu1 }
 0x303   :  { %v6301_v31 = vadd.f32 %v1950_v60, %v6232_v41  ;;  %v6304_v11 = vadd.f32 %v1984_v23, %v6234_v38  ;;  %v4397_v23 = vld [vmem:[%s6562_s5 + $0xa0] sm:$0xff] }
 0x30a   :  { %v1952_v4 = vpop.f32.mrf.mxu0  ;;  %v1986_v55 = vpop.f32.mrf.mxu1 }
 0x30b   :  { %v6310_v56 = vadd.f32 %v1952_v4, %v6238_v63  ;;  %v6313_v53 = vadd.f32 %v1986_v55, %v6240_v57  ;;  %v1792_v63 = vadd.f32 %v6248_v10, %v6250_v6  ;;  %v4387_v10 = vld [vmem:[%s6562_s5 + $0x50] sm:$0xff]  ;;  %v4378_v6 = vld [vmem:[%s6562_s5 + $0x8] sm:$0xff] }
 0x30c   :  { %2537 = vmatpush.bf16.msra.mxu2 %v4387_v10  ;;  %v4406_v10 = vld [vmem:[%s6562_s5 + $0xe8] sm:$0xff] }
 0x310   :  { %2538 = vmatpush.bf16.msra.mxu2 %v4386_v19 }
 0x312   :  { %v1955_v33 = vpop.f32.mrf.mxu0  ;;  %v1989_v41 = vpop.f32.mrf.mxu1 }
 0x313   :  { %v6325_v38 = vadd.f32 %v1955_v33, %v6242_v17  ;;  %v6328_v29 = vadd.f32 %v1989_v41, %v6244_v14  ;;  %v4379_v17 = vld [vmem:[%s6562_s5 + $0x10] sm:$0xff]  ;;  %v2126_v14 = vpop.f32.mrf.mxu2  ;;  %v2188_v33 = vadd.f32 %v2162_v49, %v6278_v2 }
 0x314   :  { %2598 = vmatpush.bf16.msra.mxu3 %v4379_v17  ;;  %2539 = vmatpush.bf16.msra.mxu2 %v4385_v62 }
 0x318   :  { %2599 = vmatpush.bf16.msra.mxu3 %v4378_v6 }
 0x31a   :  { %v1957_v57 = vpop.f32.mrf.mxu0  ;;  %v1991_v21 = vpop.f32.mrf.mxu1 }
 0x31b   :  { %v6344_v50 = vadd.f32 %v1957_v57, %v1792_v63  ;;  %v6347_v24 = vadd.f32 %v1991_v21, %v6252_v34  ;;  %v2128_v32 = vpop.f32.mrf.mxu2  ;;  %v4395_v21 = vld [vmem:[%s6562_s5 + $0x90] sm:$0xff] }
 0x31c   :  { %2600 = vmatpush.bf16.msra.mxu3 %v4377_v8  ;;  %v2187_v43 = vadd.f32 %v2128_v32, %v6276_v61 }
 0x320   :  { %2754 = vmatpush.bf16.msrb.mxu3 %v4408_v59 }
 0x322   :  { %v1960_v40 = vpop.f32.mrf.mxu0  ;;  %v1994_v34 = vpop.f32.mrf.mxu1 }
 0x323   :  { %v6362_v7 = vadd.f32 %v1960_v40, %v6254_v54  ;;  %v6365_v52 = vadd.f32 %v1994_v34, %v6256_v39  ;;  %v4400_v54 = vld [vmem:[%s6562_s5 + $0xb8] sm:$0xff]  ;;  %v2131_v45 = vpop.f32.mrf.mxu2  ;;  %v2190_v34 = vadd.f32 %v2165_v42, %v6284_v27 }
 0x324   :  { %2673 = vmatpush.bf16.msrb.mxu2 %v4400_v54  ;;  %2755 = vmatpush.bf16.msrb.mxu3 %v4407_v12  ;;  %v2189_v40 = vadd.f32 %v2131_v45, %v6281_v16  ;;  %v4393_v54 = vld [vmem:[%s6562_s5 + $0x80] sm:$0xff]  ;;  %v4404_v42 = vld [vmem:[%s6562_s5 + $0xd8] sm:$0xff] }
 0x328   :  { %2674 = vmatpush.bf16.msrb.mxu2 %v4399_v35  ;;  %2756 = vmatpush.bf16.msrb.mxu3 %v4406_v10  ;;  %v2170_v35 = vpop.f32.mrf.mxu3 }
 0x32a   :  { %v1962_v39 = vpop.f32.mrf.mxu0  ;;  %v1996_v47 = vpop.f32.mrf.mxu1 }
 0x32b   :  { %v6377_v25 = vadd.f32 %v1962_v39, %v6260_v1  ;;  %v6380_v36 = vadd.f32 %v1996_v47, %v6262_v28  ;;  %v2185_v1 = vadd.f32 %v2126_v14, %v6265_v46  ;;  %v2186_v28 = vadd.f32 %v2160_v15, %v6268_v5  ;;  %v4396_v5 = vld [vmem:[%s6562_s5 + $0x98] sm:$0xff]  ;;  %v2133_v48 = vpop.f32.mrf.mxu2  ;;  %v4394_v15 = vld [vmem:[%s6562_s5 + $0x88] sm:$0xff]  ;;  %v4405_v39 = vld [vmem:[%s6562_s5 + $0xe0] sm:$0xff] }
 0x32c   :  { %2675 = vmatpush.bf16.msrb.mxu2 %v4398_v9  ;;  %2757 = vmatpush.bf16.msrb.mxu3 %v4405_v39 }
 0x330   :  { %2676 = vmatpush.bf16.msrb.mxu2 %v4397_v23  ;;  %2758 = vmatpush.bf16.msrb.mxu3 %v4404_v42 }
 0x332   :  { %v2312_v22 = vpop.f32.mrf.mxu0  ;;  %v2346_v51 = vpop.f32.mrf.mxu1 }
 0x333   :  { %v2371_v13 = vadd.f32 %v2312_v22, %v2185_v1  ;;  %v2372_v60 = vadd.f32 %v2346_v51, %v2186_v28  ;;  %v2136_v47 = vpop.f32.mrf.mxu2  ;;  %v2191_v28 = vadd.f32 %v2133_v48, %v6292_v20  ;;  %v2192_v22 = vadd.f32 %v2167_v0, %v6295_v30  ;;  %v4402_v30 = vld [vmem:[%s6562_s5 + $0xc8] sm:$0xff] }
 0x334   :  { %2677 = vmatpush.bf16.msrb.mxu2 %v4396_v5  ;;  %v2172_v5 = vpop.f32.mrf.mxu3 }
 0x335   :  { %v2397_v18 = vadd.f32 %v6392_v44, %v2371_v13  ;;  %v2398_v4 = vadd.f32 %v6395_v3, %v2372_v60 }
 0x337   :  { %v2417_v46 = vmax.f32 %v2397_v18, 0.0  ;;  %v2418_v55 = vmax.f32 %v2398_v4, 0.0  ;;  %v4403_v18 = vld [vmem:[%s6562_s5 + $0xd0] sm:$0xff] }
 0x338   :  { %2678 = vmatpush.bf16.msrb.mxu2 %v4395_v21  ;;  %2759 = vmatpush.bf16.msrb.mxu3 %v4403_v18  ;;  %v4416_v21 = vld [vmem:[%s6562_s5 + $0x138] sm:$0xff] }
 0x339   :  { %v2437_v37 = vmax.f32 %v2417_v46, %v2418_v55 }
 0x33a   :  { %v2314_v41 = vpop.f32.mrf.mxu0  ;;  %v2348_v26 = vpop.f32.mrf.mxu1 }
 0x33b   :  { %v2373_v63 = vadd.f32 %v2314_v41, %v2187_v43  ;;  %v2374_v57 = vadd.f32 %v2348_v26, %v2188_v33  ;;  %v2138_v55 = vpop.f32.mrf.mxu2  ;;  %v2193_v43 = vadd.f32 %v2136_v47, %v6301_v31  ;;  %v2194_v33 = vadd.f32 %v2170_v35, %v6304_v11 }
 0x33c   :  { %2679 = vmatpush.bf16.msrb.mxu2 %v4394_v15  ;;  %2760 = vmatpush.bf16.msrb.mxu3 %v4402_v30  ;;  %v2175_v15 = vpop.f32.mrf.mxu3  ;;  %v4410_v30 = vld [vmem:[%s6562_s5 + $0x108] sm:$0xff] }
 0x33d   :  { %v2399_v61 = vadd.f32 %v6392_v44, %v2373_v63  ;;  %v2400_v2 = vadd.f32 %v6395_v3, %v2374_v57  ;;  %v4401_v57 = vld [vmem:[%s6562_s5 + $0xc0] sm:$0xff] }
 0x33f   :  { %v2419_v17 = vmax.f32 %v2399_v61, 0.0  ;;  %v2420_v14 = vmax.f32 %v2400_v2, 0.0 }
 0x340   :  { %2680 = vmatpush.bf16.msrb.mxu2 %v4393_v54  ;;  %2761 = vmatpush.bf16.msrb.mxu3 %v4401_v57 }
 0x341   :  { %v2438_v6 = vmax.f32 %v2419_v17, %v2420_v14  ;;  %v4415_v17 = vld [vmem:[%s6562_s5 + $0x130] sm:$0xff] }
 0x342   :  { %v2317_v19 = vpop.f32.mrf.mxu0  ;;  %v2351_v8 = vpop.f32.mrf.mxu1 }
 0x343   :  { %v2447_v62 = vmax.f32 %v2437_v37, %v2438_v6  ;;  %v2375_v32 = vadd.f32 %v2317_v19, %v2189_v40  ;;  %v2376_v49 = vadd.f32 %v2351_v8, %v2190_v34  ;;  %v2141_v14 = vpop.f32.mrf.mxu2  ;;  %v2195_v6 = vadd.f32 %v2138_v55, %v6310_v56  ;;  %v4413_v56 = vld [vmem:[%s6562_s5 + $0x120] sm:$0xff] }
 0x344   :  { %v2196_v40 = vadd.f32 %v2172_v5, %v6313_v53  ;;  %v2197_v35 = vadd.f32 %v2141_v14, %v6325_v38 }
 0x345   :  { %v2448_v16 = vpack.c.bf16 %v2447_v62, %v2447_v62  ;;  %v2401_v27 = vadd.f32 %v6392_v44, %v2375_v32  ;;  %v2402_v58 = vadd.f32 %v6395_v3, %v2376_v49  ;;  %v4414_v32 = vld [vmem:[%s6562_s5 + $0x128] sm:$0xff] }
 0x347   :  { %v2421_v9 = vmax.f32 %v2401_v27, 0.0  ;;  %v2422_v45 = vmax.f32 %v2402_v58, 0.0  ;;  %2601 = vmatmul.bf16.vlgmr.msra.gmra.mxu3 %v2448_v16  ;;  %v2198_v16 = vadd.f32 %v2175_v15, %v6328_v29  ;;  %v4411_v29 = vld [vmem:[%s6562_s5 + $0x110] sm:$0xff] }
 0x349   :  { %v2439_v1 = vmax.f32 %v2421_v9, %v2422_v45 }
 0x34a   :  { %v2319_v51 = vpop.f32.mrf.mxu0  ;;  %v2353_v13 = vpop.f32.mrf.mxu1 }
 0x34b   :  { %v2377_v60 = vadd.f32 %v2319_v51, %v2191_v28  ;;  %v2378_v23 = vadd.f32 %v2353_v13, %v2192_v22  ;;  %v2177_v28 = vpop.f32.mrf.mxu3  ;;  %v4412_v22 = vld [vmem:[%s6562_s5 + $0x118] sm:$0xff] }
 0x34d   :  { %v2403_v4 = vadd.f32 %v6392_v44, %v2377_v60  ;;  %v2404_v46 = vadd.f32 %v6395_v3, %v2378_v23 }
 0x34f   :  { %v2423_v59 = vmax.f32 %v2403_v4, 0.0  ;;  %v2424_v20 = vmax.f32 %v2404_v46, 0.0  ;;  %v2200_v46 = vadd.f32 %v2177_v28, %v6347_v24  ;;  %v4417_v28 = vld [vmem:[%s6566_s7] sm:$0xff] }
 0x351   :  { %v2440_v37 = vmax.f32 %v2423_v59, %v2424_v20 }
 0x352   :  { %v2322_v41 = vpop.f32.mrf.mxu0  ;;  %v2356_v26 = vpop.f32.mrf.mxu1 }
 0x353   :  { %v2465_v48 = vmax.f32 %v2439_v1, %v2440_v37  ;;  %v2379_v0 = vadd.f32 %v2322_v41, %v2193_v43  ;;  %v2380_v63 = vadd.f32 %v2356_v26, %v2194_v33  ;;  %v2143_v1 = vpop.f32.mrf.mxu2  ;;  %v2180_v41 = vpop.f32.mrf.mxu3 }
 0x354   :  { %v2199_v4 = vadd.f32 %v2143_v1, %v6344_v50  ;;  %v4409_v50 = vld [vmem:[%s6562_s5 + $0x100] sm:$0xff]  ;;  %v4418_v1 = vld [vmem:[%s6566_s7 + $0x8] sm:$0xff] }
 0x355   :  { %v2466_v12 = vpack.c.bf16 %v2465_v48, %v2465_v48  ;;  %v2405_v61 = vadd.f32 %v6392_v44, %v2379_v0  ;;  %v2406_v31 = vadd.f32 %v6395_v3, %v2380_v63  ;;  %v2202_v63 = vadd.f32 %v2180_v41, %v6365_v52 }
 0x357   :  { %v2425_v11 = vmax.f32 %v2405_v61, 0.0  ;;  %v2426_v2 = vmax.f32 %v2406_v31, 0.0  ;;  %2540 = vmatmul.bf16.vlgmr.msra.gmra.mxu2 %v2466_v12 }
 0x358   :  { %2835 = vmatpush.bf16.msra.mxu2 %v4416_v21 }
 0x359   :  { %v2441_v10 = vmax.f32 %v2425_v11, %v2426_v2 }
 0x35a   :  { %v2324_v34 = vpop.f32.mrf.mxu0  ;;  %v2358_v19 = vpop.f32.mrf.mxu1 }
 0x35b   :  { %v2381_v8 = vadd.f32 %v2324_v34, %v2195_v6  ;;  %v2382_v62 = vadd.f32 %v2358_v19, %v2196_v40  ;;  %v2146_v33 = vpop.f32.mrf.mxu2  ;;  %v2182_v6 = vpop.f32.mrf.mxu3 }
 0x35c   :  { %2836 = vmatpush.bf16.msra.mxu2 %v4415_v17  ;;  %v2201_v0 = vadd.f32 %v2146_v33, %v6362_v7  ;;  %v2204_v52 = vadd.f32 %v2182_v6, %v6380_v36  ;;  %v4423_v36 = vld [vmem:[%s6566_s7 + $0x30] sm:$0xff]  ;;  %v4425_v33 = vld [vmem:[%s6567_s9] sm:$0xff] }
 0x35d   :  { %v2407_v49 = vadd.f32 %v6392_v44, %v2381_v8  ;;  %v2408_v54 = vadd.f32 %v6395_v3, %v2382_v62 }
 0x35f   :  { %v2427_v39 = vmax.f32 %v2407_v49, 0.0  ;;  %v2428_v47 = vmax.f32 %v2408_v54, 0.0 }
 0x360   :  { %2837 = vmatpush.bf16.msra.mxu2 %v4414_v32 }
 0x361   :  { %v2442_v53 = vmax.f32 %v2427_v39, %v2428_v47 }
 0x362   :  { %v2327_v27 = vpop.f32.mrf.mxu0  ;;  %v2361_v58 = vpop.f32.mrf.mxu1 }
 0x363   :  { %v2606_v9 = vmax.f32 %v2441_v10, %v2442_v53  ;;  %v2383_v45 = vadd.f32 %v2327_v27, %v2197_v35  ;;  %v2384_v42 = vadd.f32 %v2361_v58, %v2198_v16  ;;  %v2148_v10 = vpop.f32.mrf.mxu2  ;;  %v4421_v27 = vld [vmem:[%s6566_s7 + $0x20] sm:$0xff] }
 0x364   :  { %2838 = vmatpush.bf16.msra.mxu2 %v4413_v56  ;;  %v2203_v7 = vadd.f32 %v2148_v10, %v6377_v25  ;;  %v4424_v25 = vld [vmem:[%s6566_s7 + $0x38] sm:$0xff] }
 0x365   :  { %v2607_v51 = vpack.c.bf16 %v2606_v9, %v2606_v9  ;;  %v2409_v13 = vadd.f32 %v6392_v44, %v2383_v45  ;;  %v2410_v60 = vadd.f32 %v6395_v3, %v2384_v42  ;;  %2924 = vmatpush.bf16.msra.mxu3 %v4424_v25  ;;  %v4420_v9 = vld [vmem:[%s6566_s7 + $0x18] sm:$0xff]  ;;  %v4419_v45 = vld [vmem:[%s6566_s7 + $0x10] sm:$0xff] }
 0x367   :  { %v2429_v38 = vmax.f32 %v2409_v13, 0.0  ;;  %v2430_v23 = vmax.f32 %v2410_v60, 0.0  ;;  %2681 = vmatmul.bf16.vlgmr.msrb.gmra.mxu2 %v2607_v51  ;;  %v4432_v51 = vld [vmem:[%s6567_s9 + $0x38] sm:$0xff]  ;;  %v4431_v13 = vld [vmem:[%s6567_s9 + $0x30] sm:$0xff]  ;;  %v4430_v60 = vld [vmem:[%s6567_s9 + $0x28] sm:$0xff] }
 0x368   :  { %2839 = vmatpush.bf16.msra.mxu2 %v4412_v22  ;;  %3007 = vmatpush.bf16.msrb.mxu0 %v4432_v51 }
 0x369   :  { %v2443_v18 = vmax.f32 %v2429_v38, %v2430_v23  ;;  %2925 = vmatpush.bf16.msra.mxu3 %v4423_v36  ;;  %v4429_v23 = vld [vmem:[%s6567_s9 + $0x20] sm:$0xff] }
 0x36a   :  { %v2329_v55 = vpop.f32.mrf.mxu0  ;;  %v2363_v5 = vpop.f32.mrf.mxu1 }
 0x36b   :  { %v2385_v59 = vadd.f32 %v2329_v55, %v2199_v4  ;;  %v2386_v20 = vadd.f32 %v2363_v5, %v2200_v46  ;;  %v4427_v46 = vld [vmem:[%s6567_s9 + $0x10] sm:$0xff] }
 0x36c   :  { %2840 = vmatpush.bf16.msra.mxu2 %v4411_v29  ;;  %3008 = vmatpush.bf16.msrb.mxu0 %v4431_v13  ;;  %v4428_v29 = vld [vmem:[%s6567_s9 + $0x18] sm:$0xff] }
 0x36d   :  { %v2411_v37 = vadd.f32 %v6392_v44, %v2385_v59  ;;  %v2412_v43 = vadd.f32 %v6395_v3, %v2386_v20  ;;  %v4433_v59 = vld [vmem:[%s6564_s6] ss:$0 sm:$0xff]  ;;  %v4426_v20 = vld [vmem:[%s6567_s9 + $0x8] sm:$0xff] }
 0x36f   :  { %v2431_v26 = vmax.f32 %v2411_v37, 0.0  ;;  %v2432_v48 = vmax.f32 %v2412_v43, 0.0 }
 0x370   :  { %2841 = vmatpush.bf16.msra.mxu2 %v4410_v30  ;;  %3009 = vmatpush.bf16.msrb.mxu0 %v4430_v60 }
 0x371   :  { %v2444_v24 = vmax.f32 %v2431_v26, %v2432_v48 }
 0x372   :  { %v2332_v57 = vpop.f32.mrf.mxu0  ;;  %v2366_v21 = vpop.f32.mrf.mxu1 }
 0x373   :  { %v2687_v12 = vmax.f32 %v2443_v18, %v2444_v24  ;;  %v2387_v61 = vadd.f32 %v2332_v57, %v2201_v0  ;;  %v2388_v31 = vadd.f32 %v2366_v21, %v2202_v63 }
 0x374   :  { %2842 = vmatpush.bf16.msra.mxu2 %v4409_v50  ;;  %3010 = vmatpush.bf16.msrb.mxu0 %v4429_v23  ;;  %v4434_v50 = vld [vmem:[%s6565_s8] ss:$0 sm:$0xff] }
 0x375   :  { %v2688_v11 = vpack.c.bf16 %v2687_v12, %v2687_v12  ;;  %v2413_v2 = vadd.f32 %v6392_v44, %v2387_v61  ;;  %v2414_v17 = vadd.f32 %v6395_v3, %v2388_v31  ;;  %v4435_v12 = vld [vmem:[%s6568_s10] ss:$0 sm:$0xff] }
 0x377   :  { %v2433_v14 = vmax.f32 %v2413_v2, 0.0  ;;  %v2434_v15 = vmax.f32 %v2414_v17, 0.0  ;;  %2762 = vmatmul.bf16.vlgmr.msrb.gmra.mxu3 %v2688_v11 }
 0x378   :  { %3011 = vmatpush.bf16.msrb.mxu0 %v4428_v29 }
 0x379   :  { %v2445_v40 = vmax.f32 %v2433_v14, %v2434_v15 }
 0x37a   :  { %v2334_v34 = vpop.f32.mrf.mxu0  ;;  %v2368_v19 = vpop.f32.mrf.mxu1 }
 0x37b   :  { %v2389_v8 = vadd.f32 %v2334_v34, %v2203_v7  ;;  %v2390_v62 = vadd.f32 %v2368_v19, %v2204_v52 }
 0x37c   :  { %3012 = vmatpush.bf16.msrb.mxu0 %v4427_v46 }
 0x37d   :  { %v2415_v32 = vadd.f32 %v6392_v44, %v2389_v8  ;;  %v2416_v49 = vadd.f32 %v6395_v3, %v2390_v62  ;;  %v4422_v3 = vld [vmem:[%s6566_s7 + $0x28] sm:$0xff] }
 0x37e   :  { %2926 = vmatpush.bf16.msra.mxu3 %v4422_v3 }
 0x37f   :  { %v2435_v54 = vmax.f32 %v2415_v32, 0.0  ;;  %v2436_v39 = vmax.f32 %v2416_v49, 0.0 }
 0x380   :  { %3013 = vmatpush.bf16.msrb.mxu0 %v4426_v20 }
 0x381   :  { %v2446_v47 = vmax.f32 %v2435_v54, %v2436_v39 }
 0x382   :  { %2927 = vmatpush.bf16.msra.mxu3 %v4421_v27 }
 0x383   :  { %v2768_v56 = vmax.f32 %v2445_v40, %v2446_v47 }
 0x384   :  { %3014 = vmatpush.bf16.msrb.mxu0 %v4425_v33 }
 0x385   :  { %v2769_v53 = vpack.c.bf16 %v2768_v56, %v2768_v56 }
 0x386   :  { %2928 = vmatpush.bf16.msra.mxu3 %v4420_v9 }
 0x387   :  { %2843 = vmatmul.bf16.vlgmr.msra.gmra.mxu2 %v2769_v53 }
 0x38a   :  { %2929 = vmatpush.bf16.msra.mxu3 %v4419_v45 }
 0x38e   :  { %2930 = vmatpush.bf16.msra.mxu3 %v4418_v1 }
 0x392   :  { %2931 = vmatpush.bf16.msra.mxu3 %v4417_v28 }
 0x3ca   :  { %v2602_v35 = vpop.f32.mrf.mxu3 }
 0x3d2   :  { %v2604_v16 = vpop.f32.mrf.mxu3 }
 0x3da   :  { %v2541_v44 = vpop.f32.mrf.mxu2 }
 0x3db   :  { %v2603_v4 = vadd.f32 %v2602_v35, %v2541_v44 }
 0x3e2   :  { %v2543_v58 = vpop.f32.mrf.mxu2 }
 0x3ea   :  { %v2682_v42 = vpop.f32.mrf.mxu2 }
 0x3eb   :  { %v2686_v55 = vadd.f32 %v2682_v42, %v2603_v4 }
 0x3f2   :  { %v2684_v22 = vpop.f32.mrf.mxu2 }
 0x3fa   :  { %v2763_v38 = vpop.f32.mrf.mxu3 }
 0x3fb   :  { %v2767_v5 = vadd.f32 %v2763_v38, %v2686_v55 }
 0x402   :  { %v2765_v18 = vpop.f32.mrf.mxu3 }
 0x40a   :  { %v2844_v30 = vpop.f32.mrf.mxu2 }
 0x40b   :  { %v2848_v37 = vadd.f32 %v2844_v30, %v2767_v5 }
 0x40d   :  { %v2853_v43 = vadd.f32 %v4433_v59, %v2848_v37 }
 0x40f   :  { %v2854_v41 = vmax.f32 %v2853_v43, 0.0 }
 0x411   :  { %v2855_v26 = vpack.c.bf16 %v2854_v41, %v2854_v41 }
 0x412   :  { %v2846_v48 = vpop.f32.mrf.mxu2 }
 0x413   :  { %2932 = vmatmul.bf16.vlgmr.msra.gmra.mxu3 %v2855_v26 }
 0x496   :  { %v2933_v24 = vpop.f32.mrf.mxu3 }
 0x497   :  { %v2934_v0 = vadd.f32 %v4434_v50, %v2933_v24 }
 0x499   :  { %v2937_v63 = vmax.f32 %v2934_v0, 0.0 }
 0x49b   :  { %v2938_v57 = vpack.c.bf16 %v2937_v63, %v2937_v63 }
 0x49d   :  { %3015 = vmatmul.bf16.vlgmr.msrb.gmra.mxu0 %v2938_v57 }
 0x49e   :  { %v2935_v21 = vpop.f32.mrf.mxu3 }
 0x51a   :  { %v3016_v61 = vpop.f32.mrf.mxu0 }
 0x51b   :  { %v3017_v31 = vadd.f32 %v4435_v12, %v3016_v61 }
 0x51d   :  { %3020 = vst [vmem:[%s6569_s11] sm:$0xff] %v3017_v31 }
 0x522   :  { %v3018_v11 = vpop.f32.mrf.mxu0 }

</bundles_post_ra>
